<compile_context>
chip_gen: v5e
topology: v5e:2x2
jax: 0.10.0
libtpu: 0.0.40
codegen_flags: <defaults>
</compile_context>

<pallas_src>
import functools

import jax
import jax.numpy as jnp
from jax.experimental import pallas as pl
from jax.experimental.pallas import tpu as pltpu

_F32 = jnp.float32
_BF16 = jnp.bfloat16


def _pick_tile(n, target, align):
    """Largest tile <= target that is a multiple of `align` and divides n.
    Falls back to the full dimension (always a legal Pallas block)."""
    if n <= target:
        return n
    t = (target // align) * align
    while t >= align:
        if n % t == 0:
            return t
        t -= align
    return n


# ---------------------------------------------------------------------------
# Kernels
# ---------------------------------------------------------------------------
def _mlp_kernel(x_ref, w1_ref, b1_ref, w2_ref, b2_ref, h_ref):
    # h = relu(relu(x @ W1 + b1) @ W2 + b2); dropout is eval-mode identity.
    xb = x_ref[...].astype(_BF16)
    h1 = jnp.dot(xb, w1_ref[...], preferred_element_type=_F32) + b1_ref[...]
    h1 = jnp.maximum(h1, 0.0).astype(_BF16)
    h2 = jnp.dot(h1, w2_ref[...], preferred_element_type=_F32) + b2_ref[...]
    h_ref[...] = jnp.maximum(h2, 0.0).astype(h_ref.dtype)


def _sim_stats_kernel(hr_ref, hc_ref, m_ref, d_ref, m_sc, r_sc):
    # Row statistics of s = h h^T: per-row max m_i (matches the reference's
    # x2 - x2.max(dim=1)) and d_i = rsqrt(sum_j exp(s_ij - m_i)).
    k = pl.program_id(1)

    @pl.when(k == 0)
    def _():
        m_sc[...] = jnp.full_like(m_sc, -jnp.inf)
        r_sc[...] = jnp.zeros_like(r_sc)

    # dot_general contracting the last dims => no transposed copy of h.
    s = jax.lax.dot_general(
        hr_ref[...], hc_ref[...],
        dimension_numbers=(((1,), (1,)), ((), ())),
        preferred_element_type=_F32)                       # (TM, TK) f32
    m_new = jnp.maximum(m_sc[...], jnp.max(s, axis=1, keepdims=True))
    r_sc[...] = (r_sc[...] * jnp.exp(m_sc[...] - m_new)
                 + jnp.sum(jnp.exp(s - m_new), axis=1, keepdims=True))
    m_sc[...] = m_new

    @pl.when(k == pl.num_programs(1) - 1)
    def _():
        m_ref[...] = m_sc[...]
        d_ref[...] = jax.lax.rsqrt(r_sc[...])


def _gc_first_kernel(adj_ref, hr_ref, hc_ref, m_ref, dr_ref, dc_ref,
                     wg1_ref, bg1_ref, wg3_ref, bg3_ref,
                     x1_ref, y2_ref, acc1, acc3):
    k = pl.program_id(1)

    @pl.when(k == 0)
    def _():
        acc1[...] = jnp.zeros_like(acc1)
        acc3[...] = jnp.zeros_like(acc3)

    hc = hc_ref[...]                                       # (TK, 128) bf16
    # branch 1 (gc1): adj[:, k-tile] @ (h[k-tile] @ Wg1)
    sup1 = jnp.dot(hc, wg1_ref[...], preferred_element_type=_F32)
    acc1[...] += jnp.dot(adj_ref[...], sup1.astype(_BF16),
                         preferred_element_type=_F32)
    # branch 2 (gc3): Ahat_ij = d_i exp(s_ij - m_i) d_j, recomputed in VMEM.
    s = jax.lax.dot_general(
        hr_ref[...], hc, dimension_numbers=(((1,), (1,)), ((), ())),
        preferred_element_type=_F32)                       # (TM, TK)
    e = jnp.exp(s - m_ref[...])
    sup3 = jnp.dot(hc, wg3_ref[...], preferred_element_type=_F32)
    t3 = dc_ref[...] * sup3                                # fold d_j into support
    acc3[...] += jnp.dot(e.astype(_BF16), t3.astype(_BF16),
                         preferred_element_type=_F32)

    @pl.when(k == pl.num_programs(1) - 1)
    def _():
        x1_ref[...] = jnp.maximum(acc1[...] + bg1_ref[...],
                                  0.0).astype(x1_ref.dtype)
        y2_ref[...] = jnp.maximum(dr_ref[...] * acc3[...] + bg3_ref[...],
                                  0.0).astype(y2_ref.dtype)


def _gc_second_kernel(adj_ref, hr_ref, hc_ref, m_ref, dr_ref, dc_ref,
                      x1_ref, y2_ref, wg2_ref, bg2_ref, wg4_ref, bg4_ref,
                      out_ref, acc2, acc4):
    k = pl.program_id(1)

    @pl.when(k == 0)
    def _():
        acc2[...] = jnp.zeros_like(acc2)
        acc4[...] = jnp.zeros_like(acc4)

    # branch 1 (gc2): adj @ (x1 @ Wg2_padded)
    sup2 = jnp.dot(x1_ref[...], wg2_ref[...], preferred_element_type=_F32)
    acc2[...] += jnp.dot(adj_ref[...], sup2.astype(_BF16),
                         preferred_element_type=_F32)
    # branch 2 (gc4): recomputed Ahat tile @ (y2 @ Wg4_padded)
    s = jax.lax.dot_general(
        hr_ref[...], hc_ref[...], dimension_numbers=(((1,), (1,)), ((), ())),
        preferred_element_type=_F32)
    e = jnp.exp(s - m_ref[...])
    sup4 = jnp.dot(y2_ref[...], wg4_ref[...], preferred_element_type=_F32)
    t4 = dc_ref[...] * sup4
    acc4[...] += jnp.dot(e.astype(_BF16), t4.astype(_BF16),
                         preferred_element_type=_F32)

    @pl.when(k == pl.num_programs(1) - 1)
    def _():
        z1 = acc2[...] + bg2_ref[...]
        z2 = dr_ref[...] * acc4[...] + bg4_ref[...]
        out_ref[...] = (0.5 * (z1 + z2)).astype(out_ref.dtype)


# ---------------------------------------------------------------------------
# Forward wrapper
# ---------------------------------------------------------------------------
def noise_filter_forward(x, adj, params, *, tm=256, tk=512):
    """NoiseFilter forward.  x: (1, N, nfeat), adj: (N, N) -> (1, N, nclass)."""
    assert x.shape[0] == 1
    n, nfeat = x.shape[1], x.shape[2]
    h1_dim = params["w1"].shape[1]           # 512
    h2_dim = params["w2"].shape[1]           # 128
    gh = params["wg1"].shape[1]              # 32
    nclass = params["wg2"].shape[1]
    cp = max(128, pl.cdiv(nclass, 128) * 128)  # lane-dense padded class dim

    tm_t = _pick_tile(n, tm, 8)              # row tile (second-to-last dim)
    tk_t = _pick_tile(n, tk, 128)            # column / reduction tile (lane dim)
    rt, ct = n // tm_t, n // tk_t

    vmem_cap = 48 * 1024 * 1024              # headroom below v7x 64 MiB physical
    cparams_1d = pltpu.CompilerParams(
        dimension_semantics=("parallel",), vmem_limit_bytes=vmem_cap)
    cparams_2d = pltpu.CompilerParams(
        dimension_semantics=("parallel", "arbitrary"), vmem_limit_bytes=vmem_cap)

    x2d = x[0]
    adj_bf = adj.astype(_BF16)               # halves HBM bytes for adj streams
    w1 = params["w1"].astype(_BF16)
    w2 = params["w2"].astype(_BF16)
    wg1 = params["wg1"].astype(_BF16)
    wg3 = params["wg3"].astype(_BF16)
    wg2p = jnp.pad(params["wg2"], ((0, 0), (0, cp - nclass))).astype(_BF16)
    wg4p = jnp.pad(params["wg4"], ((0, 0), (0, cp - nclass))).astype(_BF16)
    b1, b2 = params["b1"], params["b2"]
    bg1, bg3 = params["bg1"], params["bg3"]
    bg2p = jnp.pad(params["bg2"], ((0, 0), (0, cp - nclass)))
    bg4p = jnp.pad(params["bg4"], ((0, 0), (0, cp - nclass)))

    # --- K1: fused fc1 + relu + fc2 + relu --------------------------------
    h = pl.pallas_call(
        _mlp_kernel,
        grid_spec=pltpu.PrefetchScalarGridSpec(
            num_scalar_prefetch=0,
            grid=(rt,),
            in_specs=[
                pl.BlockSpec((tm_t, nfeat), lambda i: (i, 0)),
                pl.BlockSpec((nfeat, h1_dim), lambda i: (0, 0)),
                pl.BlockSpec((1, h1_dim), lambda i: (0, 0)),
                pl.BlockSpec((h1_dim, h2_dim), lambda i: (0, 0)),
                pl.BlockSpec((1, h2_dim), lambda i: (0, 0)),
            ],
            out_specs=pl.BlockSpec((tm_t, h2_dim), lambda i: (i, 0)),
        ),
        out_shape=jax.ShapeDtypeStruct((n, h2_dim), _BF16),
        compiler_params=cparams_1d,
    )(x2d, w1, b1, w2, b2)

    # --- K2: similarity row stats (flash-style; no N x N matrix in HBM) ---
    m, d = pl.pallas_call(
        _sim_stats_kernel,
        grid_spec=pltpu.PrefetchScalarGridSpec(
            num_scalar_prefetch=0,
            grid=(rt, ct),
            in_specs=[
                pl.BlockSpec((tm_t, h2_dim), lambda i, k: (i, 0)),
                pl.BlockSpec((tk_t, h2_dim), lambda i, k: (k, 0)),
            ],
            out_specs=[
                pl.BlockSpec((tm_t, 1), lambda i, k: (i, 0)),
                pl.BlockSpec((tm_t, 1), lambda i, k: (i, 0)),
            ],
            scratch_shapes=[pltpu.VMEM((tm_t, 1), _F32),
                            pltpu.VMEM((tm_t, 1), _F32)],
        ),
        out_shape=(jax.ShapeDtypeStruct((n, 1), _F32),
                   jax.ShapeDtypeStruct((n, 1), _F32)),
        compiler_params=cparams_2d,
    )(h, h)

    # --- K3: gc1 (adj branch) + gc3 (similarity branch), fused ------------
    x1, y2 = pl.pallas_call(
        _gc_first_kernel,
        grid_spec=pltpu.PrefetchScalarGridSpec(
            num_scalar_prefetch=0,
            grid=(rt, ct),
            in_specs=[
                pl.BlockSpec((tm_t, tk_t), lambda i, k: (i, k)),     # adj
                pl.BlockSpec((tm_t, h2_dim), lambda i, k: (i, 0)),   # h rows
                pl.BlockSpec((tk_t, h2_dim), lambda i, k: (k, 0)),   # h cols
                pl.BlockSpec((tm_t, 1), lambda i, k: (i, 0)),        # m rows
                pl.BlockSpec((tm_t, 1), lambda i, k: (i, 0)),        # d rows
                pl.BlockSpec((tk_t, 1), lambda i, k: (k, 0)),        # d cols
                pl.BlockSpec((h2_dim, gh), lambda i, k: (0, 0)),     # Wg1
                pl.BlockSpec((1, gh), lambda i, k: (0, 0)),          # bg1
                pl.BlockSpec((h2_dim, gh), lambda i, k: (0, 0)),     # Wg3
                pl.BlockSpec((1, gh), lambda i, k: (0, 0)),          # bg3
            ],
            out_specs=[
                pl.BlockSpec((tm_t, gh), lambda i, k: (i, 0)),
                pl.BlockSpec((tm_t, gh), lambda i, k: (i, 0)),
            ],
            scratch_shapes=[pltpu.VMEM((tm_t, gh), _F32),
                            pltpu.VMEM((tm_t, gh), _F32)],
        ),
        out_shape=(jax.ShapeDtypeStruct((n, gh), _BF16),
                   jax.ShapeDtypeStruct((n, gh), _BF16)),
        compiler_params=cparams_2d,
    )(adj_bf, h, h, m, d, d, wg1, bg1, wg3, bg3)

    # --- K4: gc2 + gc4 + (x1 + y2) / 2 epilogue, lane-dense padded output -
    outp = pl.pallas_call(
        _gc_second_kernel,
        grid_spec=pltpu.PrefetchScalarGridSpec(
            num_scalar_prefetch=0,
            grid=(rt, ct),
            in_specs=[
                pl.BlockSpec((tm_t, tk_t), lambda i, k: (i, k)),     # adj
                pl.BlockSpec((tm_t, h2_dim), lambda i, k: (i, 0)),   # h rows
                pl.BlockSpec((tk_t, h2_dim), lambda i, k: (k, 0)),   # h cols
                pl.BlockSpec((tm_t, 1), lambda i, k: (i, 0)),        # m rows
                pl.BlockSpec((tm_t, 1), lambda i, k: (i, 0)),        # d rows
                pl.BlockSpec((tk_t, 1), lambda i, k: (k, 0)),        # d cols
                pl.BlockSpec((tk_t, gh), lambda i, k: (k, 0)),       # x1 cols
                pl.BlockSpec((tk_t, gh), lambda i, k: (k, 0)),       # y2 cols
                pl.BlockSpec((gh, cp), lambda i, k: (0, 0)),         # Wg2 padded
                pl.BlockSpec((1, cp), lambda i, k: (0, 0)),          # bg2 padded
                pl.BlockSpec((gh, cp), lambda i, k: (0, 0)),         # Wg4 padded
                pl.BlockSpec((1, cp), lambda i, k: (0, 0)),          # bg4 padded
            ],
            out_specs=pl.BlockSpec((tm_t, cp), lambda i, k: (i, 0)),
            scratch_shapes=[pltpu.VMEM((tm_t, cp), _F32),
                            pltpu.VMEM((tm_t, cp), _F32)],
        ),
        out_shape=jax.ShapeDtypeStruct((n, cp), _F32),
        compiler_params=cparams_2d,
    )(adj_bf, h, h, m, d, d, x1, y2, wg2p, bg2p, wg4p, bg4p)

    return outp[:, :nclass][None]            # (1, N, nclass) float32


# ---------------------------------------------------------------------------
# Deterministic parameter init
# ---------------------------------------------------------------------------
def init_params(key, nfeat, nclass):
    dims = {
        "w1": (nfeat, 512), "b1": (1, 512),
        "w2": (512, 128),   "b2": (1, 128),
        "wg1": (128, 32),   "bg1": (1, 32),
        "wg2": (32, nclass), "bg2": (1, nclass),
        "wg3": (128, 32),   "bg3": (1, 32),
        "wg4": (32, nclass), "bg4": (1, nclass),
    }
    params = {}
    for name, shape in dims.items():
        key, sub = jax.random.split(key)
        fan_in = shape[0] if name.startswith("w") else shape[1]
        scale = 1.0 / jnp.sqrt(jnp.float32(fan_in))
        params[name] = jax.random.uniform(
            sub, shape, dtype=jnp.float32, minval=-scale, maxval=scale)
    return params


if __name__ == "__main__":
    N, NFEAT, NCLASS = 256, 32, 4

    key = jax.random.PRNGKey(0)
    k_x, k_adj, k_p = jax.random.split(key, 3)

    x = jax.random.normal(k_x, (1, N, NFEAT), dtype=jnp.float32)
    adj_raw = jax.random.uniform(k_adj, (N, N), dtype=jnp.float32)
    adj = adj_raw / jnp.sum(adj_raw, axis=1, keepdims=True)  # row-normalized adj

    params = init_params(k_p, NFEAT, NCLASS)

    # tm=tk=128 so the small test actually exercises a (2, 2) tiled grid.
    fwd = jax.jit(functools.partial(noise_filter_forward, tm=128, tk=128))
    out = jax.block_until_ready(fwd(x, adj, params))

    assert out.shape == (1, N, NCLASS)
    assert bool(jnp.all(jnp.isfinite(out)))
    print("KERNEL_OK")
</pallas_src>

<mosaic_0001>
module attributes {stable_mosaic.version = 11 : i64} {
  func.func @_mlp_kernel(%arg0: i32, %arg1: memref<128x32xf32, #tpu.memory_space<vmem>>, %arg2: memref<32x512xbf16, #tpu.memory_space<vmem>>, %arg3: memref<1x512xf32, #tpu.memory_space<vmem>>, %arg4: memref<512x128xbf16, #tpu.memory_space<vmem>>, %arg5: memref<1x128xf32, #tpu.memory_space<vmem>>, %arg6: memref<128x128xbf16, #tpu.memory_space<vmem>>) attributes {dimension_semantics = [#tpu.dimension_semantics<parallel>], iteration_bounds = array<i64: 2>, scalar_prefetch = 0 : i64, scratch_operands = 0 : i64, tpu.core_type = #tpu.core_type<tc>, window_params = [{transform_indices = @transform_0, window_bounds = array<i64: 128, 32>}, {pipeline_mode = #tpu.pipeline_mode<synchronous>, transform_indices = @transform_1, window_bounds = array<i64: 32, 512>}, {pipeline_mode = #tpu.pipeline_mode<synchronous>, transform_indices = @transform_2, window_bounds = array<i64: 1, 512>}, {pipeline_mode = #tpu.pipeline_mode<synchronous>, transform_indices = @transform_3, window_bounds = array<i64: 512, 128>}, {pipeline_mode = #tpu.pipeline_mode<synchronous>, transform_indices = @transform_4, window_bounds = array<i64: 1, 128>}, {transform_indices = @transform_5, window_bounds = array<i64: 128, 128>}]} {
    %c0 = arith.constant 0 : index
    %c0_0 = arith.constant 0 : index
    %0 = vector.load %arg1[%c0, %c0_0] : memref<128x32xf32, #tpu.memory_space<vmem>>, vector<128x32xf32>
    %1 = arith.truncf %0 : vector<128x32xf32> to vector<128x32xbf16>
    %c0_1 = arith.constant 0 : index
    %c0_2 = arith.constant 0 : index
    %2 = vector.load %arg2[%c0_1, %c0_2] : memref<32x512xbf16, #tpu.memory_space<vmem>>, vector<32x512xbf16>
    %cst = arith.constant dense<0.000000e+00> : vector<128x512xf32>
    %3 = tpu.matmul %1, %2, %cst {dimension_numbers = #tpu.dot_dimension_numbers<[1], [0], [0], [1], [0, 0, 1, 1], [], []>} : vector<128x32xbf16>, vector<32x512xbf16>, vector<128x512xf32> -> vector<128x512xf32>
    %c0_3 = arith.constant 0 : index
    %c0_4 = arith.constant 0 : index
    %4 = vector.load %arg3[%c0_3, %c0_4] : memref<1x512xf32, #tpu.memory_space<vmem>>, vector<1x512xf32>
    %5 = vector.broadcast %4 : vector<1x512xf32> to vector<128x512xf32>
    %6 = arith.addf %3, %5 : vector<128x512xf32>
    %cst_5 = arith.constant 0.000000e+00 : f32
    %7 = vector.broadcast %cst_5 : f32 to vector<128x512xf32>
    %8 = arith.maximumf %6, %7 : vector<128x512xf32>
    %9 = arith.truncf %8 : vector<128x512xf32> to vector<128x512xbf16>
    %c0_6 = arith.constant 0 : index
    %c0_7 = arith.constant 0 : index
    %10 = vector.load %arg4[%c0_6, %c0_7] : memref<512x128xbf16, #tpu.memory_space<vmem>>, vector<512x128xbf16>
    %cst_8 = arith.constant dense<0.000000e+00> : vector<128x128xf32>
    %11 = tpu.matmul %9, %10, %cst_8 {dimension_numbers = #tpu.dot_dimension_numbers<[1], [0], [0], [1], [0, 0, 1, 1], [], []>} : vector<128x512xbf16>, vector<512x128xbf16>, vector<128x128xf32> -> vector<128x128xf32>
    %c0_9 = arith.constant 0 : index
    %c0_10 = arith.constant 0 : index
    %12 = vector.load %arg5[%c0_9, %c0_10] : memref<1x128xf32, #tpu.memory_space<vmem>>, vector<1x128xf32>
    %13 = vector.broadcast %12 : vector<1x128xf32> to vector<128x128xf32>
    %14 = arith.addf %11, %13 : vector<128x128xf32>
    %cst_11 = arith.constant 0.000000e+00 : f32
    %15 = vector.broadcast %cst_11 : f32 to vector<128x128xf32>
    %16 = arith.maximumf %14, %15 : vector<128x128xf32>
    %17 = arith.truncf %16 : vector<128x128xf32> to vector<128x128xbf16>
    %c0_12 = arith.constant 0 : index
    %c0_13 = arith.constant 0 : index
    %18 = vector.load %arg6[%c0_12, %c0_13] : memref<128x128xbf16, #tpu.memory_space<vmem>>, vector<128x128xbf16>
    tpu.vector_store %arg6[%c0_12, %c0_13], %17 {strides = array<i32>} : memref<128x128xbf16, #tpu.memory_space<vmem>>, vector<128x128xbf16>,
    return
  }
  func.func @transform_0(%arg0: i32) -> (i32, i32) {
    %c0_i32 = arith.constant 0 : i32
    %c0_i32_0 = arith.constant 0 : i32
    return %arg0, %c0_i32 : i32, i32
  }
  func.func @transform_1(%arg0: i32) -> (i32, i32) {
    %c0_i32 = arith.constant 0 : i32
    %c0_i32_0 = arith.constant 0 : i32
    %c0_i32_1 = arith.constant 0 : i32
    return %c0_i32, %c0_i32_0 : i32, i32
  }
  func.func @transform_2(%arg0: i32) -> (i32, i32) {
    %c0_i32 = arith.constant 0 : i32
    %c0_i32_0 = arith.constant 0 : i32
    %c0_i32_1 = arith.constant 0 : i32
    return %c0_i32, %c0_i32_0 : i32, i32
  }
  func.func @transform_3(%arg0: i32) -> (i32, i32) {
    %c0_i32 = arith.constant 0 : i32
    %c0_i32_0 = arith.constant 0 : i32
    %c0_i32_1 = arith.constant 0 : i32
    return %c0_i32, %c0_i32_0 : i32, i32
  }
  func.func @transform_4(%arg0: i32) -> (i32, i32) {
    %c0_i32 = arith.constant 0 : i32
    %c0_i32_0 = arith.constant 0 : i32
    %c0_i32_1 = arith.constant 0 : i32
    return %c0_i32, %c0_i32_0 : i32, i32
  }
  func.func @transform_5(%arg0: i32) -> (i32, i32) {
    %c0_i32 = arith.constant 0 : i32
    %c0_i32_0 = arith.constant 0 : i32
    return %arg0, %c0_i32 : i32, i32
  }
}

module attributes {stable_mosaic.version = 11 : i64} {
  func.func @_gc_first_kernel(%arg0: i32, %arg1: i32, %arg2: memref<128x128xbf16, #tpu.memory_space<vmem>>, %arg3: memref<128x128xbf16, #tpu.memory_space<vmem>>, %arg4: memref<128x128xbf16, #tpu.memory_space<vmem>>, %arg5: memref<128x1xf32, #tpu.memory_space<vmem>>, %arg6: memref<128x1xf32, #tpu.memory_space<vmem>>, %arg7: memref<128x1xf32, #tpu.memory_space<vmem>>, %arg8: memref<128x32xbf16, #tpu.memory_space<vmem>>, %arg9: memref<1x32xf32, #tpu.memory_space<vmem>>, %arg10: memref<128x32xbf16, #tpu.memory_space<vmem>>, %arg11: memref<1x32xf32, #tpu.memory_space<vmem>>, %arg12: memref<128x32xbf16, #tpu.memory_space<vmem>>, %arg13: memref<128x32xbf16, #tpu.memory_space<vmem>>, %arg14: memref<128x32xf32, #tpu.memory_space<vmem>>, %arg15: memref<128x32xf32, #tpu.memory_space<vmem>>) attributes {dimension_semantics = [#tpu.dimension_semantics<parallel>, #tpu.dimension_semantics<arbitrary>], iteration_bounds = array<i64: 2, 2>, scalar_prefetch = 0 : i64, scratch_operands = 2 : i64, tpu.core_type = #tpu.core_type<tc>, window_params = [{transform_indices = @transform_0, window_bounds = array<i64: 128, 128>}, {transform_indices = @transform_1, window_bounds = array<i64: 128, 128>}, {transform_indices = @transform_2, window_bounds = array<i64: 128, 128>}, {transform_indices = @transform_3, window_bounds = array<i64: 128, 1>}, {transform_indices = @transform_4, window_bounds = array<i64: 128, 1>}, {transform_indices = @transform_5, window_bounds = array<i64: 128, 1>}, {pipeline_mode = #tpu.pipeline_mode<synchronous>, transform_indices = @transform_6, window_bounds = array<i64: 128, 32>}, {pipeline_mode = #tpu.pipeline_mode<synchronous>, transform_indices = @transform_7, window_bounds = array<i64: 1, 32>}, {pipeline_mode = #tpu.pipeline_mode<synchronous>, transform_indices = @transform_8, window_bounds = array<i64: 128, 32>}, {pipeline_mode = #tpu.pipeline_mode<synchronous>, transform_indices = @transform_9, window_bounds = array<i64: 1, 32>}, {transform_indices = @transform_10, window_bounds = array<i64: 128, 32>}, {transform_indices = @transform_11, window_bounds = array<i64: 128, 32>}]} {
    %c0_i32 = arith.constant 0 : i32
    %0 = arith.cmpi eq, %arg1, %c0_i32 : i32
    %1 = arith.extui %0 : i1 to i32
    %c0_i32_0 = arith.constant 0 : i32
    %2 = arith.cmpi ne, %1, %c0_i32_0 : i32
    scf.if %2 {
      %cst_27 = arith.constant 0.000000e+00 : f32
      %32 = vector.broadcast %cst_27 : f32 to vector<128x32xf32>
      %c0_28 = arith.constant 0 : index
      %c0_29 = arith.constant 0 : index
      %33 = vector.load %arg14[%c0_28, %c0_29] : memref<128x32xf32, #tpu.memory_space<vmem>>, vector<128x32xf32>
      tpu.vector_store %arg14[%c0_28, %c0_29], %32 {strides = array<i32>} : memref<128x32xf32, #tpu.memory_space<vmem>>, vector<128x32xf32>,
      %cst_30 = arith.constant 0.000000e+00 : f32
      %34 = vector.broadcast %cst_30 : f32 to vector<128x32xf32>
      %c0_31 = arith.constant 0 : index
      %c0_32 = arith.constant 0 : index
      %35 = vector.load %arg15[%c0_31, %c0_32] : memref<128x32xf32, #tpu.memory_space<vmem>>, vector<128x32xf32>
      tpu.vector_store %arg15[%c0_31, %c0_32], %34 {strides = array<i32>} : memref<128x32xf32, #tpu.memory_space<vmem>>, vector<128x32xf32>,
    } else {
    }
    %c0 = arith.constant 0 : index
    %c0_1 = arith.constant 0 : index
    %3 = vector.load %arg4[%c0, %c0_1] : memref<128x128xbf16, #tpu.memory_space<vmem>>, vector<128x128xbf16>
    %c0_2 = arith.constant 0 : index
    %c0_3 = arith.constant 0 : index
    %4 = vector.load %arg8[%c0_2, %c0_3] : memref<128x32xbf16, #tpu.memory_space<vmem>>, vector<128x32xbf16>
    %cst = arith.constant dense<0.000000e+00> : vector<128x32xf32>
    %5 = tpu.matmul %3, %4, %cst {dimension_numbers = #tpu.dot_dimension_numbers<[1], [0], [0], [1], [0, 0, 1, 1], [], []>} : vector<128x128xbf16>, vector<128x32xbf16>, vector<128x32xf32> -> vector<128x32xf32>
    %c0_4 = arith.constant 0 : index
    %c0_5 = arith.constant 0 : index
    %6 = vector.load %arg14[%c0_4, %c0_5] : memref<128x32xf32, #tpu.memory_space<vmem>>, vector<128x32xf32>
    %c0_6 = arith.constant 0 : index
    %c0_7 = arith.constant 0 : index
    %7 = vector.load %arg2[%c0_6, %c0_7] : memref<128x128xbf16, #tpu.memory_space<vmem>>, vector<128x128xbf16>
    %8 = arith.truncf %5 : vector<128x32xf32> to vector<128x32xbf16>
    %cst_8 = arith.constant dense<0.000000e+00> : vector<128x32xf32>
    %9 = tpu.matmul %7, %8, %cst_8 {dimension_numbers = #tpu.dot_dimension_numbers<[1], [0], [0], [1], [0, 0, 1, 1], [], []>} : vector<128x128xbf16>, vector<128x32xbf16>, vector<128x32xf32> -> vector<128x32xf32>
    %10 = arith.addf %6, %9 : vector<128x32xf32>
    %c0_9 = arith.constant 0 : index
    %c0_10 = arith.constant 0 : index
    %11 = vector.load %arg14[%c0_9, %c0_10] : memref<128x32xf32, #tpu.memory_space<vmem>>, vector<128x32xf32>
    tpu.vector_store %arg14[%c0_9, %c0_10], %10 {strides = array<i32>} : memref<128x32xf32, #tpu.memory_space<vmem>>, vector<128x32xf32>,
    %c0_11 = arith.constant 0 : index
    %c0_12 = arith.constant 0 : index
    %12 = vector.load %arg3[%c0_11, %c0_12] : memref<128x128xbf16, #tpu.memory_space<vmem>>, vector<128x128xbf16>
    %cst_13 = arith.constant dense<0.000000e+00> : vector<128x128xf32>
    %13 = tpu.matmul %12, %3, %cst_13 {dimension_numbers = #tpu.dot_dimension_numbers<[1], [1], [0], [0], [0, 0, 1, 0], [], []>} : vector<128x128xbf16>, vector<128x128xbf16>, vector<128x128xf32> -> vector<128x128xf32>
    %c0_14 = arith.constant 0 : index
    %c0_15 = arith.constant 0 : index
    %14 = vector.load %arg5[%c0_14, %c0_15] : memref<128x1xf32, #tpu.memory_space<vmem>>, vector<128x1xf32>
    %15 = vector.broadcast %14 : vector<128x1xf32> to vector<128x128xf32>
    %16 = arith.subf %13, %15 : vector<128x128xf32>
    %17 = math.exp %16 : vector<128x128xf32>
    %c0_16 = arith.constant 0 : index
    %c0_17 = arith.constant 0 : index
    %18 = vector.load %arg10[%c0_16, %c0_17] : memref<128x32xbf16, #tpu.memory_space<vmem>>, vector<128x32xbf16>
    %cst_18 = arith.constant dense<0.000000e+00> : vector<128x32xf32>
    %19 = tpu.matmul %3, %18, %cst_18 {dimension_numbers = #tpu.dot_dimension_numbers<[1], [0], [0], [1], [0, 0, 1, 1], [], []>} : vector<128x128xbf16>, vector<128x32xbf16>, vector<128x32xf32> -> vector<128x32xf32>
    %c0_19 = arith.constant 0 : index
    %c0_20 = arith.constant 0 : index
    %20 = vector.load %arg7[%c0_19, %c0_20] : memref<128x1xf32, #tpu.memory_space<vmem>>, vector<128x1xf32>
    %21 = vector.broadcast %20 : vector<128x1xf32> to vector<128x32xf32>
    %22 = arith.mulf %21, %19 : vector<128x32xf32>
    %c0_21 = arith.constant 0 : index
    %c0_22 = arith.constant 0 : index
    %23 = vector.load %arg15[%c0_21, %c0_22] : memref<128x32xf32, #tpu.memory_space<vmem>>, vector<128x32xf32>
    %24 = arith.truncf %17 : vector<128x128xf32> to vector<128x128xbf16>
    %25 = arith.truncf %22 : vector<128x32xf32> to vector<128x32xbf16>
    %cst_23 = arith.constant dense<0.000000e+00> : vector<128x32xf32>
    %26 = tpu.matmul %24, %25, %cst_23 {dimension_numbers = #tpu.dot_dimension_numbers<[1], [0], [0], [1], [0, 0, 1, 1], [], []>} : vector<128x128xbf16>, vector<128x32xbf16>, vector<128x32xf32> -> vector<128x32xf32>
    %27 = arith.addf %23, %26 : vector<128x32xf32>
    %c0_24 = arith.constant 0 : index
    %c0_25 = arith.constant 0 : index
    %28 = vector.load %arg15[%c0_24, %c0_25] : memref<128x32xf32, #tpu.memory_space<vmem>>, vector<128x32xf32>
    tpu.vector_store %arg15[%c0_24, %c0_25], %27 {strides = array<i32>} : memref<128x32xf32, #tpu.memory_space<vmem>>, vector<128x32xf32>,
    %c1_i32 = arith.constant 1 : i32
    %29 = arith.cmpi eq, %arg1, %c1_i32 : i32
    %30 = arith.extui %29 : i1 to i32
    %c0_i32_26 = arith.constant 0 : i32
    %31 = arith.cmpi ne, %30, %c0_i32_26 : i32
    scf.if %31 {
      %c0_27 = arith.constant 0 : index
      %c0_28 = arith.constant 0 : index
      %32 = vector.load %arg14[%c0_27, %c0_28] : memref<128x32xf32, #tpu.memory_space<vmem>>, vector<128x32xf32>
      %c0_29 = arith.constant 0 : index
      %c0_30 = arith.constant 0 : index
      %33 = vector.load %arg9[%c0_29, %c0_30] : memref<1x32xf32, #tpu.memory_space<vmem>>, vector<1x32xf32>
      %34 = vector.broadcast %33 : vector<1x32xf32> to vector<128x32xf32>
      %35 = arith.addf %32, %34 : vector<128x32xf32>
      %cst_31 = arith.constant 0.000000e+00 : f32
      %36 = vector.broadcast %cst_31 : f32 to vector<128x32xf32>
      %37 = arith.maximumf %35, %36 : vector<128x32xf32>
      %38 = arith.truncf %37 : vector<128x32xf32> to vector<128x32xbf16>
      %c0_32 = arith.constant 0 : index
      %c0_33 = arith.constant 0 : index
      %39 = vector.load %arg12[%c0_32, %c0_33] : memref<128x32xbf16, #tpu.memory_space<vmem>>, vector<128x32xbf16>
      tpu.vector_store %arg12[%c0_32, %c0_33], %38 {strides = array<i32>} : memref<128x32xbf16, #tpu.memory_space<vmem>>, vector<128x32xbf16>,
      %c0_34 = arith.constant 0 : index
      %c0_35 = arith.constant 0 : index
      %40 = vector.load %arg6[%c0_34, %c0_35] : memref<128x1xf32, #tpu.memory_space<vmem>>, vector<128x1xf32>
      %c0_36 = arith.constant 0 : index
      %c0_37 = arith.constant 0 : index
      %41 = vector.load %arg15[%c0_36, %c0_37] : memref<128x32xf32, #tpu.memory_space<vmem>>, vector<128x32xf32>
      %42 = vector.broadcast %40 : vector<128x1xf32> to vector<128x32xf32>
      %43 = arith.mulf %42, %41 : vector<128x32xf32>
      %c0_38 = arith.constant 0 : index
      %c0_39 = arith.constant 0 : index
      %44 = vector.load %arg11[%c0_38, %c0_39] : memref<1x32xf32, #tpu.memory_space<vmem>>, vector<1x32xf32>
      %45 = vector.broadcast %44 : vector<1x32xf32> to vector<128x32xf32>
      %46 = arith.addf %43, %45 : vector<128x32xf32>
      %cst_40 = arith.constant 0.000000e+00 : f32
      %47 = vector.broadcast %cst_40 : f32 to vector<128x32xf32>
      %48 = arith.maximumf %46, %47 : vector<128x32xf32>
      %49 = arith.truncf %48 : vector<128x32xf32> to vector<128x32xbf16>
      %c0_41 = arith.constant 0 : index
      %c0_42 = arith.constant 0 : index
      %50 = vector.load %arg13[%c0_41, %c0_42] : memref<128x32xbf16, #tpu.memory_space<vmem>>, vector<128x32xbf16>
      tpu.vector_store %arg13[%c0_41, %c0_42], %49 {strides = array<i32>} : memref<128x32xbf16, #tpu.memory_space<vmem>>, vector<128x32xbf16>,
    } else {
    }
    return
  }
  func.func @transform_0(%arg0: i32, %arg1: i32) -> (i32, i32) {
    %c0_i32 = arith.constant 0 : i32
    return %arg0, %arg1 : i32, i32
  }
  func.func @transform_1(%arg0: i32, %arg1: i32) -> (i32, i32) {
    %c0_i32 = arith.constant 0 : i32
    %c0_i32_0 = arith.constant 0 : i32
    return %arg0, %c0_i32 : i32, i32
  }
  func.func @transform_2(%arg0: i32, %arg1: i32) -> (i32, i32) {
    %c0_i32 = arith.constant 0 : i32
    %c0_i32_0 = arith.constant 0 : i32
    return %arg1, %c0_i32 : i32, i32
  }
  func.func @transform_3(%arg0: i32, %arg1: i32) -> (i32, i32) {
    %c0_i32 = arith.constant 0 : i32
    %c0_i32_0 = arith.constant 0 : i32
    return %arg0, %c0_i32 : i32, i32
  }
  func.func @transform_4(%arg0: i32, %arg1: i32) -> (i32, i32) {
    %c0_i32 = arith.constant 0 : i32
    %c0_i32_0 = arith.constant 0 : i32
    return %arg0, %c0_i32 : i32, i32
  }
  func.func @transform_5(%arg0: i32, %arg1: i32) -> (i32, i32) {
    %c0_i32 = arith.constant 0 : i32
    %c0_i32_0 = arith.constant 0 : i32
    return %arg1, %c0_i32 : i32, i32
  }
  func.func @transform_6(%arg0: i32, %arg1: i32) -> (i32, i32) {
    %c0_i32 = arith.constant 0 : i32
    %c0_i32_0 = arith.constant 0 : i32
    %c0_i32_1 = arith.constant 0 : i32
    return %c0_i32, %c0_i32_0 : i32, i32
  }
  func.func @transform_7(%arg0: i32, %arg1: i32) -> (i32, i32) {
    %c0_i32 = arith.constant 0 : i32
    %c0_i32_0 = arith.constant 0 : i32
    %c0_i32_1 = arith.constant 0 : i32
    return %c0_i32, %c0_i32_0 : i32, i32
  }
  func.func @transform_8(%arg0: i32, %arg1: i32) -> (i32, i32) {
    %c0_i32 = arith.constant 0 : i32
    %c0_i32_0 = arith.constant 0 : i32
    %c0_i32_1 = arith.constant 0 : i32
    return %c0_i32, %c0_i32_0 : i32, i32
  }
  func.func @transform_9(%arg0: i32, %arg1: i32) -> (i32, i32) {
    %c0_i32 = arith.constant 0 : i32
    %c0_i32_0 = arith.constant 0 : i32
    %c0_i32_1 = arith.constant 0 : i32
    return %c0_i32, %c0_i32_0 : i32, i32
  }
  func.func @transform_10(%arg0: i32, %arg1: i32) -> (i32, i32) {
    %c0_i32 = arith.constant 0 : i32
    %c0_i32_0 = arith.constant 0 : i32
    return %arg0, %c0_i32 : i32, i32
  }
  func.func @transform_11(%arg0: i32, %arg1: i32) -> (i32, i32) {
    %c0_i32 = arith.constant 0 : i32
    %c0_i32_0 = arith.constant 0 : i32
    return %arg0, %c0_i32 : i32, i32
  }
}

module attributes {stable_mosaic.version = 11 : i64} {
  func.func @_sim_stats_kernel(%arg0: i32, %arg1: i32, %arg2: memref<128x128xbf16, #tpu.memory_space<vmem>>, %arg3: memref<128x128xbf16, #tpu.memory_space<vmem>>, %arg4: memref<128x1xf32, #tpu.memory_space<vmem>>, %arg5: memref<128x1xf32, #tpu.memory_space<vmem>>, %arg6: memref<128x1xf32, #tpu.memory_space<vmem>>, %arg7: memref<128x1xf32, #tpu.memory_space<vmem>>) attributes {dimension_semantics = [#tpu.dimension_semantics<parallel>, #tpu.dimension_semantics<arbitrary>], iteration_bounds = array<i64: 2, 2>, scalar_prefetch = 0 : i64, scratch_operands = 2 : i64, tpu.core_type = #tpu.core_type<tc>, window_params = [{transform_indices = @transform_0, window_bounds = array<i64: 128, 128>}, {transform_indices = @transform_1, window_bounds = array<i64: 128, 128>}, {transform_indices = @transform_2, window_bounds = array<i64: 128, 1>}, {transform_indices = @transform_3, window_bounds = array<i64: 128, 1>}]} {
    %c0_i32 = arith.constant 0 : i32
    %0 = arith.cmpi eq, %arg1, %c0_i32 : i32
    %1 = arith.extui %0 : i1 to i32
    %c0_i32_0 = arith.constant 0 : i32
    %2 = arith.cmpi ne, %1, %c0_i32_0 : i32
    scf.if %2 {
      %cst_17 = arith.constant 0xFF800000 : f32
      %26 = vector.broadcast %cst_17 : f32 to vector<128x1xf32>
      %c0_18 = arith.constant 0 : index
      %c0_19 = arith.constant 0 : index
      %27 = vector.load %arg6[%c0_18, %c0_19] : memref<128x1xf32, #tpu.memory_space<vmem>>, vector<128x1xf32>
      tpu.vector_store %arg6[%c0_18, %c0_19], %26 {strides = array<i32>} : memref<128x1xf32, #tpu.memory_space<vmem>>, vector<128x1xf32>,
      %cst_20 = arith.constant 0.000000e+00 : f32
      %28 = vector.broadcast %cst_20 : f32 to vector<128x1xf32>
      %c0_21 = arith.constant 0 : index
      %c0_22 = arith.constant 0 : index
      %29 = vector.load %arg7[%c0_21, %c0_22] : memref<128x1xf32, #tpu.memory_space<vmem>>, vector<128x1xf32>
      tpu.vector_store %arg7[%c0_21, %c0_22], %28 {strides = array<i32>} : memref<128x1xf32, #tpu.memory_space<vmem>>, vector<128x1xf32>,
    } else {
    }
    %c0 = arith.constant 0 : index
    %c0_1 = arith.constant 0 : index
    %3 = vector.load %arg2[%c0, %c0_1] : memref<128x128xbf16, #tpu.memory_space<vmem>>, vector<128x128xbf16>
    %c0_2 = arith.constant 0 : index
    %c0_3 = arith.constant 0 : index
    %4 = vector.load %arg3[%c0_2, %c0_3] : memref<128x128xbf16, #tpu.memory_space<vmem>>, vector<128x128xbf16>
    %cst = arith.constant dense<0.000000e+00> : vector<128x128xf32>
    %5 = tpu.matmul %3, %4, %cst {dimension_numbers = #tpu.dot_dimension_numbers<[1], [1], [0], [0], [0, 0, 1, 0], [], []>} : vector<128x128xbf16>, vector<128x128xbf16>, vector<128x128xf32> -> vector<128x128xf32>
    %c0_4 = arith.constant 0 : index
    %c0_5 = arith.constant 0 : index
    %6 = vector.load %arg6[%c0_4, %c0_5] : memref<128x1xf32, #tpu.memory_space<vmem>>, vector<128x1xf32>
    %cst_6 = arith.constant dense<0xFF800000> : vector<128xf32>
    %7 = vector.multi_reduction <maximumf>, %5, %cst_6 [1] : vector<128x128xf32> to vector<128xf32>
    %8 = vector.shape_cast %7 : vector<128xf32> to vector<128x1xf32>
    %9 = arith.maximumf %6, %8 : vector<128x1xf32>
    %c0_7 = arith.constant 0 : index
    %c0_8 = arith.constant 0 : index
    %10 = vector.load %arg7[%c0_7, %c0_8] : memref<128x1xf32, #tpu.memory_space<vmem>>, vector<128x1xf32>
    %c0_9 = arith.constant 0 : index
    %c0_10 = arith.constant 0 : index
    %11 = vector.load %arg6[%c0_9, %c0_10] : memref<128x1xf32, #tpu.memory_space<vmem>>, vector<128x1xf32>
    %12 = arith.subf %11, %9 : vector<128x1xf32>
    %13 = math.exp %12 : vector<128x1xf32>
    %14 = arith.mulf %10, %13 : vector<128x1xf32>
    %15 = vector.broadcast %9 : vector<128x1xf32> to vector<128x128xf32>
    %16 = arith.subf %5, %15 : vector<128x128xf32>
    %17 = math.exp %16 : vector<128x128xf32>
    %cst_11 = arith.constant dense<0.000000e+00> : vector<128xf32>
    %18 = vector.multi_reduction <add>, %17, %cst_11 [1] : vector<128x128xf32> to vector<128xf32>
    %19 = vector.shape_cast %18 : vector<128xf32> to vector<128x1xf32>
    %20 = arith.addf %14, %19 : vector<128x1xf32>
    %c0_12 = arith.constant 0 : index
    %c0_13 = arith.constant 0 : index
    %21 = vector.load %arg7[%c0_12, %c0_13] : memref<128x1xf32, #tpu.memory_space<vmem>>, vector<128x1xf32>
    tpu.vector_store %arg7[%c0_12, %c0_13], %20 {strides = array<i32>} : memref<128x1xf32, #tpu.memory_space<vmem>>, vector<128x1xf32>,
    %c0_14 = arith.constant 0 : index
    %c0_15 = arith.constant 0 : index
    %22 = vector.load %arg6[%c0_14, %c0_15] : memref<128x1xf32, #tpu.memory_space<vmem>>, vector<128x1xf32>
    tpu.vector_store %arg6[%c0_14, %c0_15], %9 {strides = array<i32>} : memref<128x1xf32, #tpu.memory_space<vmem>>, vector<128x1xf32>,
    %c1_i32 = arith.constant 1 : i32
    %23 = arith.cmpi eq, %arg1, %c1_i32 : i32
    %24 = arith.extui %23 : i1 to i32
    %c0_i32_16 = arith.constant 0 : i32
    %25 = arith.cmpi ne, %24, %c0_i32_16 : i32
    scf.if %25 {
      %c0_17 = arith.constant 0 : index
      %c0_18 = arith.constant 0 : index
      %26 = vector.load %arg6[%c0_17, %c0_18] : memref<128x1xf32, #tpu.memory_space<vmem>>, vector<128x1xf32>
      %c0_19 = arith.constant 0 : index
      %c0_20 = arith.constant 0 : index
      %27 = vector.load %arg4[%c0_19, %c0_20] : memref<128x1xf32, #tpu.memory_space<vmem>>, vector<128x1xf32>
      tpu.vector_store %arg4[%c0_19, %c0_20], %26 {strides = array<i32>} : memref<128x1xf32, #tpu.memory_space<vmem>>, vector<128x1xf32>,
      %c0_21 = arith.constant 0 : index
      %c0_22 = arith.constant 0 : index
      %28 = vector.load %arg7[%c0_21, %c0_22] : memref<128x1xf32, #tpu.memory_space<vmem>>, vector<128x1xf32>
      %29 = math.rsqrt %28 : vector<128x1xf32>
      %c0_23 = arith.constant 0 : index
      %c0_24 = arith.constant 0 : index
      %30 = vector.load %arg5[%c0_23, %c0_24] : memref<128x1xf32, #tpu.memory_space<vmem>>, vector<128x1xf32>
      tpu.vector_store %arg5[%c0_23, %c0_24], %29 {strides = array<i32>} : memref<128x1xf32, #tpu.memory_space<vmem>>, vector<128x1xf32>,
    } else {
    }
    return
  }
  func.func @transform_0(%arg0: i32, %arg1: i32) -> (i32, i32) {
    %c0_i32 = arith.constant 0 : i32
    %c0_i32_0 = arith.constant 0 : i32
    return %arg0, %c0_i32 : i32, i32
  }
  func.func @transform_1(%arg0: i32, %arg1: i32) -> (i32, i32) {
    %c0_i32 = arith.constant 0 : i32
    %c0_i32_0 = arith.constant 0 : i32
    return %arg1, %c0_i32 : i32, i32
  }
  func.func @transform_2(%arg0: i32, %arg1: i32) -> (i32, i32) {
    %c0_i32 = arith.constant 0 : i32
    %c0_i32_0 = arith.constant 0 : i32
    return %arg0, %c0_i32 : i32, i32
  }
  func.func @transform_3(%arg0: i32, %arg1: i32) -> (i32, i32) {
    %c0_i32 = arith.constant 0 : i32
    %c0_i32_0 = arith.constant 0 : i32
    return %arg0, %c0_i32 : i32, i32
  }
}

module attributes {stable_mosaic.version = 11 : i64} {
  func.func @_gc_second_kernel(%arg0: i32, %arg1: i32, %arg2: memref<128x128xbf16, #tpu.memory_space<vmem>>, %arg3: memref<128x128xbf16, #tpu.memory_space<vmem>>, %arg4: memref<128x128xbf16, #tpu.memory_space<vmem>>, %arg5: memref<128x1xf32, #tpu.memory_space<vmem>>, %arg6: memref<128x1xf32, #tpu.memory_space<vmem>>, %arg7: memref<128x1xf32, #tpu.memory_space<vmem>>, %arg8: memref<128x32xbf16, #tpu.memory_space<vmem>>, %arg9: memref<128x32xbf16, #tpu.memory_space<vmem>>, %arg10: memref<32x128xbf16, #tpu.memory_space<vmem>>, %arg11: memref<1x128xf32, #tpu.memory_space<vmem>>, %arg12: memref<32x128xbf16, #tpu.memory_space<vmem>>, %arg13: memref<1x128xf32, #tpu.memory_space<vmem>>, %arg14: memref<128x128xf32, #tpu.memory_space<vmem>>, %arg15: memref<128x128xf32, #tpu.memory_space<vmem>>, %arg16: memref<128x128xf32, #tpu.memory_space<vmem>>) attributes {dimension_semantics = [#tpu.dimension_semantics<parallel>, #tpu.dimension_semantics<arbitrary>], iteration_bounds = array<i64: 2, 2>, scalar_prefetch = 0 : i64, scratch_operands = 2 : i64, tpu.core_type = #tpu.core_type<tc>, window_params = [{transform_indices = @transform_0, window_bounds = array<i64: 128, 128>}, {transform_indices = @transform_1, window_bounds = array<i64: 128, 128>}, {transform_indices = @transform_2, window_bounds = array<i64: 128, 128>}, {transform_indices = @transform_3, window_bounds = array<i64: 128, 1>}, {transform_indices = @transform_4, window_bounds = array<i64: 128, 1>}, {transform_indices = @transform_5, window_bounds = array<i64: 128, 1>}, {transform_indices = @transform_6, window_bounds = array<i64: 128, 32>}, {transform_indices = @transform_7, window_bounds = array<i64: 128, 32>}, {pipeline_mode = #tpu.pipeline_mode<synchronous>, transform_indices = @transform_8, window_bounds = array<i64: 32, 128>}, {pipeline_mode = #tpu.pipeline_mode<synchronous>, transform_indices = @transform_9, window_bounds = array<i64: 1, 128>}, {pipeline_mode = #tpu.pipeline_mode<synchronous>, transform_indices = @transform_10, window_bounds = array<i64: 32, 128>}, {pipeline_mode = #tpu.pipeline_mode<synchronous>, transform_indices = @transform_11, window_bounds = array<i64: 1, 128>}, {transform_indices = @transform_12, window_bounds = array<i64: 128, 128>}]} {
    %c0_i32 = arith.constant 0 : i32
    %0 = arith.cmpi eq, %arg1, %c0_i32 : i32
    %1 = arith.extui %0 : i1 to i32
    %c0_i32_0 = arith.constant 0 : i32
    %2 = arith.cmpi ne, %1, %c0_i32_0 : i32
    scf.if %2 {
      %cst_31 = arith.constant 0.000000e+00 : f32
      %34 = vector.broadcast %cst_31 : f32 to vector<128x128xf32>
      %c0_32 = arith.constant 0 : index
      %c0_33 = arith.constant 0 : index
      %35 = vector.load %arg15[%c0_32, %c0_33] : memref<128x128xf32, #tpu.memory_space<vmem>>, vector<128x128xf32>
      tpu.vector_store %arg15[%c0_32, %c0_33], %34 {strides = array<i32>} : memref<128x128xf32, #tpu.memory_space<vmem>>, vector<128x128xf32>,
      %cst_34 = arith.constant 0.000000e+00 : f32
      %36 = vector.broadcast %cst_34 : f32 to vector<128x128xf32>
      %c0_35 = arith.constant 0 : index
      %c0_36 = arith.constant 0 : index
      %37 = vector.load %arg16[%c0_35, %c0_36] : memref<128x128xf32, #tpu.memory_space<vmem>>, vector<128x128xf32>
      tpu.vector_store %arg16[%c0_35, %c0_36], %36 {strides = array<i32>} : memref<128x128xf32, #tpu.memory_space<vmem>>, vector<128x128xf32>,
    } else {
    }
    %c0 = arith.constant 0 : index
    %c0_1 = arith.constant 0 : index
    %3 = vector.load %arg8[%c0, %c0_1] : memref<128x32xbf16, #tpu.memory_space<vmem>>, vector<128x32xbf16>
    %c0_2 = arith.constant 0 : index
    %c0_3 = arith.constant 0 : index
    %4 = vector.load %arg10[%c0_2, %c0_3] : memref<32x128xbf16, #tpu.memory_space<vmem>>, vector<32x128xbf16>
    %cst = arith.constant dense<0.000000e+00> : vector<128x128xf32>
    %5 = tpu.matmul %3, %4, %cst {dimension_numbers = #tpu.dot_dimension_numbers<[1], [0], [0], [1], [0, 0, 1, 1], [], []>} : vector<128x32xbf16>, vector<32x128xbf16>, vector<128x128xf32> -> vector<128x128xf32>
    %c0_4 = arith.constant 0 : index
    %c0_5 = arith.constant 0 : index
    %6 = vector.load %arg15[%c0_4, %c0_5] : memref<128x128xf32, #tpu.memory_space<vmem>>, vector<128x128xf32>
    %c0_6 = arith.constant 0 : index
    %c0_7 = arith.constant 0 : index
    %7 = vector.load %arg2[%c0_6, %c0_7] : memref<128x128xbf16, #tpu.memory_space<vmem>>, vector<128x128xbf16>
    %8 = arith.truncf %5 : vector<128x128xf32> to vector<128x128xbf16>
    %cst_8 = arith.constant dense<0.000000e+00> : vector<128x128xf32>
    %9 = tpu.matmul %7, %8, %cst_8 {dimension_numbers = #tpu.dot_dimension_numbers<[1], [0], [0], [1], [0, 0, 1, 1], [], []>} : vector<128x128xbf16>, vector<128x128xbf16>, vector<128x128xf32> -> vector<128x128xf32>
    %10 = arith.addf %6, %9 : vector<128x128xf32>
    %c0_9 = arith.constant 0 : index
    %c0_10 = arith.constant 0 : index
    %11 = vector.load %arg15[%c0_9, %c0_10] : memref<128x128xf32, #tpu.memory_space<vmem>>, vector<128x128xf32>
    tpu.vector_store %arg15[%c0_9, %c0_10], %10 {strides = array<i32>} : memref<128x128xf32, #tpu.memory_space<vmem>>, vector<128x128xf32>,
    %c0_11 = arith.constant 0 : index
    %c0_12 = arith.constant 0 : index
    %12 = vector.load %arg3[%c0_11, %c0_12] : memref<128x128xbf16, #tpu.memory_space<vmem>>, vector<128x128xbf16>
    %c0_13 = arith.constant 0 : index
    %c0_14 = arith.constant 0 : index
    %13 = vector.load %arg4[%c0_13, %c0_14] : memref<128x128xbf16, #tpu.memory_space<vmem>>, vector<128x128xbf16>
    %cst_15 = arith.constant dense<0.000000e+00> : vector<128x128xf32>
    %14 = tpu.matmul %12, %13, %cst_15 {dimension_numbers = #tpu.dot_dimension_numbers<[1], [1], [0], [0], [0, 0, 1, 0], [], []>} : vector<128x128xbf16>, vector<128x128xbf16>, vector<128x128xf32> -> vector<128x128xf32>
    %c0_16 = arith.constant 0 : index
    %c0_17 = arith.constant 0 : index
    %15 = vector.load %arg5[%c0_16, %c0_17] : memref<128x1xf32, #tpu.memory_space<vmem>>, vector<128x1xf32>
    %16 = vector.broadcast %15 : vector<128x1xf32> to vector<128x128xf32>
    %17 = arith.subf %14, %16 : vector<128x128xf32>
    %18 = math.exp %17 : vector<128x128xf32>
    %c0_18 = arith.constant 0 : index
    %c0_19 = arith.constant 0 : index
    %19 = vector.load %arg9[%c0_18, %c0_19] : memref<128x32xbf16, #tpu.memory_space<vmem>>, vector<128x32xbf16>
    %c0_20 = arith.constant 0 : index
    %c0_21 = arith.constant 0 : index
    %20 = vector.load %arg12[%c0_20, %c0_21] : memref<32x128xbf16, #tpu.memory_space<vmem>>, vector<32x128xbf16>
    %cst_22 = arith.constant dense<0.000000e+00> : vector<128x128xf32>
    %21 = tpu.matmul %19, %20, %cst_22 {dimension_numbers = #tpu.dot_dimension_numbers<[1], [0], [0], [1], [0, 0, 1, 1], [], []>} : vector<128x32xbf16>, vector<32x128xbf16>, vector<128x128xf32> -> vector<128x128xf32>
    %c0_23 = arith.constant 0 : index
    %c0_24 = arith.constant 0 : index
    %22 = vector.load %arg7[%c0_23, %c0_24] : memref<128x1xf32, #tpu.memory_space<vmem>>, vector<128x1xf32>
    %23 = vector.broadcast %22 : vector<128x1xf32> to vector<128x128xf32>
    %24 = arith.mulf %23, %21 : vector<128x128xf32>
    %c0_25 = arith.constant 0 : index
    %c0_26 = arith.constant 0 : index
    %25 = vector.load %arg16[%c0_25, %c0_26] : memref<128x128xf32, #tpu.memory_space<vmem>>, vector<128x128xf32>
    %26 = arith.truncf %18 : vector<128x128xf32> to vector<128x128xbf16>
    %27 = arith.truncf %24 : vector<128x128xf32> to vector<128x128xbf16>
    %cst_27 = arith.constant dense<0.000000e+00> : vector<128x128xf32>
    %28 = tpu.matmul %26, %27, %cst_27 {dimension_numbers = #tpu.dot_dimension_numbers<[1], [0], [0], [1], [0, 0, 1, 1], [], []>} : vector<128x128xbf16>, vector<128x128xbf16>, vector<128x128xf32> -> vector<128x128xf32>
    %29 = arith.addf %25, %28 : vector<128x128xf32>
    %c0_28 = arith.constant 0 : index
    %c0_29 = arith.constant 0 : index
    %30 = vector.load %arg16[%c0_28, %c0_29] : memref<128x128xf32, #tpu.memory_space<vmem>>, vector<128x128xf32>
    tpu.vector_store %arg16[%c0_28, %c0_29], %29 {strides = array<i32>} : memref<128x128xf32, #tpu.memory_space<vmem>>, vector<128x128xf32>,
    %c1_i32 = arith.constant 1 : i32
    %31 = arith.cmpi eq, %arg1, %c1_i32 : i32
    %32 = arith.extui %31 : i1 to i32
    %c0_i32_30 = arith.constant 0 : i32
    %33 = arith.cmpi ne, %32, %c0_i32_30 : i32
    scf.if %33 {
      %c0_31 = arith.constant 0 : index
      %c0_32 = arith.constant 0 : index
      %34 = vector.load %arg15[%c0_31, %c0_32] : memref<128x128xf32, #tpu.memory_space<vmem>>, vector<128x128xf32>
      %c0_33 = arith.constant 0 : index
      %c0_34 = arith.constant 0 : index
      %35 = vector.load %arg11[%c0_33, %c0_34] : memref<1x128xf32, #tpu.memory_space<vmem>>, vector<1x128xf32>
      %36 = vector.broadcast %35 : vector<1x128xf32> to vector<128x128xf32>
      %37 = arith.addf %34, %36 : vector<128x128xf32>
      %c0_35 = arith.constant 0 : index
      %c0_36 = arith.constant 0 : index
      %38 = vector.load %arg6[%c0_35, %c0_36] : memref<128x1xf32, #tpu.memory_space<vmem>>, vector<128x1xf32>
      %c0_37 = arith.constant 0 : index
      %c0_38 = arith.constant 0 : index
      %39 = vector.load %arg16[%c0_37, %c0_38] : memref<128x128xf32, #tpu.memory_space<vmem>>, vector<128x128xf32>
      %40 = vector.broadcast %38 : vector<128x1xf32> to vector<128x128xf32>
      %41 = arith.mulf %40, %39 : vector<128x128xf32>
      %c0_39 = arith.constant 0 : index
      %c0_40 = arith.constant 0 : index
      %42 = vector.load %arg13[%c0_39, %c0_40] : memref<1x128xf32, #tpu.memory_space<vmem>>, vector<1x128xf32>
      %43 = vector.broadcast %42 : vector<1x128xf32> to vector<128x128xf32>
      %44 = arith.addf %41, %43 : vector<128x128xf32>
      %45 = arith.addf %37, %44 : vector<128x128xf32>
      %cst_41 = arith.constant 5.000000e-01 : f32
      %46 = vector.broadcast %cst_41 : f32 to vector<128x128xf32>
      %47 = arith.mulf %46, %45 : vector<128x128xf32>
      %c0_42 = arith.constant 0 : index
      %c0_43 = arith.constant 0 : index
      %48 = vector.load %arg14[%c0_42, %c0_43] : memref<128x128xf32, #tpu.memory_space<vmem>>, vector<128x128xf32>
      tpu.vector_store %arg14[%c0_42, %c0_43], %47 {strides = array<i32>} : memref<128x128xf32, #tpu.memory_space<vmem>>, vector<128x128xf32>,
    } else {
    }
    return
  }
  func.func @transform_0(%arg0: i32, %arg1: i32) -> (i32, i32) {
    %c0_i32 = arith.constant 0 : i32
    return %arg0, %arg1 : i32, i32
  }
  func.func @transform_1(%arg0: i32, %arg1: i32) -> (i32, i32) {
    %c0_i32 = arith.constant 0 : i32
    %c0_i32_0 = arith.constant 0 : i32
    return %arg0, %c0_i32 : i32, i32
  }
  func.func @transform_2(%arg0: i32, %arg1: i32) -> (i32, i32) {
    %c0_i32 = arith.constant 0 : i32
    %c0_i32_0 = arith.constant 0 : i32
    return %arg1, %c0_i32 : i32, i32
  }
  func.func @transform_3(%arg0: i32, %arg1: i32) -> (i32, i32) {
    %c0_i32 = arith.constant 0 : i32
    %c0_i32_0 = arith.constant 0 : i32
    return %arg0, %c0_i32 : i32, i32
  }
  func.func @transform_4(%arg0: i32, %arg1: i32) -> (i32, i32) {
    %c0_i32 = arith.constant 0 : i32
    %c0_i32_0 = arith.constant 0 : i32
    return %arg0, %c0_i32 : i32, i32
  }
  func.func @transform_5(%arg0: i32, %arg1: i32) -> (i32, i32) {
    %c0_i32 = arith.constant 0 : i32
    %c0_i32_0 = arith.constant 0 : i32
    return %arg1, %c0_i32 : i32, i32
  }
  func.func @transform_6(%arg0: i32, %arg1: i32) -> (i32, i32) {
    %c0_i32 = arith.constant 0 : i32
    %c0_i32_0 = arith.constant 0 : i32
    return %arg1, %c0_i32 : i32, i32
  }
  func.func @transform_7(%arg0: i32, %arg1: i32) -> (i32, i32) {
    %c0_i32 = arith.constant 0 : i32
    %c0_i32_0 = arith.constant 0 : i32
    return %arg1, %c0_i32 : i32, i32
  }
  func.func @transform_8(%arg0: i32, %arg1: i32) -> (i32, i32) {
    %c0_i32 = arith.constant 0 : i32
    %c0_i32_0 = arith.constant 0 : i32
    %c0_i32_1 = arith.constant 0 : i32
    return %c0_i32, %c0_i32_0 : i32, i32
  }
  func.func @transform_9(%arg0: i32, %arg1: i32) -> (i32, i32) {
    %c0_i32 = arith.constant 0 : i32
    %c0_i32_0 = arith.constant 0 : i32
    %c0_i32_1 = arith.constant 0 : i32
    return %c0_i32, %c0_i32_0 : i32, i32
  }
  func.func @transform_10(%arg0: i32, %arg1: i32) -> (i32, i32) {
    %c0_i32 = arith.constant 0 : i32
    %c0_i32_0 = arith.constant 0 : i32
    %c0_i32_1 = arith.constant 0 : i32
    return %c0_i32, %c0_i32_0 : i32, i32
  }
  func.func @transform_11(%arg0: i32, %arg1: i32) -> (i32, i32) {
    %c0_i32 = arith.constant 0 : i32
    %c0_i32_0 = arith.constant 0 : i32
    %c0_i32_1 = arith.constant 0 : i32
    return %c0_i32, %c0_i32_0 : i32, i32
  }
  func.func @transform_12(%arg0: i32, %arg1: i32) -> (i32, i32) {
    %c0_i32 = arith.constant 0 : i32
    %c0_i32_0 = arith.constant 0 : i32
    return %arg0, %c0_i32 : i32, i32
  }
}

</mosaic_0001>

<bundles_post_ra>
// kernel: noise_filter_forward.5
= control target key start
LH: loop header
LB: loop body
LE: loop exit
PB: predicated region body
PF: predicated region fallthrough
CT: control target
= control target key end

     0   :  { %s1457_s12 = smov 0   ;;  %s1459_s13 = smov 0   ;;  %s2203_s0 = inlined_call_operand.vmem [shape: bf16[256,128], index: 0, kind: input, shape index: {}, may-alias: {0,1}]   ;;  %s2204_s1 = inlined_call_operand.vmem [shape: bf16[256,128], index: 1, kind: input, shape index: {}, may-alias: {0,1}]   ;;  %s2205_s2 = inlined_call_operand.vmem [shape: f32[256,1], index: 2, kind: output, shape index: {0}]   ;;  %s2206_s3 = inlined_call_operand.vmem [shape: f32[256,1], index: 3, kind: output, shape index: {1}]  }
   0x1   :  { %s1461_s14 = smov 0   ;;  %s1463_s15 = smov 0  }
   0x2   :  { %s1465_s16 = smov 0  }
   0x3 LB: > { %s23_s17 = sadd.s32 1, %s1424_s14  ;;  %s26_s18 = sadd.s32 1, %s1428_s15  ;;  %s1432_s16 = sphi %s1465_s16, %s14_s16   ;;  %s1428_s15 = sphi %s1463_s15, %s2253_s15   ;;  %s1424_s14 = sphi %s1461_s14, %s2252_s14   ;;  %s1420_s13 = sphi %s1459_s13, %s2251_s13   ;;  %s1416_s12 = sphi %s1457_s12, %s2250_s12  }
   0x4   : > { %p24_p0 = scmp.ge.s32.totalorder %s23_s17, 2  ;;  %p1135_p1 = scmp.ge.s32.totalorder %s1432_s16, 1 }
   0x5   : > { %p164_p2 = scmp.lt.s32.totalorder %s1432_s16, 5 }
   0x6   : > { %s2255_s17 = smov (%p24_p0, %s23_s17), 0  ;;  %s2257_s18 = smov (!%p24_p0, %s26_s18), %s1428_s15 }
   0x7   : > { %p165_p3 = pnand %p1135_p1, %p164_p2  ;;  %p28_p4 = scmp.ge.s32.totalorder %s2257_s18, 2 }
   0x9   : > { %s2259_s18 = smov (%p28_p4, %s2257_s18), 0  ;;  %168 = sbr.rel (%p165_p3) target bundleno = 719 (0x2cf), region = 28 }
   0xe   : > { %s1136_s19 = sshll.u32 %s1420_s13, 4  ;;  %s1138_s20 = sshll.u32 %s1416_s12, 4 }
   0xf   : > { %p199_p5 = scmp.lt.s32.totalorder %s1136_s19, 31  ;;  %p205_p6 = scmp.lt.s32.totalorder %s1138_s20, 31 }
  0x10   : > { %p1144_p7 = scmp.ne.s32.totalorder %s1416_s12, 0 }
  0x11   : > { %s2261_s19 = smov (!%p199_p5, %s1136_s19), 31  ;;  %s2263_s20 = smov (!%p205_p6, %s1138_s20), 31 }
  0x12   : > { %s1137_s21 = sshll.u32 %s2261_s19, 2  ;;  %s1141_s22 = sshll.u32 %s2261_s19, 3 }
  0x13   : > { %s1493_s25 = scalar_lea.vmem %s2203_s0, %s1137_s21  ;;  %s1139_s26 = sshll.u32 %s2263_s20, 2 }
  0x14   : > { %s1498_s29 = scalar_lea.vmem %s2204_s1, %s1139_s26  ;;  %s1503_s5 = scalar_lea.vmem %s2205_s2, %s1141_s22 }
  0x15   : > { %s1508_s8 = scalar_lea.vmem %s2206_s3, %s1141_s22  ;;  %225 = sbr.rel (%p1144_p7) target bundleno = 59 (0x3b), region = 32 }
  0x1a   : > { %vm226_vm0 = vcmask 7168   ;;  %v1434_v0 = vmov -inf   ;;  %v1435_v1 = vmov 0.0  }
  0x1b   : > { %227 = vst.msk [vmem:[#allocation2] sm:$0xff] %vm226_vm0, %v1434_v0 }
  0x1c   : > { %228 = vst.msk [vmem:[#allocation2 + $0x8] sm:$0xff] %vm226_vm0, %v1434_v0 }
  0x1d   : > { %229 = vst.msk [vmem:[#allocation2 + $0x10] sm:$0xff] %vm226_vm0, %v1434_v0 }
  0x1e   : > { %230 = vst.msk [vmem:[#allocation2 + $0x18] sm:$0xff] %vm226_vm0, %v1434_v0 }
  0x1f   : > { %231 = vst.msk [vmem:[#allocation2 + $0x20] sm:$0xff] %vm226_vm0, %v1434_v0 }
  0x20   : > { %232 = vst.msk [vmem:[#allocation2 + $0x28] sm:$0xff] %vm226_vm0, %v1434_v0 }
  0x21   : > { %233 = vst.msk [vmem:[#allocation2 + $0x30] sm:$0xff] %vm226_vm0, %v1434_v0 }
  0x22   : > { %234 = vst.msk [vmem:[#allocation2 + $0x38] sm:$0xff] %vm226_vm0, %v1434_v0 }
  0x23   : > { %235 = vst.msk [vmem:[#allocation2 + $0x40] sm:$0xff] %vm226_vm0, %v1434_v0 }
  0x24   : > { %236 = vst.msk [vmem:[#allocation2 + $0x48] sm:$0xff] %vm226_vm0, %v1434_v0 }
  0x25   : > { %237 = vst.msk [vmem:[#allocation2 + $0x50] sm:$0xff] %vm226_vm0, %v1434_v0 }
  0x26   : > { %238 = vst.msk [vmem:[#allocation2 + $0x58] sm:$0xff] %vm226_vm0, %v1434_v0 }
  0x27   : > { %239 = vst.msk [vmem:[#allocation2 + $0x60] sm:$0xff] %vm226_vm0, %v1434_v0 }
  0x28   : > { %240 = vst.msk [vmem:[#allocation2 + $0x68] sm:$0xff] %vm226_vm0, %v1434_v0 }
  0x29   : > { %241 = vst.msk [vmem:[#allocation2 + $0x70] sm:$0xff] %vm226_vm0, %v1434_v0 }
  0x2a   : > { %242 = vst.msk [vmem:[#allocation2 + $0x78] sm:$0xff] %vm226_vm0, %v1434_v0 }
  0x2b   : > { %243 = vst.msk [vmem:[#allocation3] sm:$0xff] %vm226_vm0, %v1435_v1 }
  0x2c   : > { %244 = vst.msk [vmem:[#allocation3 + $0x8] sm:$0xff] %vm226_vm0, %v1435_v1 }
  0x2d   : > { %245 = vst.msk [vmem:[#allocation3 + $0x10] sm:$0xff] %vm226_vm0, %v1435_v1 }
  0x2e   : > { %246 = vst.msk [vmem:[#allocation3 + $0x18] sm:$0xff] %vm226_vm0, %v1435_v1 }
  0x2f   : > { %247 = vst.msk [vmem:[#allocation3 + $0x20] sm:$0xff] %vm226_vm0, %v1435_v1 }
  0x30   : > { %248 = vst.msk [vmem:[#allocation3 + $0x28] sm:$0xff] %vm226_vm0, %v1435_v1 }
  0x31   : > { %249 = vst.msk [vmem:[#allocation3 + $0x30] sm:$0xff] %vm226_vm0, %v1435_v1 }
  0x32   : > { %250 = vst.msk [vmem:[#allocation3 + $0x38] sm:$0xff] %vm226_vm0, %v1435_v1 }
  0x33   : > { %251 = vst.msk [vmem:[#allocation3 + $0x40] sm:$0xff] %vm226_vm0, %v1435_v1 }
  0x34   : > { %252 = vst.msk [vmem:[#allocation3 + $0x48] sm:$0xff] %vm226_vm0, %v1435_v1 }
  0x35   : > { %253 = vst.msk [vmem:[#allocation3 + $0x50] sm:$0xff] %vm226_vm0, %v1435_v1 }
  0x36   : > { %254 = vst.msk [vmem:[#allocation3 + $0x58] sm:$0xff] %vm226_vm0, %v1435_v1 }
  0x37   : > { %255 = vst.msk [vmem:[#allocation3 + $0x60] sm:$0xff] %vm226_vm0, %v1435_v1 }
  0x38   : > { %256 = vst.msk [vmem:[#allocation3 + $0x68] sm:$0xff] %vm226_vm0, %v1435_v1 }
  0x39   : > { %257 = vst.msk [vmem:[#allocation3 + $0x70] sm:$0xff] %vm226_vm0, %v1435_v1 }
  0x3a   : > { %258 = vst.msk [vmem:[#allocation3 + $0x78] sm:$0xff] %vm226_vm0, %v1435_v1 }
  0x3b PF: > { %v1227_v2 = vld [vmem:[%s1498_s29 + $0x38] sm:$0xff]  ;;  %v1226_v3 = vld [vmem:[%s1498_s29 + $0x30] sm:$0xff]  ;;  %v1225_v4 = vld [vmem:[%s1498_s29 + $0x28] sm:$0xff]  ;;  %v1436_v34 = vmov 0   ;;  %vm756_vm1 = vcmask 7168   ;;  %p1209_p8 = scmp.ne.s32.totalorder %s1416_s12, 1 }
  0x3c   : > { %387 = vmatpush.bf16.xpose.msra.mxu0 %v1227_v2  ;;  %1228 = vmatpush.bf16.xpose.msra.mxu1 %v1227_v2  ;;  %v1224_v5 = vld [vmem:[%s1498_s29 + $0x20] sm:$0xff]  ;;  %v1223_v6 = vld [vmem:[%s1498_s29 + $0x18] sm:$0xff]  ;;  %v1222_v7 = vld [vmem:[%s1498_s29 + $0x10] sm:$0xff] }
  0x3d   : > { %1230 = vmatpush.bf16.xpose.msra.mxu3 %v1227_v2  ;;  %1229 = vmatpush.bf16.xpose.msra.mxu2 %v1227_v2  ;;  %v1221_v8 = vld [vmem:[%s1498_s29 + $0x8] sm:$0xff]  ;;  %v1220_v9 = vld [vmem:[%s1498_s29] sm:$0xff]  ;;  %v1214_v11 = vld [vmem:[%s1493_s25 + $0x10] sm:$0xff] }
  0x3e   : > { %v1212_v10 = vld [vmem:[%s1493_s25] sm:$0xff]  ;;  %v1218_v12 = vld [vmem:[%s1493_s25 + $0x30] sm:$0xff]  ;;  %v1213_v14 = vld [vmem:[%s1493_s25 + $0x8] sm:$0xff]  ;;  %1295 = vset.pattern.permute.xlu1 %v1436_v34  ;;  %1296 = vset.pattern.permute.xlu0 %v1436_v34 }
  0x3f   : > { %v1216_v13 = vld [vmem:[%s1493_s25 + $0x20] sm:$0xff]  ;;  %v1215_v15 = vld [vmem:[%s1493_s25 + $0x18] sm:$0xff]  ;;  %v1217_v16 = vld [vmem:[%s1493_s25 + $0x28] sm:$0xff]  ;;  %1297 = vset.pattern.permute.xlu2 %v1436_v34 }
  0x40   : > { %v1219_v17 = vld [vmem:[%s1493_s25 + $0x38] sm:$0xff]  ;;  %v1607_v35 = vld [vmem:[#allocation2 + $0x20] sm:$0xff]  ;;  %v1646_v51 = vld [vmem:[#allocation2 + $0x68] sm:$0xff] }
  0x41   : > { %v1609_v36 = vld [vmem:[#allocation2] sm:$0xff]  ;;  %v1648_v52 = vld [vmem:[#allocation2 + $0x28] sm:$0xff]  ;;  %v1675_v63 = vld [vmem:[#allocation2 + $0x10] sm:$0xff] }
  0x42   : > { %v1626_v43 = vld [vmem:[#allocation2 + $0x40] sm:$0xff]  ;;  %v1650_v53 = vld [vmem:[#allocation2 + $0x8] sm:$0xff]  ;;  %v1679_v1 = vld [vmem:[#allocation2 + $0x70] sm:$0xff] }
  0x43   : > { %v1628_v44 = vld [vmem:[#allocation2 + $0x60] sm:$0xff]  ;;  %v1677_v0 = vld [vmem:[#allocation2 + $0x48] sm:$0xff] }
  0x44   : > { %388 = vmatpush.bf16.xpose.msra.mxu0 %v1226_v3  ;;  %1231 = vmatpush.bf16.xpose.msra.mxu1 %v1226_v3 }
  0x45   : > { %1233 = vmatpush.bf16.xpose.msra.mxu3 %v1226_v3  ;;  %1232 = vmatpush.bf16.xpose.msra.mxu2 %v1226_v3 }
  0x4c   : > { %389 = vmatpush.bf16.xpose.msra.mxu0 %v1225_v4  ;;  %1234 = vmatpush.bf16.xpose.msra.mxu1 %v1225_v4 }
  0x4d   : > { %1236 = vmatpush.bf16.xpose.msra.mxu3 %v1225_v4  ;;  %1235 = vmatpush.bf16.xpose.msra.mxu2 %v1225_v4 }
  0x54   : > { %390 = vmatpush.bf16.xpose.msra.mxu0 %v1224_v5  ;;  %1237 = vmatpush.bf16.xpose.msra.mxu1 %v1224_v5 }
  0x55   : > { %1239 = vmatpush.bf16.xpose.msra.mxu3 %v1224_v5  ;;  %1238 = vmatpush.bf16.xpose.msra.mxu2 %v1224_v5 }
  0x5c   : > { %391 = vmatpush.bf16.xpose.msra.mxu0 %v1223_v6  ;;  %1240 = vmatpush.bf16.xpose.msra.mxu1 %v1223_v6 }
  0x5d   : > { %1242 = vmatpush.bf16.xpose.msra.mxu3 %v1223_v6  ;;  %1241 = vmatpush.bf16.xpose.msra.mxu2 %v1223_v6 }
  0x64   : > { %392 = vmatpush.bf16.xpose.msra.mxu0 %v1222_v7  ;;  %1243 = vmatpush.bf16.xpose.msra.mxu1 %v1222_v7 }
  0x65   : > { %1245 = vmatpush.bf16.xpose.msra.mxu3 %v1222_v7  ;;  %1244 = vmatpush.bf16.xpose.msra.mxu2 %v1222_v7 }
  0x6c   : > { %393 = vmatpush.bf16.xpose.msra.mxu0 %v1221_v8  ;;  %1246 = vmatpush.bf16.xpose.msra.mxu1 %v1221_v8 }
  0x6d   : > { %1248 = vmatpush.bf16.xpose.msra.mxu3 %v1221_v8  ;;  %1247 = vmatpush.bf16.xpose.msra.mxu2 %v1221_v8 }
  0x74   : > { %394 = vmatpush.bf16.xpose.msra.mxu0 %v1220_v9  ;;  %1249 = vmatpush.bf16.xpose.msra.mxu1 %v1220_v9 }
  0x75   : > { %1251 = vmatpush.bf16.xpose.msra.mxu3 %v1220_v9  ;;  %1250 = vmatpush.bf16.xpose.msra.mxu2 %v1220_v9 }
  0x7b   : > { %395 = vmatmul.bf16.vlgmr.msra.gmra.mxu0 %v1212_v10  ;;  %405 = vmatmul.bf16.vlgmr.msra.gmra.mxu1 %v1214_v11  ;;  %v1704_v11 = vld [vmem:[#allocation2 + $0x50] sm:$0xff] }
  0x7c   : > { %425 = vmatmul.bf16.vlgmr.msra.gmra.mxu3 %v1218_v12  ;;  %415 = vmatmul.bf16.vlgmr.msra.gmra.mxu2 %v1216_v13  ;;  %v1706_v12 = vld [vmem:[#allocation2 + $0x30] sm:$0xff]  ;;  %v1708_v13 = vld [vmem:[#allocation2 + $0x58] sm:$0xff] }
  0x8b   : > { %400 = vmatmul.bf16.gmra.mxu0 %v1213_v14  ;;  %410 = vmatmul.bf16.gmra.mxu1 %v1215_v15 }
  0x8c   : > { %420 = vmatmul.bf16.gmra.mxu2 %v1217_v16  ;;  %430 = vmatmul.bf16.gmra.mxu3 %v1219_v17 }
  0xf8   : > { %v1559_v18 = vpop.f32.mrf.mxu0  ;;  %v1561_v19 = vpop.f32.mrf.mxu1 }
  0xf9   : > { %460 = vmax.xlane.f32.xlu2 %v1561_v19  ;;  %452 = vmax.xlane.f32.xlu0 %v1559_v18 }
  0xff   : > { %v1565_v20 = vpop.f32.mrf.mxu3  ;;  %v1567_v21 = vpop.f32.mrf.mxu2 }
 0x100   : > { %v1571_v22 = vpop.f32.mrf.mxu0  ;;  %v1573_v23 = vpop.f32.mrf.mxu1 }
 0x101   : > { %468 = vmax.xlane.f32.xlu2 %v1567_v21  ;;  %476 = vmax.xlane.f32.xlu0 %v1565_v20 }
 0x107   : > { %v1575_v24 = vpop.f32.mrf.mxu3  ;;  %v1577_v25 = vpop.f32.mrf.mxu2 }
 0x108   : > { %478 = vmax.xlane.f32.xlu1 %v1575_v24  ;;  %v1582_v26 = vpop.f32.mrf.mxu0  ;;  %v1593_v30 = vpop.f32.mrf.mxu1 }
 0x109   : > { %462 = vmax.xlane.f32.xlu2 %v1573_v23  ;;  %454 = vmax.xlane.f32.xlu0 %v1571_v22 }
 0x10f   : > { %v1584_v27 = vpop.f32.mrf.mxu2  ;;  %v1586_v28 = vpop.f32.mrf.mxu3 }
 0x110   : > { %456 = vmax.xlane.f32.xlu1 %v1582_v26  ;;  %v1598_v31 = vpop.f32.mrf.mxu0  ;;  %v1604_v33 = vpop.f32.mrf.mxu1 }
 0x111   : > { %470 = vmax.xlane.f32.xlu0 %v1577_v25  ;;  %480 = vmax.xlane.f32.xlu2 %v1586_v28 }
 0x117   : > { %v1591_v29 = vpop.f32.mrf.mxu2  ;;  %v1600_v32 = vpop.f32.mrf.mxu3 }
 0x118   : > { %472 = vmax.xlane.f32.xlu1 %v1584_v27 }
 0x119   : > { %464 = vmax.xlane.f32.xlu0 %v1593_v30  ;;  %474 = vmax.xlane.f32.xlu2 %v1591_v29 }
 0x120   : > { %458 = vmax.xlane.f32.xlu1 %v1598_v31 }
 0x121   : > { %482 = vmax.xlane.f32.xlu0 %v1600_v32 }
 0x128   : > { %466 = vmax.xlane.f32.xlu1 %v1604_v33 }
 0x16c   : > { %v461_v37 = vpop.xlane.xlu2 %460  ;;  %v453_v38 = vpop.xlane.xlu0 %452 }
 0x16d   : > { %v1612_v39 = vmax.f32 %v1607_v35, %v461_v37  ;;  %v1615_v40 = vmax.f32 %v1609_v36, %v453_v38 }
 0x16f   : > { %777 = vst.msk [vmem:[#allocation2 + $0x20] sm:$0xff] %vm756_vm1, %v1612_v39  ;;  %582 = vperm.xlu1 %1295, %v1615_v40  }
 0x170   : > { %773 = vst.msk [vmem:[#allocation2] sm:$0xff] %vm756_vm1, %v1615_v40 }
 0x174   : > { %v469_v45 = vpop.xlane.xlu2 %468  ;;  %v477_v46 = vpop.xlane.xlu0 %476 }
 0x175   : > { %v1631_v47 = vmax.f32 %v1626_v43, %v469_v45  ;;  %v1634_v48 = vmax.f32 %v1628_v44, %v477_v46 }
 0x177   : > { %781 = vst.msk [vmem:[#allocation2 + $0x40] sm:$0xff] %vm756_vm1, %v1631_v47  ;;  %642 = vperm.xlu0 %1296, %v1634_v48   ;;  %602 = vperm.xlu1 %1295, %v1612_v39  }
 0x178   : > { %785 = vst.msk [vmem:[#allocation2 + $0x60] sm:$0xff] %vm756_vm1, %v1634_v48 }
 0x17b   : > { %v479_v54 = vpop.xlane.xlu1 %478 }
 0x17c   : > { %v1653_v55 = vmax.f32 %v1646_v51, %v479_v54  ;;  %v463_v56 = vpop.xlane.xlu2 %462  ;;  %v455_v57 = vpop.xlane.xlu0 %454  ;;  %v1734_v54 = vld [vmem:[#allocation2 + $0x18] sm:$0xff] }
 0x17d   : > { %v1656_v58 = vmax.f32 %v1648_v52, %v463_v56  ;;  %v1659_v59 = vmax.f32 %v1650_v53, %v455_v57  ;;  %v1736_v56 = vld [vmem:[#allocation2 + $0x78] sm:$0xff] }
 0x17e   : > { %786 = vst.msk [vmem:[#allocation2 + $0x68] sm:$0xff] %vm756_vm1, %v1653_v55 }
 0x17f   : > { %778 = vst.msk [vmem:[#allocation2 + $0x28] sm:$0xff] %vm756_vm1, %v1656_v58  ;;  %587 = vperm.xlu2 %1297, %v1659_v59   ;;  %622 = vperm.xlu1 %1295, %v1631_v47  }
 0x180   : > { %774 = vst.msk [vmem:[#allocation2 + $0x8] sm:$0xff] %vm756_vm1, %v1659_v59 }
 0x183   : > { %v457_v2 = vpop.xlane.xlu1 %456 }
 0x184   : > { %v1682_v3 = vmax.f32 %v1675_v63, %v457_v2  ;;  %v471_v4 = vpop.xlane.xlu0 %470  ;;  %v481_v5 = vpop.xlane.xlu2 %480 }
 0x185   : > { %v1685_v6 = vmax.f32 %v1677_v0, %v471_v4  ;;  %v1688_v7 = vmax.f32 %v1679_v1, %v481_v5 }
 0x186   : > { %775 = vst.msk [vmem:[#allocation2 + $0x10] sm:$0xff] %vm756_vm1, %v1682_v3 }
 0x187   : > { %2208 = vst [vmem:[#allocation4_spill] sm:$0xff] %v1688_v7  ;;  %607 = vperm.xlu2 %1297, %v1656_v58   ;;  %627 = vperm.xlu0 %1296, %v1685_v6  }
 0x188   : > { %782 = vst.msk [vmem:[#allocation2 + $0x48] sm:$0xff] %vm756_vm1, %v1685_v6 }
 0x189   : > { %787 = vst.msk [vmem:[#allocation2 + $0x70] sm:$0xff] %vm756_vm1, %v1688_v7 }
 0x18b   : > { %v473_v14 = vpop.xlane.xlu1 %472 }
 0x18c   : > { %v1711_v15 = vmax.f32 %v1704_v11, %v473_v14  ;;  %v465_v16 = vpop.xlane.xlu0 %464  ;;  %v475_v17 = vpop.xlane.xlu2 %474 }
 0x18d   : > { %v1714_v34 = vmax.f32 %v1706_v12, %v465_v16  ;;  %v1717_v37 = vmax.f32 %v1708_v13, %v475_v17  ;;  %v1755_v17 = vld [vmem:[#allocation2 + $0x38] sm:$0xff] }
 0x18e   : > { %783 = vst.msk [vmem:[#allocation2 + $0x50] sm:$0xff] %vm756_vm1, %v1711_v15 }
 0x18f   : > { %779 = vst.msk [vmem:[#allocation2 + $0x30] sm:$0xff] %vm756_vm1, %v1714_v34  ;;  %647 = vperm.xlu2 %1297, %v1653_v55   ;;  %592 = vperm.xlu0 %1296, %v1682_v3  }
 0x190   : > { %612 = vperm.xlu1 %1295, %v1714_v34   ;;  %784 = vst.msk [vmem:[#allocation2 + $0x58] sm:$0xff] %vm756_vm1, %v1717_v37 }
 0x193   : > { %v459_v57 = vpop.xlane.xlu1 %458 }
 0x194   : > { %v1739_v2 = vmax.f32 %v1734_v54, %v459_v57  ;;  %v483_v4 = vpop.xlane.xlu0 %482 }
 0x195   : > { %v1742_v5 = vmax.f32 %v1736_v56, %v483_v4 }
 0x196   : > { %776 = vst.msk [vmem:[#allocation2 + $0x18] sm:$0xff] %vm756_vm1, %v1739_v2 }
 0x197   : > { %788 = vst.msk [vmem:[#allocation2 + $0x78] sm:$0xff] %vm756_vm1, %v1742_v5  ;;  %657 = vperm.xlu0 %1296, %v1742_v5   ;;  %632 = vperm.xlu2 %1297, %v1711_v15  }
 0x198   : > { %652 = vperm.xlu1 %1295, %v1688_v7  }
 0x19b   : > { %v467_v57 = vpop.xlane.xlu1 %466 }
 0x19c   : > { %v1758_v4 = vmax.f32 %v1755_v17, %v467_v57 }
 0x19e   : > { %780 = vst.msk [vmem:[#allocation2 + $0x38] sm:$0xff] %vm756_vm1, %v1758_v4 }
 0x19f   : > { %597 = vperm.xlu2 %1297, %v1739_v2  }
 0x1a0   : > { %637 = vperm.xlu1 %1295, %v1717_v37  }
 0x1a7   : > { %617 = vperm.xlu2 %1297, %v1758_v4  }
 0x1d9   : > { %v588_v46 = vpop.permute.xlu2 %587 }
 0x1da   : > { %v661_v41 = vsub.f32 %v1571_v22, %v588_v46 }
 0x1e1   : > { %v608_v16 = vpop.permute.xlu2 %607  ;;  %v583_v60 = vpop.permute.xlu1 %582 }
 0x1e2   : > { %v660_v45 = vsub.f32 %v1559_v18, %v583_v60 }
 0x1e4   : > { %v676_v14 = vmul.f32 1.442695, %v660_v45  ;;  %v678_v45 = vmul.f32 1.442695, %v661_v41 }
 0x1e6   : > { %1298 = vpow2.f32 %v676_v14 }
 0x1e9   : > { %v1768_v57 = vpop.permute.xlu2 %647  ;;  %v643_v8 = vpop.permute.xlu0 %642 }
 0x1ea   : > { %v672_v10 = vsub.f32 %v1565_v20, %v643_v8  ;;  %v603_v38 = vpop.permute.xlu1 %602  ;;  %v665_v20 = vsub.f32 %v1573_v23, %v608_v16 }
 0x1eb   : > { %v664_v61 = vsub.f32 %v1561_v19, %v603_v38 }
 0x1ec   : > { %v700_v9 = vmul.f32 1.442695, %v672_v10  ;;  %v1299_v62 = vpop.eup %1298 }
 0x1ed   : > { %v684_v49 = vmul.f32 1.442695, %v664_v61  ;;  %708 = vadd.xlane.f32.xlu2 %v1299_v62 }
 0x1ee   : > { %1300 = vpow2.f32 %v700_v9 }
 0x1ef   : > { %1302 = vpow2.f32 %v684_v49  ;;  %v686_v49 = vmul.f32 1.442695, %v665_v20 }
 0x1f1   : > { %v633_v50 = vpop.permute.xlu2 %632 }
 0x1f2   : > { %v623_v18 = vpop.permute.xlu1 %622  ;;  %v670_v19 = vsub.f32 %v1584_v27, %v633_v50 }
 0x1f3   : > { %v668_v60 = vsub.f32 %v1567_v21, %v623_v18 }
 0x1f4   : > { %v1301_v14 = vpop.eup %1300  ;;  %v696_v8 = vmul.f32 1.442695, %v670_v19 }
 0x1f5   : > { %v692_v42 = vmul.f32 1.442695, %v668_v60  ;;  %v1303_v7 = vpop.eup %1302  ;;  %732 = vadd.xlane.f32.xlu0 %v1301_v14 }
 0x1f6   : > { %716 = vadd.xlane.f32.xlu1 %v1303_v7 }
 0x1f7   : > { %1304 = vpow2.f32 %v692_v42 }
 0x1f8   : > { %1306 = vpow2.f32 %v678_v45  ;;  %v673_v45 = vsub.f32 %v1575_v24, %v1768_v57 }
 0x1f9   : > { %v628_v61 = vpop.permute.xlu0 %627  ;;  %v598_v62 = vpop.permute.xlu2 %597 }
 0x1fa   : > { %v669_v22 = vsub.f32 %v1577_v25, %v628_v61  ;;  %v663_v41 = vsub.f32 %v1598_v31, %v598_v62  ;;  %v702_v61 = vmul.f32 1.442695, %v673_v45 }
 0x1fc   : > { %v694_v9 = vmul.f32 1.442695, %v669_v22  ;;  %v682_v23 = vmul.f32 1.442695, %v663_v41 }
 0x1fd   : > { %v1305_v21 = vpop.eup %1304 }
 0x1fe   : > { %v1307_v10 = vpop.eup %1306  ;;  %1308 = vpow2.f32 %v694_v9  ;;  %724 = vadd.xlane.f32.xlu2 %v1305_v21 }
 0x1ff   : > { %1310 = vpow2.f32 %v686_v49  ;;  %710 = vadd.xlane.f32.xlu1 %v1307_v10 }
 0x200   : > { %1312 = vpow2.f32 %v696_v8 }
 0x201   : > { %v593_v42 = vpop.permute.xlu0 %592  ;;  %v618_v7 = vpop.permute.xlu2 %617  ;;  %1314 = vpow2.f32 %v682_v23 }
 0x202   : > { %v662_v27 = vsub.f32 %v1582_v26, %v593_v42  ;;  %v667_v50 = vsub.f32 %v1604_v33, %v618_v7  ;;  %v613_v25 = vpop.permute.xlu1 %612  ;;  %v2210_v7 = vsub.f32 %v1628_v44, %v1634_v48 }
 0x203   : > { %v666_v60 = vsub.f32 %v1593_v30, %v613_v25 }
 0x204   : > { %v1309_v38 = vpop.eup %1308  ;;  %v680_v46 = vmul.f32 1.442695, %v662_v27  ;;  %v690_v16 = vmul.f32 1.442695, %v667_v50  ;;  %v556_v27 = vmul.f32 1.442695, %v2210_v7 }
 0x205   : > { %v1311_v18 = vpop.eup %1310  ;;  %726 = vadd.xlane.f32.xlu0 %v1309_v38  ;;  %v688_v26 = vmul.f32 1.442695, %v666_v60  ;;  %v500_v38 = vld [vmem:[#allocation3] sm:$0xff] }
 0x206   : > { %v1313_v31 = vpop.eup %1312  ;;  %1316 = vpow2.f32 %v680_v46  ;;  %718 = vadd.xlane.f32.xlu2 %v1311_v18  ;;  %v504_v60 = vld [vmem:[#allocation3 + $0x20] sm:$0xff] }
 0x207   : > { %1318 = vpow2.f32 %v690_v16  ;;  %728 = vadd.xlane.f32.xlu1 %v1313_v31  ;;  %v1315_v33 = vpop.eup %1314  ;;  %v2213_v31 = vsub.f32 %v1650_v53, %v1659_v59  ;;  %v2215_v53 = vsub.f32 %v1648_v52, %v1656_v58  ;;  %v2217_v58 = vsub.f32 %v1675_v63, %v1682_v3  ;;  %v505_v63 = vld [vmem:[#allocation3 + $0x28] sm:$0xff] }
 0x208   : > { %1320 = vpow2.f32 %v688_v26 }
 0x209   : > { %v658_v20 = vpop.permute.xlu0 %657  ;;  %1322 = vpow2.f32 %v702_v61  ;;  %v534_v44 = vmul.f32 1.442695, %v2213_v31  ;;  %v542_v59 = vmul.f32 1.442695, %v2215_v53  ;;  %v2216_v61 = vsub.f32 %v1704_v11, %v1711_v15 }
 0x20a   : > { %v653_v14 = vpop.permute.xlu1 %652  ;;  %v675_v22 = vsub.f32 %v1600_v32, %v658_v20 }
 0x20b   : > { %v674_v21 = vsub.f32 %v1586_v28, %v653_v14  ;;  %v2211_v28 = vsub.f32 %v1607_v35, %v1612_v39  ;;  %v512_v35 = vld [vmem:[#allocation3 + $0x60] sm:$0xff] }
 0x20c   : > { %v1317_v19 = vpop.eup %1316  ;;  %v706_v30 = vmul.f32 1.442695, %v675_v22 }
 0x20d   : > { %v1319_v62 = vpop.eup %1318  ;;  %712 = vadd.xlane.f32.xlu0 %v1317_v19  ;;  %v704_v41 = vmul.f32 1.442695, %v674_v21  ;;  %v540_v50 = vmul.f32 1.442695, %v2211_v28 }
 0x20e   : > { %714 = vadd.xlane.f32.xlu2 %v1315_v33  ;;  %v1321_v9 = vpop.eup %1320  ;;  %1324 = vpow2.f32 %v706_v30  ;;  %v2214_v33 = vsub.f32 %v1677_v0, %v1685_v6  ;;  %v508_v30 = vld [vmem:[#allocation3 + $0x40] sm:$0xff]  ;;  %v501_v0 = vld [vmem:[#allocation3 + $0x8] sm:$0xff] }
 0x20f   : > { %722 = vadd.xlane.f32.xlu1 %v1319_v62  ;;  %v1323_v57 = vpop.eup %1322  ;;  %v552_v62 = vmul.f32 1.442695, %v2216_v61  ;;  %v513_v61 = vld [vmem:[#allocation3 + $0x68] sm:$0xff] }
 0x212   : > { %v638_v49 = vpop.permute.xlu1 %637 }
 0x213   : > { %v671_v8 = vsub.f32 %v1591_v29, %v638_v49  ;;  %v2209_v29 = vsub.f32 %v1609_v36, %v1615_v40  ;;  %v2212_v36 = vsub.f32 %v1626_v43, %v1631_v47  ;;  %v550_v43 = vmul.f32 1.442695, %v2214_v33 }
 0x214   : > { %v1325_v10 = vpop.eup %1324 }
 0x215   : > { %v698_v24 = vmul.f32 1.442695, %v671_v8  ;;  %720 = vadd.xlane.f32.xlu0 %v1321_v9  ;;  %v532_v42 = vmul.f32 1.442695, %v2209_v29  ;;  %v548_v40 = vmul.f32 1.442695, %v2212_v36 }
 0x216   : > { %v536_v9 = vmul.f32 1.442695, %v2217_v58  ;;  %v511_v58 = vld [vmem:[#allocation3 + $0x58] sm:$0xff] }
 0x217   : > { %1326 = vpow2.f32 %v698_v24  ;;  %734 = vadd.xlane.f32.xlu1 %v1323_v57  ;;  %v2218_v24 = vsub.f32 %v1734_v54, %v1739_v2 }
 0x218   : > { %1328 = vpow2.f32 %v704_v41 }
 0x219   : > { %1330 = vpow2.f32 %v532_v42  ;;  %v538_v57 = vmul.f32 1.442695, %v2218_v24  ;;  %v510_v42 = vld [vmem:[#allocation3 + $0x50] sm:$0xff] }
 0x21a   : > { %1332 = vpow2.f32 %v556_v27 }
 0x21b   : > { %1334 = vpow2.f32 %v540_v50 }
 0x21c   : > { %1336 = vpow2.f32 %v548_v40  ;;  %v502_v40 = vld [vmem:[#allocation3 + $0x10] sm:$0xff] }
 0x21d   : > { %v1327_v23 = vpop.eup %1326  ;;  %738 = vadd.xlane.f32.xlu0 %v1325_v10  ;;  %1338 = vpow2.f32 %v534_v44  ;;  %v2219_v10 = vsub.f32 %v1755_v17, %v1758_v4  ;;  %v2220_v17 = vsub.f32 %v1706_v12, %v1714_v34  ;;  %v503_v44 = vld [vmem:[#allocation3 + $0x18] sm:$0xff] }
 0x21e   : > { %730 = vadd.xlane.f32.xlu2 %v1327_v23  ;;  %v1329_v32 = vpop.eup %1328  ;;  %1340 = vpow2.f32 %v550_v43  ;;  %v507_v12 = vld [vmem:[#allocation3 + $0x38] sm:$0xff]  ;;  %v2223_v43 = vsub.f32 %v1708_v13, %v1717_v37  ;;  %v2224_v13 = vld [vmem:[#allocation4_spill] sm:$0xff] }
 0x21f   : > { %v1331_v25 = vpop.eup %1330  ;;  %1342 = vpow2.f32 %v542_v59  ;;  %v546_v23 = vmul.f32 1.442695, %v2219_v10  ;;  %v544_v4 = vmul.f32 1.442695, %v2220_v17  ;;  %v506_v59 = vld [vmem:[#allocation3 + $0x30] sm:$0xff]  ;;  %v2225_v37 = vsub.f32 %v1679_v1, %v2224_v13 }
 0x220   : > { %v564_v46 = vmul.f32 %v1331_v25, %v500_v38  ;;  %v1333_v48 = vpop.eup %1332  ;;  %1344 = vpow2.f32 %v552_v62 }
 0x221   : > { %v1335_v39 = vpop.eup %1334  ;;  %v576_v45 = vmul.f32 %v1333_v48, %v512_v35  ;;  %1346 = vpow2.f32 %v536_v9 }
 0x222   : > { %v568_v14 = vmul.f32 %v1335_v39, %v504_v60  ;;  %v1337_v22 = vpop.eup %1336  ;;  %1348 = vpow2.f32 %v538_v57 }
 0x223   : > { %v1339_v49 = vpop.eup %1338  ;;  %v572_v6 = vmul.f32 %v1337_v22, %v508_v30  ;;  %1350 = vpow2.f32 %v546_v23 }
 0x224   : > { %v565_v52 = vmul.f32 %v1339_v49, %v501_v0  ;;  %v1341_v41 = vpop.eup %1340  ;;  %1352 = vpow2.f32 %v544_v4  ;;  %v560_v49 = vmul.f32 1.442695, %v2225_v37 }
 0x225   : > { %v1343_v29 = vpop.eup %1342 }
 0x226   : > { %736 = vadd.xlane.f32.xlu2 %v1329_v32  ;;  %v509_v32 = vld [vmem:[#allocation3 + $0x48] sm:$0xff]  ;;  %v1345_v3 = vpop.eup %1344  ;;  %v569_v2 = vmul.f32 %v1343_v29, %v505_v63 }
 0x227   : > { %v573_v7 = vmul.f32 %v1341_v41, %v509_v32  ;;  %v574_v50 = vmul.f32 %v1345_v3, %v510_v42  ;;  %v514_v41 = vld [vmem:[#allocation3 + $0x70] sm:$0xff] }
 0x260   : > { %v709_v16 = vpop.xlane.xlu2 %708 }
 0x261   : > { %v740_v18 = vadd.f32 %v709_v16, %v564_v46  ;;  %v1347_v16 = vpop.eup %1346 }
 0x262   : > { %v1349_v31 = vpop.eup %1348  ;;  %v566_v34 = vmul.f32 %v1347_v16, %v502_v40 }
 0x263   : > { %757 = vst.msk [vmem:[#allocation3] sm:$0xff] %vm756_vm1, %v740_v18  ;;  %v2221_v18 = vsub.f32 %v1646_v51, %v1653_v55  ;;  %v1351_v48 = vpop.eup %1350  ;;  %v567_v39 = vmul.f32 %v1349_v31, %v503_v44  ;;  %v2222_v51 = vsub.f32 %v1736_v56, %v1742_v5 }
 0x264   : > { %v1353_v53 = vpop.eup %1352 }
 0x265   : > { %v558_v36 = vmul.f32 1.442695, %v2221_v18  ;;  %v562_v55 = vmul.f32 1.442695, %v2222_v51  ;;  %v570_v56 = vmul.f32 %v1353_v53, %v506_v59 }
 0x267   : > { %1354 = vpow2.f32 %v558_v36 }
 0x268   : > { %v733_v26 = vpop.xlane.xlu0 %732  ;;  %1356 = vpow2.f32 %v562_v55 }
 0x269   : > { %v752_v47 = vadd.f32 %v733_v26, %v576_v45  ;;  %v717_v20 = vpop.xlane.xlu1 %716  ;;  %v571_v26 = vmul.f32 %v1351_v48, %v507_v12 }
 0x26a   : > { %v744_v19 = vadd.f32 %v717_v20, %v568_v14 }
 0x26b   : > { %769 = vst.msk [vmem:[#allocation3 + $0x60] sm:$0xff] %vm756_vm1, %v752_v47  ;;  %v554_v47 = vmul.f32 1.442695, %v2223_v43 }
 0x26c   : > { %761 = vst.msk [vmem:[#allocation3 + $0x20] sm:$0xff] %vm756_vm1, %v744_v19 }
 0x26d   : > { %v1355_v19 = vpop.eup %1354  ;;  %1358 = vpow2.f32 %v554_v47 }
 0x26e   : > { %v577_v22 = vmul.f32 %v1355_v19, %v513_v61  ;;  %1360 = vpow2.f32 %v560_v49 }
 0x271   : > { %v725_v8 = vpop.xlane.xlu2 %724 }
 0x272   : > { %v748_v11 = vadd.f32 %v725_v8, %v572_v6  ;;  %v711_v15 = vpop.xlane.xlu1 %710  ;;  %v1357_v6 = vpop.eup %1356  ;;  %v515_v8 = vld [vmem:[#allocation3 + $0x78] sm:$0xff] }
 0x273   : > { %v741_v21 = vadd.f32 %v711_v15, %v565_v52  ;;  %v1359_v52 = vpop.eup %1358  ;;  %v579_v9 = vmul.f32 %v1357_v6, %v515_v8 }
 0x274   : > { %765 = vst.msk [vmem:[#allocation3 + $0x40] sm:$0xff] %vm756_vm1, %v748_v11  ;;  %v575_v15 = vmul.f32 %v1359_v52, %v511_v58  ;;  %v1361_v1 = vpop.eup %1360 }
 0x275   : > { %758 = vst.msk [vmem:[#allocation3 + $0x8] sm:$0xff] %vm756_vm1, %v741_v21  ;;  %v578_v10 = vmul.f32 %v1361_v1, %v514_v41 }
 0x278   : > { %v727_v54 = vpop.xlane.xlu0 %726 }
 0x279   : > { %v749_v27 = vadd.f32 %v727_v54, %v573_v7  ;;  %v719_v28 = vpop.xlane.xlu2 %718 }
 0x27a   : > { %v745_v25 = vadd.f32 %v719_v28, %v569_v2  ;;  %v729_v38 = vpop.xlane.xlu1 %728 }
 0x27b   : > { %766 = vst.msk [vmem:[#allocation3 + $0x48] sm:$0xff] %vm756_vm1, %v749_v27  ;;  %v750_v46 = vadd.f32 %v729_v38, %v574_v50 }
 0x27c   : > { %762 = vst.msk [vmem:[#allocation3 + $0x28] sm:$0xff] %vm756_vm1, %v745_v25 }
 0x27d   : > { %767 = vst.msk [vmem:[#allocation3 + $0x50] sm:$0xff] %vm756_vm1, %v750_v46 }
 0x280   : > { %v713_v35 = vpop.xlane.xlu0 %712 }
 0x281   : > { %v742_v60 = vadd.f32 %v713_v35, %v566_v34  ;;  %v715_v45 = vpop.xlane.xlu2 %714 }
 0x282   : > { %v743_v14 = vadd.f32 %v715_v45, %v567_v39  ;;  %v723_v33 = vpop.xlane.xlu1 %722 }
 0x283   : > { %759 = vst.msk [vmem:[#allocation3 + $0x10] sm:$0xff] %vm756_vm1, %v742_v60  ;;  %v747_v20 = vadd.f32 %v723_v33, %v571_v26 }
 0x284   : > { %760 = vst.msk [vmem:[#allocation3 + $0x18] sm:$0xff] %vm756_vm1, %v743_v14 }
 0x285   : > { %764 = vst.msk [vmem:[#allocation3 + $0x38] sm:$0xff] %vm756_vm1, %v747_v20 }
 0x288   : > { %v721_v5 = vpop.xlane.xlu0 %720 }
 0x289   : > { %v746_v62 = vadd.f32 %v721_v5, %v570_v56 }
 0x28a   : > { %v735_v30 = vpop.xlane.xlu1 %734 }
 0x28b   : > { %763 = vst.msk [vmem:[#allocation3 + $0x30] sm:$0xff] %vm756_vm1, %v746_v62  ;;  %v753_v0 = vadd.f32 %v735_v30, %v577_v22 }
 0x28d   : > { %770 = vst.msk [vmem:[#allocation3 + $0x68] sm:$0xff] %vm756_vm1, %v753_v0 }
 0x290   : > { %v739_v11 = vpop.xlane.xlu0 %738 }
 0x291   : > { %v755_v24 = vadd.f32 %v739_v11, %v579_v9  ;;  %v731_v57 = vpop.xlane.xlu2 %730 }
 0x292   : > { %v751_v21 = vadd.f32 %v731_v57, %v575_v15 }
 0x293   : > { %772 = vst.msk [vmem:[#allocation3 + $0x78] sm:$0xff] %vm756_vm1, %v755_v24 }
 0x294   : > { %768 = vst.msk [vmem:[#allocation3 + $0x58] sm:$0xff] %vm756_vm1, %v751_v21 }
 0x298   : > { %792 = sbr.rel (%p1209_p8) target bundleno = 719 (0x2cf), region = 36 }
 0x299   : > { %v737_v23 = vpop.xlane.xlu2 %736 }
 0x29a   : > { %v754_v32 = vadd.f32 %v737_v23, %v578_v10 }
 0x29c   : > { %771 = vst.msk [vmem:[#allocation3 + $0x70] sm:$0xff] %vm756_vm1, %v754_v32 }
 0x29d   : > { %v793_v29 = vld [vmem:[#allocation2] sm:$0xff]  ;;  %v794_v63 = vld [vmem:[#allocation2 + $0x8] sm:$0xff]  ;;  %v795_v3 = vld [vmem:[#allocation2 + $0x10] sm:$0xff] }
 0x29e   : > { %809 = vst.msk [vmem:[%s1503_s5] sm:$0xff] %vm756_vm1, %v793_v29  ;;  %v796_v42 = vld [vmem:[#allocation2 + $0x18] sm:$0xff]  ;;  %v797_v7 = vld [vmem:[#allocation2 + $0x20] sm:$0xff]  ;;  %v798_v54 = vld [vmem:[#allocation2 + $0x28] sm:$0xff] }
 0x29f   : > { %810 = vst.msk [vmem:[%s1503_s5 + $0x8] sm:$0xff] %vm756_vm1, %v794_v63  ;;  %v799_v2 = vld [vmem:[#allocation2 + $0x30] sm:$0xff]  ;;  %v800_v27 = vld [vmem:[#allocation2 + $0x38] sm:$0xff]  ;;  %v1861_v28 = vld [vmem:[#allocation3] sm:$0xff] }
 0x2a0   : > { %811 = vst.msk [vmem:[%s1503_s5 + $0x10] sm:$0xff] %vm756_vm1, %v795_v3  ;;  %v1863_v50 = vld [vmem:[#allocation3 + $0x8] sm:$0xff]  ;;  %v801_v17 = vld [vmem:[#allocation2 + $0x40] sm:$0xff]  ;;  %1362 = vrsqrt.f32 %v1861_v28  ;;  %v1868_v4 = vld [vmem:[#allocation3 + $0x10] sm:$0xff]  ;;  %vm847_vm2 = vweird.f32 %v1861_v28 }
 0x2a1   : > { %812 = vst.msk [vmem:[%s1503_s5 + $0x18] sm:$0xff] %vm756_vm1, %v796_v42  ;;  %v1870_v25 = vld [vmem:[#allocation3 + $0x18] sm:$0xff]  ;;  %v802_v38 = vld [vmem:[#allocation2 + $0x48] sm:$0xff]  ;;  %1364 = vrsqrt.f32 %v1863_v50  ;;  %v1875_v46 = vld [vmem:[#allocation3 + $0x20] sm:$0xff]  ;;  %vm857_vm3 = vweird.f32 %v1863_v50  ;;  %vm867_vm4 = vweird.f32 %v1868_v4 }
 0x2a2   : > { %813 = vst.msk [vmem:[%s1503_s5 + $0x20] sm:$0xff] %vm756_vm1, %v797_v7  ;;  %v803_v16 = vld [vmem:[#allocation2 + $0x50] sm:$0xff]  ;;  %1366 = vrsqrt.f32 %v1868_v4  ;;  %v1880_v18 = vld [vmem:[#allocation3 + $0x28] sm:$0xff]  ;;  %v804_v36 = vld [vmem:[#allocation2 + $0x58] sm:$0xff]  ;;  %vm877_vm5 = vweird.f32 %v1870_v25  ;;  %vm887_vm6 = vweird.f32 %v1875_v46 }
 0x2a3   : > { %814 = vst.msk [vmem:[%s1503_s5 + $0x28] sm:$0xff] %vm756_vm1, %v798_v54  ;;  %1368 = vrsqrt.f32 %v1870_v25  ;;  %v1885_v40 = vld [vmem:[#allocation3 + $0x30] sm:$0xff]  ;;  %v805_v31 = vld [vmem:[#allocation2 + $0x60] sm:$0xff]  ;;  %v1890_v44 = vld [vmem:[#allocation3 + $0x38] sm:$0xff]  ;;  %vm897_vm9 = vweird.f32 %v1880_v18 }
 0x2a4   : > { %815 = vst.msk [vmem:[%s1503_s5 + $0x30] sm:$0xff] %vm756_vm1, %v799_v2  ;;  %1370 = vrsqrt.f32 %v1875_v46  ;;  %v806_v48 = vld [vmem:[#allocation2 + $0x68] sm:$0xff]  ;;  %v1895_v12 = vld [vmem:[#allocation3 + $0x40] sm:$0xff]  ;;  %v807_v35 = vld [vmem:[#allocation2 + $0x70] sm:$0xff] }
 0x2a5   : > { %816 = vst.msk [vmem:[%s1503_s5 + $0x38] sm:$0xff] %vm756_vm1, %v800_v27  ;;  %1372 = vrsqrt.f32 %v1880_v18  ;;  %v1905_v39 = vld [vmem:[#allocation3 + $0x48] sm:$0xff]  ;;  %v808_v45 = vld [vmem:[#allocation2 + $0x78] sm:$0xff]  ;;  %v1916_v51 = vld [vmem:[#allocation3 + $0x50] sm:$0xff] }
 0x2a6   : > { %817 = vst.msk [vmem:[%s1503_s5 + $0x40] sm:$0xff] %vm756_vm1, %v801_v17  ;;  %v1897_v34 = vpop.eup %1362  ;;  %1374 = vrsqrt.f32 %v1885_v40 }
 0x2a7   : > { %818 = vst.msk [vmem:[%s1503_s5 + $0x48] sm:$0xff] %vm756_vm1, %v802_v38  ;;  %v1907_v60 = vpop.eup %1364  ;;  %v842_v26 = vmul.f32 %v1897_v34, %v1861_v28  ;;  %1376 = vrsqrt.f32 %v1890_v44  ;;  %vm848_vm7 = vweird.f32 %v1897_v34 }
 0x2a8   : > { %819 = vst.msk [vmem:[%s1503_s5 + $0x50] sm:$0xff] %vm756_vm1, %v803_v16  ;;  %v1918_v55 = vpop.eup %1366  ;;  %v852_v14 = vmul.f32 %v1907_v60, %v1863_v50  ;;  %vm858_vm8 = vweird.f32 %v1907_v60  ;;  %1378 = vrsqrt.f32 %v1895_v12  ;;  %vm1971_vm0 = vmor %vm847_vm2, %vm848_vm7  ;;  %vm2238_vm7 = vweird.f32 %v1885_v40 }
 0x2a9   : > { %820 = vst.msk [vmem:[%s1503_s5 + $0x58] sm:$0xff] %vm756_vm1, %v804_v36  ;;  %v1928_v33 = vpop.eup %1368  ;;  %v843_v43 = vmul.f32 %v1897_v34, %v842_v26  ;;  %v862_v47 = vmul.f32 %v1918_v55, %v1868_v4  ;;  %vm868_vm10 = vweird.f32 %v1918_v55  ;;  %1380 = vrsqrt.f32 %v1905_v39  ;;  %vm1984_vm11 = vmor %vm857_vm3, %vm858_vm8 }
 0x2aa   : > { %821 = vst.msk [vmem:[%s1503_s5 + $0x60] sm:$0xff] %vm756_vm1, %v805_v31  ;;  %v1938_v20 = vpop.eup %1370  ;;  %v853_v53 = vmul.f32 %v1907_v60, %v852_v14  ;;  %v872_v59 = vmul.f32 %v1928_v33, %v1870_v25  ;;  %vm878_vm12 = vweird.f32 %v1928_v33  ;;  %1382 = vrsqrt.f32 %v1916_v51  ;;  %vm1996_vm2 = vmor %vm867_vm4, %vm868_vm10 }
 0x2ab   : > { %822 = vst.msk [vmem:[%s1503_s5 + $0x68] sm:$0xff] %vm756_vm1, %v806_v48  ;;  %v1947_v19 = vpop.eup %1372  ;;  %v844_v61 = vmul.f32 0.5, %v843_v43  ;;  %v863_v56 = vmul.f32 %v1918_v55, %v862_v47  ;;  %v882_v5 = vmul.f32 %v1938_v20, %v1875_v46  ;;  %vm888_vm13 = vweird.f32 %v1938_v20  ;;  %vm2010_vm3 = vmor %vm877_vm5, %vm878_vm12  ;;  %v2077_v47 = vld [vmem:[#allocation3 + $0x60] sm:$0xff] }
 0x2ac   : > { %823 = vst.msk [vmem:[%s1503_s5 + $0x70] sm:$0xff] %vm756_vm1, %v807_v35  ;;  %v1953_v62 = vpop.eup %1374  ;;  %v854_v22 = vmul.f32 0.5, %v853_v53  ;;  %v873_v30 = vmul.f32 %v1928_v33, %v872_v59  ;;  %v892_v13 = vmul.f32 %v1947_v19, %v1880_v18  ;;  %vm898_vm14 = vweird.f32 %v1947_v19  ;;  %vm2024_vm4 = vmor %vm887_vm6, %vm888_vm13 }
 0x2ad   : > { %824 = vst.msk [vmem:[%s1503_s5 + $0x78] sm:$0xff] %vm756_vm1, %v808_v45  ;;  %v1960_v37 = vpop.eup %1376  ;;  %v845_v49 = vsub.f32 1.5, %v844_v61  ;;  %v864_v0 = vmul.f32 0.5, %v863_v56  ;;  %v883_v6 = vmul.f32 %v1938_v20, %v882_v5  ;;  %v902_v8 = vmul.f32 %v1953_v62, %v1885_v40  ;;  %vm2039_vm5 = vmor %vm897_vm9, %vm898_vm14  ;;  %v2096_v61 = vld [vmem:[#allocation3 + $0x68] sm:$0xff] }
 0x2ae   : > { %v1965_v52 = vpop.eup %1378  ;;  %v855_v9 = vsub.f32 1.5, %v854_v22  ;;  %v874_v11 = vmul.f32 0.5, %v873_v30  ;;  %v893_v15 = vmul.f32 %v1947_v19, %v892_v13  ;;  %vm908_vm15 = vweird.f32 %v1953_v62  ;;  %v2108_v30 = vld [vmem:[#allocation3 + $0x78] sm:$0xff] }
 0x2af   : > { %v1977_v24 = vpop.eup %1380  ;;  %v846_v57 = vmul.f32 %v1897_v34, %v845_v49  ;;  %v865_v1 = vsub.f32 1.5, %v864_v0  ;;  %v884_v41 = vmul.f32 0.5, %v883_v6  ;;  %v903_v10 = vmul.f32 %v1953_v62, %v902_v8  ;;  %vm2054_vm8 = vmor %vm2238_vm7, %vm908_vm15 }
 0x2b0   : > { %v1989_v23 = vpop.eup %1382  ;;  %v856_v32 = vmul.f32 %v1907_v60, %v855_v9  ;;  %v875_v63 = vsub.f32 1.5, %v874_v11  ;;  %v894_v3 = vmul.f32 0.5, %v893_v15  ;;  %v912_v42 = vmul.f32 %v1960_v37, %v1890_v44 }
 0x2b1   : > { %v850_v7 = vsel %vm1971_vm0, %v1897_v34, %v846_v57  ;;  %v866_v54 = vmul.f32 %v1918_v55, %v865_v1  ;;  %v885_v27 = vsub.f32 1.5, %v884_v41  ;;  %v904_v28 = vmul.f32 0.5, %v903_v10 }
 0x2b2   : > { %1001 = vst.msk [vmem:[%s1508_s8] sm:$0xff] %vm756_vm1, %v850_v7  ;;  %v860_v50 = vsel %vm1984_vm11, %v1907_v60, %v856_v32  ;;  %v876_v17 = vmul.f32 %v1928_v33, %v875_v63  ;;  %v895_v25 = vsub.f32 1.5, %v894_v3  ;;  %v913_v38 = vmul.f32 %v1960_v37, %v912_v42 }
 0x2b3   : > { %1002 = vst.msk [vmem:[%s1508_s8 + $0x8] sm:$0xff] %vm756_vm1, %v860_v50  ;;  %v870_v16 = vsel %vm1996_vm2, %v1918_v55, %v866_v54  ;;  %v886_v36 = vmul.f32 %v1938_v20, %v885_v27  ;;  %v905_v31 = vsub.f32 1.5, %v904_v28  ;;  %vm918_vm6 = vweird.f32 %v1960_v37  ;;  %v2068_v55 = vld [vmem:[#allocation3 + $0x58] sm:$0xff] }
 0x2b4   : > { %1003 = vst.msk [vmem:[%s1508_s8 + $0x10] sm:$0xff] %vm756_vm1, %v870_v16  ;;  %v880_v48 = vsel %vm2010_vm3, %v1928_v33, %v876_v17  ;;  %v896_v34 = vmul.f32 %v1947_v19, %v895_v25  ;;  %v914_v35 = vmul.f32 0.5, %v913_v38  ;;  %v922_v60 = vmul.f32 %v1965_v52, %v1895_v12 }
 0x2b5   : > { %1004 = vst.msk [vmem:[%s1508_s8 + $0x18] sm:$0xff] %vm756_vm1, %v880_v48  ;;  %v890_v45 = vsel %vm2024_vm4, %v1938_v20, %v886_v36  ;;  %v906_v26 = vmul.f32 %v1953_v62, %v905_v31  ;;  %v932_v40 = vmul.f32 %v1977_v24, %v1905_v39  ;;  %vm927_vm9 = vweird.f32 %v1895_v12 }
 0x2b6   : > { %1005 = vst.msk [vmem:[%s1508_s8 + $0x20] sm:$0xff] %vm756_vm1, %v890_v45  ;;  %v900_v14 = vsel %vm2039_vm5, %v1947_v19, %v896_v34  ;;  %v915_v33 = vsub.f32 1.5, %v914_v35  ;;  %v923_v43 = vmul.f32 %v1965_v52, %v922_v60  ;;  %vm2241_vm10 = vweird.f32 %v1890_v44  ;;  %v2103_v44 = vld [vmem:[#allocation3 + $0x70] sm:$0xff] }
 0x2b7   : > { %1006 = vst.msk [vmem:[%s1508_s8 + $0x28] sm:$0xff] %vm756_vm1, %v900_v14  ;;  %v910_v20 = vsel %vm2054_vm8, %v1953_v62, %v906_v26  ;;  %vm2088_vm11 = vmor %vm2241_vm10, %vm918_vm6  ;;  %v933_v59 = vmul.f32 %v1977_v24, %v932_v40  ;;  %vm937_vm12 = vweird.f32 %v1905_v39  ;;  %v942_v19 = vmul.f32 %v1989_v23, %v1916_v51 }
 0x2b8   : > { %1007 = vst.msk [vmem:[%s1508_s8 + $0x30] sm:$0xff] %vm756_vm1, %v910_v20  ;;  %v916_v56 = vmul.f32 %v1960_v37, %v915_v33  ;;  %v924_v5 = vmul.f32 0.5, %v923_v43  ;;  %vm928_vm13 = vweird.f32 %v1965_v52  ;;  %1384 = vrsqrt.f32 %v2068_v55 }
 0x2b9   : > { %v934_v62 = vmul.f32 0.5, %v933_v59  ;;  %vm938_vm14 = vweird.f32 %v1977_v24  ;;  %v943_v22 = vmul.f32 %v1989_v23, %v942_v19  ;;  %1386 = vrsqrt.f32 %v2077_v47  ;;  %vm929_vm0 = vmor %vm927_vm9, %vm928_vm13 }
 0x2ba   : > { %v920_v13 = vsel %vm2088_vm11, %v1960_v37, %v916_v56  ;;  %v925_v49 = vsub.f32 1.5, %v924_v5  ;;  %vm947_vm15 = vweird.f32 %v1916_v51  ;;  %1388 = vrsqrt.f32 %v2096_v61  ;;  %vm939_vm3 = vmor %vm937_vm12, %vm938_vm14 }
 0x2bb   : > { %1008 = vst.msk [vmem:[%s1508_s8 + $0x38] sm:$0xff] %vm756_vm1, %v920_v13  ;;  %v935_v0 = vsub.f32 1.5, %v934_v62  ;;  %v944_v6 = vmul.f32 0.5, %v943_v22  ;;  %vm948_vm2 = vweird.f32 %v1989_v23  ;;  %1390 = vrsqrt.f32 %v2103_v44 }
 0x2bc   : > { %v926_v37 = vmul.f32 %v1965_v52, %v925_v49  ;;  %1392 = vrsqrt.f32 %v2108_v30  ;;  %vm2131_vm4 = vmor %vm947_vm15, %vm948_vm2  ;;  %vm957_vm5 = vweird.f32 %v2068_v55  ;;  %vm967_vm6 = vweird.f32 %v2077_v47 }
 0x2bd   : > { %v936_v8 = vmul.f32 %v1977_v24, %v935_v0  ;;  %v945_v12 = vsub.f32 1.5, %v944_v6  ;;  %vm977_vm7 = vweird.f32 %v2096_v61  ;;  %vm987_vm10 = vweird.f32 %v2103_v44 }
 0x2be   : > { %v1385_v58 = vpop.eup %1384  ;;  %v930_v9 = vsel %vm929_vm0, %v1965_v52, %v926_v37  ;;  %vm997_vm14 = vweird.f32 %v2108_v30 }
 0x2bf   : > { %v1387_v15 = vpop.eup %1386  ;;  %1009 = vst.msk [vmem:[%s1508_s8 + $0x40] sm:$0xff] %vm756_vm1, %v930_v9  ;;  %v940_v39 = vsel %vm939_vm3, %v1977_v24, %v936_v8  ;;  %v946_v57 = vmul.f32 %v1989_v23, %v945_v12  ;;  %v952_v21 = vmul.f32 %v1385_v58, %v2068_v55  ;;  %vm958_vm8 = vweird.f32 %v1385_v58 }
 0x2c0   : > { %v1389_v1 = vpop.eup %1388  ;;  %1010 = vst.msk [vmem:[%s1508_s8 + $0x48] sm:$0xff] %vm756_vm1, %v940_v39  ;;  %v962_v52 = vmul.f32 %v1387_v15, %v2077_v47  ;;  %vm968_vm9 = vweird.f32 %v1387_v15  ;;  %vm2157_vm12 = vmor %vm957_vm5, %vm958_vm8 }
 0x2c1   : > { %v1391_v51 = vpop.eup %1390  ;;  %v950_v41 = vsel %vm2131_vm4, %v1989_v23, %v946_v57  ;;  %v953_v10 = vmul.f32 %v1385_v58, %v952_v21  ;;  %v972_v32 = vmul.f32 %v1389_v1, %v2096_v61  ;;  %vm978_vm11 = vweird.f32 %v1389_v1  ;;  %vm2164_vm15 = vmor %vm967_vm6, %vm968_vm9 }
 0x2c2   : > { %v1393_v24 = vpop.eup %1392  ;;  %1011 = vst.msk [vmem:[%s1508_s8 + $0x50] sm:$0xff] %vm756_vm1, %v950_v41  ;;  %v963_v29 = vmul.f32 %v1387_v15, %v962_v52  ;;  %v982_v63 = vmul.f32 %v1391_v51, %v2103_v44  ;;  %vm988_vm13 = vweird.f32 %v1391_v51  ;;  %vm979_vm2 = vmor %vm977_vm7, %vm978_vm11 }
 0x2c3   : > { %v954_v3 = vmul.f32 0.5, %v953_v10  ;;  %v973_v42 = vmul.f32 %v1389_v1, %v972_v32  ;;  %v992_v23 = vmul.f32 %v1393_v24, %v2108_v30  ;;  %vm998_vm0 = vweird.f32 %v1393_v24  ;;  %vm989_vm3 = vmor %vm987_vm10, %vm988_vm13 }
 0x2c4   : > { %v964_v7 = vmul.f32 0.5, %v963_v29  ;;  %v983_v54 = vmul.f32 %v1391_v51, %v982_v63  ;;  %vm999_vm4 = vmor %vm997_vm14, %vm998_vm0 }
 0x2c5   : > { %v955_v2 = vsub.f32 1.5, %v954_v3  ;;  %v974_v27 = vmul.f32 0.5, %v973_v42  ;;  %v993_v28 = vmul.f32 %v1393_v24, %v992_v23 }
 0x2c6   : > { %v965_v17 = vsub.f32 1.5, %v964_v7  ;;  %v984_v4 = vmul.f32 0.5, %v983_v54 }
 0x2c7   : > { %v956_v25 = vmul.f32 %v1385_v58, %v955_v2  ;;  %v975_v16 = vsub.f32 1.5, %v974_v27  ;;  %v994_v36 = vmul.f32 0.5, %v993_v28 }
 0x2c8   : > { %v966_v46 = vmul.f32 %v1387_v15, %v965_v17  ;;  %v985_v31 = vsub.f32 1.5, %v984_v4 }
 0x2c9   : > { %v960_v48 = vsel %vm2157_vm12, %v1385_v58, %v956_v25  ;;  %v976_v34 = vmul.f32 %v1389_v1, %v975_v16  ;;  %v995_v18 = vsub.f32 1.5, %v994_v36 }
 0x2ca   : > { %1012 = vst.msk [vmem:[%s1508_s8 + $0x58] sm:$0xff] %vm756_vm1, %v960_v48  ;;  %v970_v35 = vsel %vm2164_vm15, %v1387_v15, %v966_v46  ;;  %v986_v60 = vmul.f32 %v1391_v51, %v985_v31 }
 0x2cb   : > { %1013 = vst.msk [vmem:[%s1508_s8 + $0x60] sm:$0xff] %vm756_vm1, %v970_v35  ;;  %v980_v45 = vsel %vm979_vm2, %v1389_v1, %v976_v34  ;;  %v996_v26 = vmul.f32 %v1393_v24, %v995_v18 }
 0x2cc   : > { %1014 = vst.msk [vmem:[%s1508_s8 + $0x68] sm:$0xff] %vm756_vm1, %v980_v45  ;;  %v990_v40 = vsel %vm989_vm3, %v1391_v51, %v986_v60 }
 0x2cd   : > { %1015 = vst.msk [vmem:[%s1508_s8 + $0x70] sm:$0xff] %vm756_vm1, %v990_v40  ;;  %v1000_v55 = vsel %vm999_vm4, %v1393_v24, %v996_v26 }
 0x2ce   : > { %1016 = vst.msk [vmem:[%s1508_s8 + $0x78] sm:$0xff] %vm756_vm1, %v1000_v55 }
 0x2cf PF: > { %s14_s16 = sadd.s32 1, %s1432_s16   ;;  %s2250_s12 = smov %s1424_s14 }
 0x2d0   : > { %p11_p9 = scmp.ge.s32.totalorder %s14_s16, 6   ;;  %s2251_s13 = smov %s1428_s15 }
 0x2d1   : > { %s2252_s14 = smov %s2255_s17  ;;  %s2253_s15 = smov %s2259_s18 }
 0x2d2   :  { %13 = sbr.rel (!%p11_p9) target bundleno = 3 (0x3), region = 81 }

// kernel: noise_filter_forward.4
= control target key start
LH: loop header
LB: loop body
LE: loop exit
PB: predicated region body
PF: predicated region fallthrough
CT: control target
= control target key end

     0   :  { %s1525_s18 = smov 0   ;;  %s1848_s0 = inlined_call_operand.vmem [shape: f32[256,32], index: 0, kind: input, shape index: {}]   ;;  %s1849_s1 = inlined_call_operand.vmem [shape: bf16[32,512], index: 1, kind: input, shape index: {}]   ;;  %s1850_s2 = inlined_call_operand.vmem [shape: f32[1,512], index: 2, kind: input, shape index: {}]   ;;  %s1851_s3 = inlined_call_operand.vmem [shape: bf16[512,128], index: 3, kind: input, shape index: {}]   ;;  %s1852_s4 = inlined_call_operand.vmem [shape: f32[1,128], index: 4, kind: input, shape index: {}]   ;;  %s1853_s5 = inlined_call_operand.vmem [shape: bf16[256,128], index: 5, kind: output, shape index: {}]  }
   0x1 LB: > { %s1188_s19 = sadd.s32 4294967295, %s1493_s18   ;;  %p1192_p0 = scmp.ge.s32.totalorder %s1493_s18, 1  ;;  %s1493_s18 = sphi %s1525_s18, %s15_s18  }
   0x2   : > { %p188_p1 = scmp.lt.s32.totalorder %s1493_s18, 3 }
   0x4   : > { %p189_p2 = pnand %p1192_p0, %p188_p1 }
   0x5   : > { %s1193_s29 = sshll.u32 (!%p189_p2), %s1188_s19, 4 }
   0x6   : > { %192 = sbr.rel (%p189_p2) target bundleno = 432 (0x1b0), region = 40  ;;  %p217_p3 = scmp.lt.s32.totalorder (!%p189_p2), %s1193_s29, 31 }
   0xb   : > { %v1215_v0 = vld [vmem:[%s1849_s1 + $0x20] sm:$0xf]  ;;  %v1397_v1 = vld [vmem:[%s1849_s1 + $0x2c] sm:$0xf0]  ;;  %v1395_v2 = vld [vmem:[%s1849_s1 + $0x24] sm:$0xf] }
   0xc   : > { %v1216_v3 = vor.u32 %v1397_v1, %v1215_v0  ;;  %v1217_v4 = vld [vmem:[%s1849_s1 + $0x30] sm:$0xf0]  ;;  %v1223_v5 = vld [vmem:[%s1849_s1 + $0x28] sm:$0xf]  ;;  %v1398_v6 = vld [vmem:[%s1849_s1 + $0x34] sm:$0xf0] }
   0xd   : > { %v1220_v7 = vor.u32 %v1395_v2, %v1217_v4  ;;  %v1224_v8 = vor.u32 %v1398_v6, %v1223_v5  ;;  %v1396_v9 = vld [vmem:[%s1849_s1 + $0x2c] sm:$0xf]  ;;  %v1225_v10 = vld [vmem:[%s1849_s1 + $0x38] sm:$0xf0]  ;;  %v1199_v11 = vld [vmem:[%s1849_s1] sm:$0xf] }
   0xe   : > { %342 = vmatpush.bf16.msra.mxu0 %v1216_v3  ;;  %v1228_v12 = vor.u32 %v1396_v9, %v1225_v10  ;;  %v1393_v13 = vld [vmem:[%s1849_s1 + $0xc] sm:$0xf0]  ;;  %v1391_v14 = vld [vmem:[%s1849_s1 + $0x4] sm:$0xf]  ;;  %v1201_v15 = vld [vmem:[%s1849_s1 + $0x10] sm:$0xf0] }
   0xf   : > { %391 = vmatpush.bf16.msra.mxu1 %v1220_v7  ;;  %440 = vmatpush.bf16.msra.mxu2 %v1224_v8  ;;  %v1200_v16 = vor.u32 %v1393_v13, %v1199_v11  ;;  %v1204_v17 = vor.u32 %v1391_v14, %v1201_v15  ;;  %v1207_v18 = vld [vmem:[%s1849_s1 + $0x8] sm:$0xf]  ;;  %v1394_v19 = vld [vmem:[%s1849_s1 + $0x14] sm:$0xf0]  ;;  %v1392_v20 = vld [vmem:[%s1849_s1 + $0xc] sm:$0xf] }
  0x10   : > { %489 = vmatpush.bf16.msra.mxu3 %v1228_v12  ;;  %v1208_v21 = vor.u32 %v1394_v19, %v1207_v18  ;;  %v1209_v22 = vld [vmem:[%s1849_s1 + $0x18] sm:$0xf0]  ;;  %s1855_s29 = smov (!%p217_p3, %s1193_s29), 31  ;;  %vm311_vm0 = vcmask 261120   ;;  %v1421_v31 = vld [vmem:[%s1851_s3 + $0xb0] sm:$0xff]  ;;  %v1420_v38 = vld [vmem:[%s1851_s3 + $0xa8] sm:$0xff] }
  0x11   : > { %v1422_v23 = vld [vmem:[%s1851_s3 + $0xb8] sm:$0xff]  ;;  %v1212_v24 = vor.u32 %v1392_v20, %v1209_v22  ;;  %s1194_s19 = sshll.u32 %s1855_s29, 3  ;;  %v1405_v32 = vld [vmem:[%s1851_s3 + $0x30] sm:$0xff]  ;;  %v1404_v39 = vld [vmem:[%s1851_s3 + $0x28] sm:$0xff]  ;;  %s1196_s9 = sshll.u32 %s1855_s29, 2 }
  0x12   : > { %v1406_v25 = vld [vmem:[%s1851_s3 + $0x38] sm:$0xff]  ;;  %343 = vmatpush.bf16.msra.mxu0 %v1200_v16  ;;  %s1601_s15 = scalar_lea.vmem %s1848_s0, %s1194_s19  ;;  %v1429_v33 = vld [vmem:[%s1851_s3 + $0xf0] sm:$0xff]  ;;  %v1428_v40 = vld [vmem:[%s1851_s3 + $0xe8] sm:$0xff]  ;;  %s1821_s12 = scalar_lea.vmem %s1853_s5, %s1196_s9 }
  0x13   : > { %v1430_v26 = vld [vmem:[%s1851_s3 + $0xf8] sm:$0xff]  ;;  %392 = vmatpush.bf16.msra.mxu1 %v1204_v17  ;;  %441 = vmatpush.bf16.msra.mxu2 %v1208_v21  ;;  %v229_v28 = vld [vmem:[%s1601_s15] sm:$0xff]  ;;  %v230_v29 = vld [vmem:[%s1601_s15 + $0x8] sm:$0xff] }
  0x14   : > { %v1414_v27 = vld [vmem:[%s1851_s3 + $0x78] sm:$0xff]  ;;  %490 = vmatpush.bf16.msra.mxu3 %v1212_v24  ;;  %v245_v30 = vpack.c.bf16 %v230_v29, %v229_v28  ;;  %v1413_v34 = vld [vmem:[%s1851_s3 + $0x70] sm:$0xff]  ;;  %v1412_v41 = vld [vmem:[%s1851_s3 + $0x68] sm:$0xff] }
  0x15   : > { %v231_v35 = vld [vmem:[%s1601_s15 + $0x10] sm:$0xff]  ;;  %v232_v36 = vld [vmem:[%s1601_s15 + $0x18] sm:$0xff]  ;;  %v233_v42 = vld [vmem:[%s1601_s15 + $0x20] sm:$0xff] }
  0x16   : > { %888 = vmatpush.bf16.msrb.mxu0 %v1406_v25  ;;  %1237 = vmatmul.msk.bf16.vlgmr.msra.gmra.mxu1 %vm311_vm0, %v245_v30  ;;  %v246_v37 = vpack.c.bf16 %v232_v36, %v231_v35  ;;  %v234_v43 = vld [vmem:[%s1601_s15 + $0x28] sm:$0xff]  ;;  %v1419_v45 = vld [vmem:[%s1851_s3 + $0xa0] sm:$0xff]  ;;  %v235_v49 = vld [vmem:[%s1601_s15 + $0x30] sm:$0xff] }
  0x17   : > { %986 = vmatpush.bf16.msrb.mxu2 %v1422_v23  ;;  %937 = vmatpush.bf16.msrb.mxu1 %v1414_v27  ;;  %v247_v44 = vpack.c.bf16 %v234_v43, %v233_v42  ;;  %v1403_v46 = vld [vmem:[%s1851_s3 + $0x20] sm:$0xff]  ;;  %v236_v50 = vld [vmem:[%s1601_s15 + $0x38] sm:$0xff]  ;;  %v238_v57 = vld [vmem:[%s1601_s15 + $0x48] sm:$0xff] }
  0x18   : > { %1035 = vmatpush.bf16.msrb.mxu3 %v1430_v26  ;;  %1229 = vmatmul.msk.bf16.vlgmr.msra.gmra.mxu0 %vm311_vm0, %v245_v30  ;;  %v1427_v47 = vld [vmem:[%s1851_s3 + $0xe0] sm:$0xff]  ;;  %v248_v51 = vpack.c.bf16 %v236_v50, %v235_v49  ;;  %v1418_v52 = vld [vmem:[%s1851_s3 + $0x98] sm:$0xff]  ;;  %v1417_v59 = vld [vmem:[%s1851_s3 + $0x90] sm:$0xff] }
  0x19   : > { %1245 = vmatmul.msk.bf16.vlgmr.msra.gmra.mxu2 %vm311_vm0, %v245_v30  ;;  %1253 = vmatmul.msk.bf16.vlgmr.msra.gmra.mxu3 %vm311_vm0, %v245_v30  ;;  %v1411_v48 = vld [vmem:[%s1851_s3 + $0x60] sm:$0xff]  ;;  %v1402_v53 = vld [vmem:[%s1851_s3 + $0x18] sm:$0xff]  ;;  %v1401_v60 = vld [vmem:[%s1851_s3 + $0x10] sm:$0xff] }
  0x1a   : > { %889 = vmatpush.bf16.msrb.mxu0 %v1405_v32  ;;  %v1426_v54 = vld [vmem:[%s1851_s3 + $0xd8] sm:$0xff]  ;;  %v237_v56 = vld [vmem:[%s1601_s15 + $0x40] sm:$0xff]  ;;  %v1425_v61 = vld [vmem:[%s1851_s3 + $0xd0] sm:$0xff] }
  0x1b   : > { %987 = vmatpush.bf16.msrb.mxu2 %v1421_v31  ;;  %938 = vmatpush.bf16.msrb.mxu1 %v1413_v34  ;;  %v1410_v55 = vld [vmem:[%s1851_s3 + $0x58] sm:$0xff]  ;;  %v249_v58 = vpack.c.bf16 %v238_v57, %v237_v56  ;;  %v1409_v62 = vld [vmem:[%s1851_s3 + $0x50] sm:$0xff]  ;;  %v1416_v2 = vld [vmem:[%s1851_s3 + $0x88] sm:$0xff] }
  0x1c   : > { %1036 = vmatpush.bf16.msrb.mxu3 %v1429_v33  ;;  %v239_v63 = vld [vmem:[%s1601_s15 + $0x50] sm:$0xff]  ;;  %v240_v0 = vld [vmem:[%s1601_s15 + $0x58] sm:$0xff]  ;;  %v1400_v3 = vld [vmem:[%s1851_s3 + $0x8] sm:$0xff] }
  0x1d   : > { %v250_v1 = vpack.c.bf16 %v240_v0, %v239_v63  ;;  %v1424_v4 = vld [vmem:[%s1851_s3 + $0xc8] sm:$0xff]  ;;  %v241_v6 = vld [vmem:[%s1601_s15 + $0x60] sm:$0xff]  ;;  %v243_v13 = vld [vmem:[%s1601_s15 + $0x70] sm:$0xff] }
  0x1e   : > { %890 = vmatpush.bf16.msrb.mxu0 %v1404_v39  ;;  %v1408_v5 = vld [vmem:[%s1851_s3 + $0x48] sm:$0xff]  ;;  %v1415_v9 = vld [vmem:[%s1851_s3 + $0x80] sm:$0xff]  ;;  %v244_v14 = vld [vmem:[%s1601_s15 + $0x78] sm:$0xff] }
  0x1f   : > { %988 = vmatpush.bf16.msrb.mxu2 %v1420_v38  ;;  %939 = vmatpush.bf16.msrb.mxu1 %v1412_v41  ;;  %v242_v7 = vld [vmem:[%s1601_s15 + $0x68] sm:$0xff]  ;;  %v1399_v10 = vld [vmem:[%s1851_s3] sm:$0xff]  ;;  %v252_v15 = vpack.c.bf16 %v244_v14, %v243_v13 }
  0x20   : > { %1037 = vmatpush.bf16.msrb.mxu3 %v1428_v40  ;;  %v251_v8 = vpack.c.bf16 %v242_v7, %v241_v6  ;;  %v1423_v11 = vld [vmem:[%s1851_s3 + $0xc0] sm:$0xff] }
  0x21   : > { %v1407_v12 = vld [vmem:[%s1851_s3 + $0x40] sm:$0xff] }
  0x22   : > { %891 = vmatpush.bf16.msrb.mxu0 %v1403_v46  ;;  %v261_v16 = vld [vmem:[%s1850_s2] sm:$0xf] }
  0x23   : > { %989 = vmatpush.bf16.msrb.mxu2 %v1419_v45  ;;  %940 = vmatpush.bf16.msrb.mxu1 %v1411_v48  ;;  %v1738_v19 = vperm.slane %v261_v16, 0  ;;  %v1740_v20 = vperm.slane %v261_v16, 1  ;;  %v1746_v31 = vperm.slane %v261_v16, 2  ;;  %v1748_v32 = vperm.slane %v261_v16, 3 }
  0x24   : > { %1038 = vmatpush.bf16.msrb.mxu3 %v1427_v47 }
  0x26   : > { %1238 = vmatmul.msk.bf16.gmra.mxu1 %vm311_vm0, %v246_v37  ;;  %892 = vmatpush.bf16.msrb.mxu0 %v1402_v53 }
  0x27   : > { %990 = vmatpush.bf16.msrb.mxu2 %v1418_v52  ;;  %941 = vmatpush.bf16.msrb.mxu1 %v1410_v55 }
  0x28   : > { %1230 = vmatmul.msk.bf16.gmra.mxu0 %vm311_vm0, %v246_v37  ;;  %1039 = vmatpush.bf16.msrb.mxu3 %v1426_v54 }
  0x29   : > { %1246 = vmatmul.msk.bf16.gmra.mxu2 %vm311_vm0, %v246_v37  ;;  %1254 = vmatmul.msk.bf16.gmra.mxu3 %vm311_vm0, %v246_v37 }
  0x2a   : > { %893 = vmatpush.bf16.msrb.mxu0 %v1401_v60 }
  0x2b   : > { %991 = vmatpush.bf16.msrb.mxu2 %v1417_v59  ;;  %942 = vmatpush.bf16.msrb.mxu1 %v1409_v62 }
  0x2c   : > { %1040 = vmatpush.bf16.msrb.mxu3 %v1425_v61 }
  0x2e   : > { %894 = vmatpush.bf16.msrb.mxu0 %v1400_v3 }
  0x2f   : > { %992 = vmatpush.bf16.msrb.mxu2 %v1416_v2  ;;  %943 = vmatpush.bf16.msrb.mxu1 %v1408_v5 }
  0x30   : > { %1041 = vmatpush.bf16.msrb.mxu3 %v1424_v4 }
  0x32   : > { %895 = vmatpush.bf16.msrb.mxu0 %v1399_v10 }
  0x33   : > { %993 = vmatpush.bf16.msrb.mxu2 %v1415_v9  ;;  %944 = vmatpush.bf16.msrb.mxu1 %v1407_v12 }
  0x34   : > { %1042 = vmatpush.bf16.msrb.mxu3 %v1423_v11 }
  0x36   : > { %1239 = vmatmul.msk.bf16.gmra.mxu1 %vm311_vm0, %v247_v44 }
  0x38   : > { %1231 = vmatmul.msk.bf16.gmra.mxu0 %vm311_vm0, %v247_v44 }
  0x39   : > { %1247 = vmatmul.msk.bf16.gmra.mxu2 %vm311_vm0, %v247_v44  ;;  %1255 = vmatmul.msk.bf16.gmra.mxu3 %vm311_vm0, %v247_v44 }
  0x46   : > { %1240 = vmatmul.msk.bf16.gmra.mxu1 %vm311_vm0, %v248_v51 }
  0x48   : > { %1232 = vmatmul.msk.bf16.gmra.mxu0 %vm311_vm0, %v248_v51 }
  0x49   : > { %1248 = vmatmul.msk.bf16.gmra.mxu2 %vm311_vm0, %v248_v51  ;;  %1256 = vmatmul.msk.bf16.gmra.mxu3 %vm311_vm0, %v248_v51 }
  0x56   : > { %1241 = vmatmul.msk.bf16.gmra.mxu1 %vm311_vm0, %v249_v58 }
  0x58   : > { %1233 = vmatmul.msk.bf16.gmra.mxu0 %vm311_vm0, %v249_v58 }
  0x59   : > { %1249 = vmatmul.msk.bf16.gmra.mxu2 %vm311_vm0, %v249_v58  ;;  %1257 = vmatmul.msk.bf16.gmra.mxu3 %vm311_vm0, %v249_v58 }
  0x66   : > { %1242 = vmatmul.msk.bf16.gmra.mxu1 %vm311_vm0, %v250_v1 }
  0x68   : > { %1234 = vmatmul.msk.bf16.gmra.mxu0 %vm311_vm0, %v250_v1 }
  0x69   : > { %1250 = vmatmul.msk.bf16.gmra.mxu2 %vm311_vm0, %v250_v1  ;;  %1258 = vmatmul.msk.bf16.gmra.mxu3 %vm311_vm0, %v250_v1 }
  0x76   : > { %1243 = vmatmul.msk.bf16.gmra.mxu1 %vm311_vm0, %v251_v8 }
  0x78   : > { %1235 = vmatmul.msk.bf16.gmra.mxu0 %vm311_vm0, %v251_v8 }
  0x79   : > { %1251 = vmatmul.msk.bf16.gmra.mxu2 %vm311_vm0, %v251_v8  ;;  %1259 = vmatmul.msk.bf16.gmra.mxu3 %vm311_vm0, %v251_v8 }
  0x86   : > { %1244 = vmatmul.msk.bf16.gmra.mxu1 %vm311_vm0, %v252_v15 }
  0x88   : > { %1236 = vmatmul.msk.bf16.gmra.mxu0 %vm311_vm0, %v252_v15 }
  0x89   : > { %1252 = vmatmul.msk.bf16.gmra.mxu2 %vm311_vm0, %v252_v15  ;;  %1260 = vmatmul.msk.bf16.gmra.mxu3 %vm311_vm0, %v252_v15 }
  0x93   : > { %v394_v18 = vpop.f32.mrf.mxu1 }
  0x94   : > { %v395_v22 = vadd.f32 %v394_v18, %v1740_v20 }
  0x95   : > { %v345_v17 = vpop.f32.mrf.mxu0 }
  0x96   : > { %v346_v21 = vadd.f32 %v345_v17, %v1738_v19  ;;  %v533_v28 = vmax.f32 %v395_v22, 0.0 }
  0x98   : > { %v532_v27 = vmax.f32 %v346_v21, 0.0 }
  0x9b   : > { %v396_v26 = vpop.f32.mrf.mxu1 }
  0x9c   : > { %v443_v23 = vpop.f32.mrf.mxu2  ;;  %v492_v24 = vpop.f32.mrf.mxu3  ;;  %v397_v30 = vadd.f32 %v396_v26, %v1740_v20 }
  0x9d   : > { %v347_v25 = vpop.f32.mrf.mxu0  ;;  %v444_v37 = vadd.f32 %v443_v23, %v1746_v31  ;;  %v493_v38 = vadd.f32 %v492_v24, %v1748_v32 }
  0x9e   : > { %v348_v29 = vadd.f32 %v347_v25, %v1738_v19  ;;  %v537_v34 = vmax.f32 %v397_v30, 0.0 }
  0x9f   : > { %v534_v45 = vmax.f32 %v444_v37, 0.0  ;;  %v535_v46 = vmax.f32 %v493_v38, 0.0 }
  0xa0   : > { %v536_v33 = vmax.f32 %v348_v29, 0.0  ;;  %v597_v36 = vpack.c.bf16 %v537_v34, %v533_v28 }
  0xa2   : > { %v596_v35 = vpack.c.bf16 %v536_v33, %v532_v27  ;;  %945 = vmatmul.bf16.vlgmr.msrb.gmra.mxu1 %v597_v36 }
  0xa3   : > { %v399_v44 = vpop.f32.mrf.mxu1 }
  0xa4   : > { %v445_v39 = vpop.f32.mrf.mxu2  ;;  %v494_v40 = vpop.f32.mrf.mxu3  ;;  %896 = vmatmul.bf16.vlgmr.msrb.gmra.mxu0 %v596_v35  ;;  %v400_v52 = vadd.f32 %v399_v44, %v1740_v20 }
  0xa5   : > { %v446_v41 = vadd.f32 %v445_v39, %v1746_v31  ;;  %v495_v42 = vadd.f32 %v494_v40, %v1748_v32  ;;  %v350_v43 = vpop.f32.mrf.mxu0 }
  0xa6   : > { %v351_v51 = vadd.f32 %v350_v43, %v1738_v19  ;;  %v541_v58 = vmax.f32 %v400_v52, 0.0 }
  0xa7   : > { %v538_v47 = vmax.f32 %v446_v41, 0.0  ;;  %v539_v48 = vmax.f32 %v495_v42, 0.0 }
  0xa8   : > { %v540_v57 = vmax.f32 %v351_v51, 0.0 }
  0xa9   : > { %v598_v49 = vpack.c.bf16 %v538_v47, %v534_v45  ;;  %v599_v50 = vpack.c.bf16 %v539_v48, %v535_v46 }
  0xab   : > { %994 = vmatmul.bf16.vlgmr.msrb.gmra.mxu2 %v598_v49  ;;  %1043 = vmatmul.bf16.vlgmr.msrb.gmra.mxu3 %v599_v50  ;;  %v401_v56 = vpop.f32.mrf.mxu1 }
  0xac   : > { %v448_v53 = vpop.f32.mrf.mxu2  ;;  %v497_v54 = vpop.f32.mrf.mxu3  ;;  %v402_v60 = vadd.f32 %v401_v56, %v1740_v20 }
  0xad   : > { %v352_v55 = vpop.f32.mrf.mxu0  ;;  %v449_v1 = vadd.f32 %v448_v53, %v1746_v31  ;;  %v498_v2 = vadd.f32 %v497_v54, %v1748_v32 }
  0xae   : > { %v353_v59 = vadd.f32 %v352_v55, %v1738_v19  ;;  %v545_v62 = vmax.f32 %v402_v60, 0.0 }
  0xaf   : > { %v542_v9 = vmax.f32 %v449_v1, 0.0  ;;  %v543_v10 = vmax.f32 %v498_v2, 0.0 }
  0xb0   : > { %v544_v61 = vmax.f32 %v353_v59, 0.0  ;;  %v601_v0 = vpack.c.bf16 %v545_v62, %v541_v58 }
  0xb2   : > { %v600_v63 = vpack.c.bf16 %v544_v61, %v540_v57  ;;  %950 = vmatmul.bf16.gmra.mxu1 %v601_v0 }
  0xb3   : > { %v404_v8 = vpop.f32.mrf.mxu1 }
  0xb4   : > { %v450_v3 = vpop.f32.mrf.mxu2  ;;  %v499_v4 = vpop.f32.mrf.mxu3  ;;  %901 = vmatmul.bf16.gmra.mxu0 %v600_v63  ;;  %v405_v16 = vadd.f32 %v404_v8, %v1740_v20 }
  0xb5   : > { %v451_v5 = vadd.f32 %v450_v3, %v1746_v31  ;;  %v500_v6 = vadd.f32 %v499_v4, %v1748_v32  ;;  %v355_v7 = vpop.f32.mrf.mxu0 }
  0xb6   : > { %v356_v15 = vadd.f32 %v355_v7, %v1738_v19  ;;  %v549_v24 = vmax.f32 %v405_v16, 0.0 }
  0xb7   : > { %v546_v11 = vmax.f32 %v451_v5, 0.0  ;;  %v547_v12 = vmax.f32 %v500_v6, 0.0 }
  0xb8   : > { %v548_v23 = vmax.f32 %v356_v15, 0.0 }
  0xb9   : > { %v602_v13 = vpack.c.bf16 %v546_v11, %v542_v9  ;;  %v603_v14 = vpack.c.bf16 %v547_v12, %v543_v10 }
  0xbb   : > { %999 = vmatmul.bf16.gmra.mxu2 %v602_v13  ;;  %1048 = vmatmul.bf16.gmra.mxu3 %v603_v14  ;;  %v406_v22 = vpop.f32.mrf.mxu1 }
  0xbc   : > { %v453_v17 = vpop.f32.mrf.mxu2  ;;  %v502_v18 = vpop.f32.mrf.mxu3  ;;  %v407_v26 = vadd.f32 %v406_v22, %v1740_v20 }
  0xbd   : > { %v357_v21 = vpop.f32.mrf.mxu0  ;;  %v454_v33 = vadd.f32 %v453_v17, %v1746_v31  ;;  %v503_v34 = vadd.f32 %v502_v18, %v1748_v32 }
  0xbe   : > { %v358_v25 = vadd.f32 %v357_v21, %v1738_v19  ;;  %v553_v28 = vmax.f32 %v407_v26, 0.0 }
  0xbf   : > { %v550_v41 = vmax.f32 %v454_v33, 0.0  ;;  %v551_v42 = vmax.f32 %v503_v34, 0.0 }
  0xc0   : > { %v552_v27 = vmax.f32 %v358_v25, 0.0  ;;  %v605_v30 = vpack.c.bf16 %v553_v28, %v549_v24 }
  0xc2   : > { %v604_v29 = vpack.c.bf16 %v552_v27, %v548_v23  ;;  %955 = vmatmul.bf16.gmra.mxu1 %v605_v30 }
  0xc3   : > { %v409_v40 = vpop.f32.mrf.mxu1 }
  0xc4   : > { %v455_v35 = vpop.f32.mrf.mxu2  ;;  %v504_v36 = vpop.f32.mrf.mxu3  ;;  %906 = vmatmul.bf16.gmra.mxu0 %v604_v29  ;;  %v410_v48 = vadd.f32 %v409_v40, %v1740_v20 }
  0xc5   : > { %v456_v37 = vadd.f32 %v455_v35, %v1746_v31  ;;  %v505_v38 = vadd.f32 %v504_v36, %v1748_v32  ;;  %v360_v39 = vpop.f32.mrf.mxu0 }
  0xc6   : > { %v361_v47 = vadd.f32 %v360_v39, %v1738_v19  ;;  %v557_v54 = vmax.f32 %v410_v48, 0.0 }
  0xc7   : > { %v554_v43 = vmax.f32 %v456_v37, 0.0  ;;  %v555_v44 = vmax.f32 %v505_v38, 0.0 }
  0xc8   : > { %v556_v53 = vmax.f32 %v361_v47, 0.0 }
  0xc9   : > { %v606_v45 = vpack.c.bf16 %v554_v43, %v550_v41  ;;  %v607_v46 = vpack.c.bf16 %v555_v44, %v551_v42 }
  0xcb   : > { %1004 = vmatmul.bf16.gmra.mxu2 %v606_v45  ;;  %1053 = vmatmul.bf16.gmra.mxu3 %v607_v46  ;;  %v411_v52 = vpop.f32.mrf.mxu1 }
  0xcc   : > { %v458_v49 = vpop.f32.mrf.mxu2  ;;  %v507_v50 = vpop.f32.mrf.mxu3  ;;  %v412_v56 = vadd.f32 %v411_v52, %v1740_v20 }
  0xcd   : > { %v362_v51 = vpop.f32.mrf.mxu0  ;;  %v459_v61 = vadd.f32 %v458_v49, %v1746_v31  ;;  %v508_v62 = vadd.f32 %v507_v50, %v1748_v32 }
  0xce   : > { %v363_v55 = vadd.f32 %v362_v51, %v1738_v19  ;;  %v561_v58 = vmax.f32 %v412_v56, 0.0 }
  0xcf   : > { %v558_v5 = vmax.f32 %v459_v61, 0.0  ;;  %v559_v6 = vmax.f32 %v508_v62, 0.0 }
  0xd0   : > { %v560_v57 = vmax.f32 %v363_v55, 0.0  ;;  %v609_v60 = vpack.c.bf16 %v561_v58, %v557_v54 }
  0xd2   : > { %v608_v59 = vpack.c.bf16 %v560_v57, %v556_v53  ;;  %960 = vmatmul.bf16.gmra.mxu1 %v609_v60 }
  0xd3   : > { %v414_v4 = vpop.f32.mrf.mxu1 }
  0xd4   : > { %v460_v63 = vpop.f32.mrf.mxu2  ;;  %v509_v0 = vpop.f32.mrf.mxu3  ;;  %911 = vmatmul.bf16.gmra.mxu0 %v608_v59  ;;  %v415_v12 = vadd.f32 %v414_v4, %v1740_v20 }
  0xd5   : > { %v461_v1 = vadd.f32 %v460_v63, %v1746_v31  ;;  %v510_v2 = vadd.f32 %v509_v0, %v1748_v32  ;;  %v365_v3 = vpop.f32.mrf.mxu0 }
  0xd6   : > { %v366_v11 = vadd.f32 %v365_v3, %v1738_v19  ;;  %v565_v18 = vmax.f32 %v415_v12, 0.0 }
  0xd7   : > { %v562_v7 = vmax.f32 %v461_v1, 0.0  ;;  %v563_v8 = vmax.f32 %v510_v2, 0.0 }
  0xd8   : > { %v564_v17 = vmax.f32 %v366_v11, 0.0 }
  0xd9   : > { %v610_v9 = vpack.c.bf16 %v562_v7, %v558_v5  ;;  %v611_v10 = vpack.c.bf16 %v563_v8, %v559_v6 }
  0xdb   : > { %1009 = vmatmul.bf16.gmra.mxu2 %v610_v9  ;;  %1058 = vmatmul.bf16.gmra.mxu3 %v611_v10  ;;  %v416_v16 = vpop.f32.mrf.mxu1 }
  0xdc   : > { %v463_v13 = vpop.f32.mrf.mxu2  ;;  %v512_v14 = vpop.f32.mrf.mxu3  ;;  %v417_v22 = vadd.f32 %v416_v16, %v1740_v20 }
  0xdd   : > { %v367_v15 = vpop.f32.mrf.mxu0  ;;  %v464_v27 = vadd.f32 %v463_v13, %v1746_v31  ;;  %v513_v28 = vadd.f32 %v512_v14, %v1748_v32 }
  0xde   : > { %v368_v21 = vadd.f32 %v367_v15, %v1738_v19  ;;  %v569_v24 = vmax.f32 %v417_v22, 0.0 }
  0xdf   : > { %v566_v37 = vmax.f32 %v464_v27, 0.0  ;;  %v567_v38 = vmax.f32 %v513_v28, 0.0 }
  0xe0   : > { %v568_v23 = vmax.f32 %v368_v21, 0.0  ;;  %v613_v26 = vpack.c.bf16 %v569_v24, %v565_v18 }
  0xe2   : > { %v612_v25 = vpack.c.bf16 %v568_v23, %v564_v17  ;;  %965 = vmatmul.bf16.gmra.mxu1 %v613_v26 }
  0xe3   : > { %v419_v36 = vpop.f32.mrf.mxu1 }
  0xe4   : > { %v465_v29 = vpop.f32.mrf.mxu2  ;;  %v514_v30 = vpop.f32.mrf.mxu3  ;;  %916 = vmatmul.bf16.gmra.mxu0 %v612_v25  ;;  %v420_v44 = vadd.f32 %v419_v36, %v1740_v20 }
  0xe5   : > { %v466_v33 = vadd.f32 %v465_v29, %v1746_v31  ;;  %v515_v34 = vadd.f32 %v514_v30, %v1748_v32  ;;  %v370_v35 = vpop.f32.mrf.mxu0 }
  0xe6   : > { %v371_v43 = vadd.f32 %v370_v35, %v1738_v19  ;;  %v573_v50 = vmax.f32 %v420_v44, 0.0 }
  0xe7   : > { %v570_v39 = vmax.f32 %v466_v33, 0.0  ;;  %v571_v40 = vmax.f32 %v515_v34, 0.0 }
  0xe8   : > { %v572_v49 = vmax.f32 %v371_v43, 0.0 }
  0xe9   : > { %v614_v41 = vpack.c.bf16 %v570_v39, %v566_v37  ;;  %v615_v42 = vpack.c.bf16 %v571_v40, %v567_v38 }
  0xeb   : > { %1014 = vmatmul.bf16.gmra.mxu2 %v614_v41  ;;  %1063 = vmatmul.bf16.gmra.mxu3 %v615_v42  ;;  %v421_v48 = vpop.f32.mrf.mxu1 }
  0xec   : > { %v468_v45 = vpop.f32.mrf.mxu2  ;;  %v517_v46 = vpop.f32.mrf.mxu3  ;;  %v422_v52 = vadd.f32 %v421_v48, %v1740_v20 }
  0xed   : > { %v372_v47 = vpop.f32.mrf.mxu0  ;;  %v469_v57 = vadd.f32 %v468_v45, %v1746_v31  ;;  %v518_v58 = vadd.f32 %v517_v46, %v1748_v32 }
  0xee   : > { %v373_v51 = vadd.f32 %v372_v47, %v1738_v19  ;;  %v577_v54 = vmax.f32 %v422_v52, 0.0 }
  0xef   : > { %v574_v1 = vmax.f32 %v469_v57, 0.0  ;;  %v575_v2 = vmax.f32 %v518_v58, 0.0 }
  0xf0   : > { %v576_v53 = vmax.f32 %v373_v51, 0.0  ;;  %v617_v56 = vpack.c.bf16 %v577_v54, %v573_v50 }
  0xf2   : > { %v616_v55 = vpack.c.bf16 %v576_v53, %v572_v49  ;;  %970 = vmatmul.bf16.gmra.mxu1 %v617_v56 }
  0xf3   : > { %v424_v0 = vpop.f32.mrf.mxu1 }
  0xf4   : > { %v470_v59 = vpop.f32.mrf.mxu2  ;;  %v519_v60 = vpop.f32.mrf.mxu3  ;;  %921 = vmatmul.bf16.gmra.mxu0 %v616_v55  ;;  %v425_v8 = vadd.f32 %v424_v0, %v1740_v20 }
  0xf5   : > { %v471_v61 = vadd.f32 %v470_v59, %v1746_v31  ;;  %v520_v62 = vadd.f32 %v519_v60, %v1748_v32  ;;  %v375_v63 = vpop.f32.mrf.mxu0 }
  0xf6   : > { %v376_v7 = vadd.f32 %v375_v63, %v1738_v19  ;;  %v581_v14 = vmax.f32 %v425_v8, 0.0 }
  0xf7   : > { %v578_v3 = vmax.f32 %v471_v61, 0.0  ;;  %v579_v4 = vmax.f32 %v520_v62, 0.0 }
  0xf8   : > { %v580_v13 = vmax.f32 %v376_v7, 0.0 }
  0xf9   : > { %v618_v5 = vpack.c.bf16 %v578_v3, %v574_v1  ;;  %v619_v6 = vpack.c.bf16 %v579_v4, %v575_v2  ;;  %v1813_v1 = vld [vmem:[%s1852_s4] ss:$0 sm:$0xff] }
  0xfb   : > { %1019 = vmatmul.bf16.gmra.mxu2 %v618_v5  ;;  %1068 = vmatmul.bf16.gmra.mxu3 %v619_v6  ;;  %v426_v12 = vpop.f32.mrf.mxu1 }
  0xfc   : > { %v473_v9 = vpop.f32.mrf.mxu2  ;;  %v522_v10 = vpop.f32.mrf.mxu3  ;;  %v427_v16 = vadd.f32 %v426_v12, %v1740_v20 }
  0xfd   : > { %v377_v11 = vpop.f32.mrf.mxu0  ;;  %v474_v23 = vadd.f32 %v473_v9, %v1746_v31  ;;  %v523_v24 = vadd.f32 %v522_v10, %v1748_v32 }
  0xfe   : > { %v378_v15 = vadd.f32 %v377_v11, %v1738_v19  ;;  %v585_v18 = vmax.f32 %v427_v16, 0.0 }
  0xff   : > { %v582_v33 = vmax.f32 %v474_v23, 0.0  ;;  %v583_v34 = vmax.f32 %v523_v24, 0.0 }
 0x100   : > { %v584_v17 = vmax.f32 %v378_v15, 0.0  ;;  %v621_v22 = vpack.c.bf16 %v585_v18, %v581_v14 }
 0x102   : > { %v620_v21 = vpack.c.bf16 %v584_v17, %v580_v13  ;;  %975 = vmatmul.bf16.gmra.mxu1 %v621_v22 }
 0x103   : > { %v429_v30 = vpop.f32.mrf.mxu1 }
 0x104   : > { %v475_v25 = vpop.f32.mrf.mxu2  ;;  %v524_v26 = vpop.f32.mrf.mxu3  ;;  %926 = vmatmul.bf16.gmra.mxu0 %v620_v21  ;;  %v430_v40 = vadd.f32 %v429_v30, %v1740_v20 }
 0x105   : > { %v476_v27 = vadd.f32 %v475_v25, %v1746_v31  ;;  %v525_v28 = vadd.f32 %v524_v26, %v1748_v32  ;;  %v380_v29 = vpop.f32.mrf.mxu0 }
 0x106   : > { %v381_v39 = vadd.f32 %v380_v29, %v1738_v19  ;;  %v589_v46 = vmax.f32 %v430_v40, 0.0 }
 0x107   : > { %v586_v35 = vmax.f32 %v476_v27, 0.0  ;;  %v587_v36 = vmax.f32 %v525_v28, 0.0 }
 0x108   : > { %v588_v45 = vmax.f32 %v381_v39, 0.0 }
 0x109   : > { %v622_v37 = vpack.c.bf16 %v586_v35, %v582_v33  ;;  %v623_v38 = vpack.c.bf16 %v587_v36, %v583_v34 }
 0x10b   : > { %1024 = vmatmul.bf16.gmra.mxu2 %v622_v37  ;;  %1073 = vmatmul.bf16.gmra.mxu3 %v623_v38  ;;  %v431_v44 = vpop.f32.mrf.mxu1 }
 0x10c   : > { %v478_v41 = vpop.f32.mrf.mxu2  ;;  %v527_v42 = vpop.f32.mrf.mxu3  ;;  %v432_v48 = vadd.f32 %v431_v44, %v1740_v20 }
 0x10d   : > { %v382_v43 = vpop.f32.mrf.mxu0  ;;  %v479_v53 = vadd.f32 %v478_v41, %v1746_v31  ;;  %v528_v54 = vadd.f32 %v527_v42, %v1748_v32 }
 0x10e   : > { %v383_v47 = vadd.f32 %v382_v43, %v1738_v19  ;;  %v593_v50 = vmax.f32 %v432_v48, 0.0 }
 0x10f   : > { %v590_v59 = vmax.f32 %v479_v53, 0.0  ;;  %v591_v19 = vmax.f32 %v528_v54, 0.0 }
 0x110   : > { %v592_v49 = vmax.f32 %v383_v47, 0.0  ;;  %v625_v52 = vpack.c.bf16 %v593_v50, %v589_v46 }
 0x112   : > { %v624_v51 = vpack.c.bf16 %v592_v49, %v588_v45  ;;  %980 = vmatmul.bf16.gmra.mxu1 %v625_v52 }
 0x114   : > { %v480_v55 = vpop.f32.mrf.mxu2  ;;  %v529_v56 = vpop.f32.mrf.mxu3  ;;  %931 = vmatmul.bf16.gmra.mxu0 %v624_v51 }
 0x115   : > { %v481_v57 = vadd.f32 %v480_v55, %v1746_v31  ;;  %v530_v58 = vadd.f32 %v529_v56, %v1748_v32 }
 0x117   : > { %v594_v60 = vmax.f32 %v481_v57, 0.0  ;;  %v595_v20 = vmax.f32 %v530_v58, 0.0 }
 0x119   : > { %v626_v61 = vpack.c.bf16 %v594_v60, %v590_v59  ;;  %v627_v62 = vpack.c.bf16 %v595_v20, %v591_v19 }
 0x11b   : > { %1029 = vmatmul.bf16.gmra.mxu2 %v626_v61  ;;  %1078 = vmatmul.bf16.gmra.mxu3 %v627_v62 }
 0x11f   : > { %v946_v0 = vpop.f32.mrf.mxu1 }
 0x121   : > { %v897_v63 = vpop.f32.mrf.mxu0 }
 0x122   : > { %v898_v32 = vadd.f32 %v1813_v1, %v897_v63 }
 0x124   : > { %v947_v5 = vadd.f32 %v946_v0, %v898_v32 }
 0x127   : > { %v948_v31 = vpop.f32.mrf.mxu1 }
 0x129   : > { %v899_v2 = vpop.f32.mrf.mxu0 }
 0x12a   : > { %v900_v6 = vadd.f32 %v1813_v1, %v899_v2 }
 0x12c   : > { %v949_v10 = vadd.f32 %v948_v31, %v900_v6 }
 0x12e   : > { %v995_v3 = vpop.f32.mrf.mxu2  ;;  %v1044_v4 = vpop.f32.mrf.mxu3 }
 0x12f   : > { %v951_v8 = vpop.f32.mrf.mxu1  ;;  %v996_v9 = vadd.f32 %v995_v3, %v947_v5 }
 0x131   : > { %v902_v7 = vpop.f32.mrf.mxu0  ;;  %v1045_v13 = vadd.f32 %v1044_v4, %v996_v9 }
 0x132   : > { %v903_v22 = vadd.f32 %v1813_v1, %v902_v7 }
 0x133   : > { %v1084_v18 = vmax.f32 %v1045_v13, 0.0 }
 0x134   : > { %v952_v26 = vadd.f32 %v951_v8, %v903_v22 }
 0x136   : > { %v997_v11 = vpop.f32.mrf.mxu2  ;;  %v1046_v12 = vpop.f32.mrf.mxu3 }
 0x137   : > { %v998_v14 = vadd.f32 %v997_v11, %v949_v10  ;;  %v953_v17 = vpop.f32.mrf.mxu1 }
 0x139   : > { %v1047_v15 = vadd.f32 %v1046_v12, %v998_v14  ;;  %v904_v16 = vpop.f32.mrf.mxu0 }
 0x13a   : > { %v905_v27 = vadd.f32 %v1813_v1, %v904_v16 }
 0x13b   : > { %v1085_v21 = vmax.f32 %v1047_v15, 0.0 }
 0x13c   : > { %v954_v33 = vadd.f32 %v953_v17, %v905_v27 }
 0x13d   : > { %v1434_v23 = vpack.c.bf16 %v1085_v21, %v1084_v18 }
 0x13e   : > { %v1000_v24 = vpop.f32.mrf.mxu2  ;;  %v1049_v25 = vpop.f32.mrf.mxu3 }
 0x13f   : > { %1435 = vst [vmem:[%s1821_s12] sm:$0xff] %v1434_v23   ;;  %v956_v29 = vpop.f32.mrf.mxu1  ;;  %v1001_v30 = vadd.f32 %v1000_v24, %v952_v26 }
 0x141   : > { %v907_v28 = vpop.f32.mrf.mxu0  ;;  %v1050_v36 = vadd.f32 %v1049_v25, %v1001_v30 }
 0x142   : > { %v908_v43 = vadd.f32 %v1813_v1, %v907_v28 }
 0x143   : > { %v1086_v41 = vmax.f32 %v1050_v36, 0.0 }
 0x144   : > { %v957_v47 = vadd.f32 %v956_v29, %v908_v43 }
 0x146   : > { %v1002_v34 = vpop.f32.mrf.mxu2  ;;  %v1051_v35 = vpop.f32.mrf.mxu3 }
 0x147   : > { %v1003_v37 = vadd.f32 %v1002_v34, %v954_v33  ;;  %v958_v40 = vpop.f32.mrf.mxu1 }
 0x149   : > { %v1052_v38 = vadd.f32 %v1051_v35, %v1003_v37  ;;  %v909_v39 = vpop.f32.mrf.mxu0 }
 0x14a   : > { %v910_v48 = vadd.f32 %v1813_v1, %v909_v39 }
 0x14b   : > { %v1087_v42 = vmax.f32 %v1052_v38, 0.0 }
 0x14c   : > { %v959_v52 = vadd.f32 %v958_v40, %v910_v48 }
 0x14d   : > { %v1439_v44 = vpack.c.bf16 %v1087_v42, %v1086_v41 }
 0x14e   : > { %v1005_v45 = vpop.f32.mrf.mxu2  ;;  %v1054_v46 = vpop.f32.mrf.mxu3 }
 0x14f   : > { %1471 = vst [vmem:[%s1821_s12 + $0x8] sm:$0xff] %v1439_v44   ;;  %v961_v50 = vpop.f32.mrf.mxu1  ;;  %v1006_v51 = vadd.f32 %v1005_v45, %v957_v47 }
 0x151   : > { %v912_v49 = vpop.f32.mrf.mxu0  ;;  %v1055_v55 = vadd.f32 %v1054_v46, %v1006_v51 }
 0x152   : > { %v913_v20 = vadd.f32 %v1813_v1, %v912_v49 }
 0x153   : > { %v1088_v19 = vmax.f32 %v1055_v55, 0.0 }
 0x154   : > { %v962_v0 = vadd.f32 %v961_v50, %v913_v20 }
 0x156   : > { %v1007_v53 = vpop.f32.mrf.mxu2  ;;  %v1056_v54 = vpop.f32.mrf.mxu3 }
 0x157   : > { %v1008_v56 = vadd.f32 %v1007_v53, %v959_v52  ;;  %v963_v59 = vpop.f32.mrf.mxu1 }
 0x159   : > { %v1057_v57 = vadd.f32 %v1056_v54, %v1008_v56  ;;  %v914_v58 = vpop.f32.mrf.mxu0 }
 0x15a   : > { %v915_v2 = vadd.f32 %v1813_v1, %v914_v58 }
 0x15b   : > { %v1089_v60 = vmax.f32 %v1057_v57, 0.0 }
 0x15c   : > { %v964_v4 = vadd.f32 %v963_v59, %v915_v2 }
 0x15d   : > { %v1444_v61 = vpack.c.bf16 %v1089_v60, %v1088_v19 }
 0x15e   : > { %v1010_v62 = vpop.f32.mrf.mxu2  ;;  %v1059_v63 = vpop.f32.mrf.mxu3 }
 0x15f   : > { %1472 = vst [vmem:[%s1821_s12 + $0x10] sm:$0xff] %v1444_v61   ;;  %v966_v32 = vpop.f32.mrf.mxu1  ;;  %v1011_v3 = vadd.f32 %v1010_v62, %v962_v0 }
 0x161   : > { %v917_v31 = vpop.f32.mrf.mxu0  ;;  %v1060_v7 = vadd.f32 %v1059_v63, %v1011_v3 }
 0x162   : > { %v918_v14 = vadd.f32 %v1813_v1, %v917_v31 }
 0x163   : > { %v1090_v12 = vmax.f32 %v1060_v7, 0.0 }
 0x164   : > { %v967_v18 = vadd.f32 %v966_v32, %v918_v14 }
 0x166   : > { %v1012_v5 = vpop.f32.mrf.mxu2  ;;  %v1061_v6 = vpop.f32.mrf.mxu3 }
 0x167   : > { %v1013_v8 = vadd.f32 %v1012_v5, %v964_v4  ;;  %v968_v11 = vpop.f32.mrf.mxu1 }
 0x169   : > { %v1062_v9 = vadd.f32 %v1061_v6, %v1013_v8  ;;  %v919_v10 = vpop.f32.mrf.mxu0 }
 0x16a   : > { %v920_v21 = vadd.f32 %v1813_v1, %v919_v10 }
 0x16b   : > { %v1091_v13 = vmax.f32 %v1062_v9, 0.0 }
 0x16c   : > { %v969_v25 = vadd.f32 %v968_v11, %v920_v21 }
 0x16d   : > { %v1449_v15 = vpack.c.bf16 %v1091_v13, %v1090_v12 }
 0x16e   : > { %v1015_v16 = vpop.f32.mrf.mxu2  ;;  %v1064_v17 = vpop.f32.mrf.mxu3 }
 0x16f   : > { %1473 = vst [vmem:[%s1821_s12 + $0x18] sm:$0xff] %v1449_v15   ;;  %v971_v23 = vpop.f32.mrf.mxu1  ;;  %v1016_v24 = vadd.f32 %v1015_v16, %v967_v18 }
 0x171   : > { %v922_v22 = vpop.f32.mrf.mxu0  ;;  %v1065_v28 = vadd.f32 %v1064_v17, %v1016_v24 }
 0x172   : > { %v923_v37 = vadd.f32 %v1813_v1, %v922_v22 }
 0x173   : > { %v1092_v34 = vmax.f32 %v1065_v28, 0.0 }
 0x174   : > { %v972_v41 = vadd.f32 %v971_v23, %v923_v37 }
 0x176   : > { %v1017_v26 = vpop.f32.mrf.mxu2  ;;  %v1066_v27 = vpop.f32.mrf.mxu3 }
 0x177   : > { %v1018_v29 = vadd.f32 %v1017_v26, %v969_v25  ;;  %v973_v36 = vpop.f32.mrf.mxu1 }
 0x179   : > { %v1067_v30 = vadd.f32 %v1066_v27, %v1018_v29  ;;  %v924_v33 = vpop.f32.mrf.mxu0 }
 0x17a   : > { %v925_v42 = vadd.f32 %v1813_v1, %v924_v33 }
 0x17b   : > { %v1093_v35 = vmax.f32 %v1067_v30, 0.0 }
 0x17c   : > { %v974_v45 = vadd.f32 %v973_v36, %v925_v42 }
 0x17d   : > { %v1454_v38 = vpack.c.bf16 %v1093_v35, %v1092_v34 }
 0x17e   : > { %v1020_v39 = vpop.f32.mrf.mxu2  ;;  %v1069_v40 = vpop.f32.mrf.mxu3 }
 0x17f   : > { %1474 = vst [vmem:[%s1821_s12 + $0x20] sm:$0xff] %v1454_v38   ;;  %v1021_v44 = vadd.f32 %v1020_v39, %v972_v41  ;;  %v976_v46 = vpop.f32.mrf.mxu1 }
 0x181   : > { %v927_v43 = vpop.f32.mrf.mxu0  ;;  %v1070_v49 = vadd.f32 %v1069_v40, %v1021_v44 }
 0x182   : > { %v928_v55 = vadd.f32 %v1813_v1, %v927_v43 }
 0x183   : > { %v1094_v53 = vmax.f32 %v1070_v49, 0.0 }
 0x184   : > { %v977_v19 = vadd.f32 %v976_v46, %v928_v55 }
 0x186   : > { %v1022_v47 = vpop.f32.mrf.mxu2  ;;  %v1071_v48 = vpop.f32.mrf.mxu3 }
 0x187   : > { %v1023_v50 = vadd.f32 %v1022_v47, %v974_v45  ;;  %v978_v59 = vpop.f32.mrf.mxu1 }
 0x189   : > { %v1072_v51 = vadd.f32 %v1071_v48, %v1023_v50  ;;  %v929_v52 = vpop.f32.mrf.mxu0 }
 0x18a   : > { %v930_v60 = vadd.f32 %v1813_v1, %v929_v52 }
 0x18b   : > { %v1095_v54 = vmax.f32 %v1072_v51, 0.0 }
 0x18c   : > { %v979_v62 = vadd.f32 %v978_v59, %v930_v60 }
 0x18d   : > { %v1459_v56 = vpack.c.bf16 %v1095_v54, %v1094_v53 }
 0x18e   : > { %v1025_v57 = vpop.f32.mrf.mxu2  ;;  %v1074_v58 = vpop.f32.mrf.mxu3 }
 0x18f   : > { %1475 = vst [vmem:[%s1821_s12 + $0x28] sm:$0xff] %v1459_v56   ;;  %v1026_v20 = vadd.f32 %v1025_v57, %v977_v19  ;;  %v981_v3 = vpop.f32.mrf.mxu1 }
 0x191   : > { %v932_v61 = vpop.f32.mrf.mxu0  ;;  %v1075_v2 = vadd.f32 %v1074_v58, %v1026_v20 }
 0x192   : > { %v933_v6 = vadd.f32 %v1813_v1, %v932_v61 }
 0x193   : > { %v1096_v4 = vmax.f32 %v1075_v2, 0.0 }
 0x194   : > { %v982_v11 = vadd.f32 %v981_v3, %v933_v6 }
 0x196   : > { %v1027_v63 = vpop.f32.mrf.mxu2  ;;  %v1076_v0 = vpop.f32.mrf.mxu3 }
 0x197   : > { %v1028_v31 = vadd.f32 %v1027_v63, %v979_v62  ;;  %v983_v14 = vpop.f32.mrf.mxu1 }
 0x199   : > { %v1077_v32 = vadd.f32 %v1076_v0, %v1028_v31  ;;  %v934_v8 = vpop.f32.mrf.mxu0 }
 0x19a   : > { %v935_v12 = vadd.f32 %v1813_v1, %v934_v8 }
 0x19b   : > { %v1097_v5 = vmax.f32 %v1077_v32, 0.0 }
 0x19c   : > { %v984_v15 = vadd.f32 %v983_v14, %v935_v12 }
 0x19d   : > { %v1464_v7 = vpack.c.bf16 %v1097_v5, %v1096_v4 }
 0x19e   : > { %v1030_v9 = vpop.f32.mrf.mxu2  ;;  %v1079_v10 = vpop.f32.mrf.mxu3 }
 0x19f   : > { %1476 = vst [vmem:[%s1821_s12 + $0x30] sm:$0xff] %v1464_v7   ;;  %v1031_v13 = vadd.f32 %v1030_v9, %v982_v11 }
 0x1a1   : > { %v1080_v17 = vadd.f32 %v1079_v10, %v1031_v13 }
 0x1a3   : > { %v1098_v23 = vmax.f32 %v1080_v17, 0.0 }
 0x1a6   : > { %v1032_v16 = vpop.f32.mrf.mxu2  ;;  %v1081_v21 = vpop.f32.mrf.mxu3 }
 0x1a7   : > { %v1033_v18 = vadd.f32 %v1032_v16, %v984_v15 }
 0x1a9   : > { %v1082_v22 = vadd.f32 %v1081_v21, %v1033_v18 }
 0x1ab   : > { %v1099_v24 = vmax.f32 %v1082_v22, 0.0 }
 0x1ad   : > { %v1469_v25 = vpack.c.bf16 %v1099_v24, %v1098_v23 }
 0x1af   : > { %1477 = vst [vmem:[%s1821_s12 + $0x38] sm:$0xff] %v1469_v25  }
 0x1b0 PF: > { %s15_s18 = sadd.s32 1, %s1493_s18  }
 0x1b1   : > { %p12_p4 = scmp.ge.s32.totalorder %s15_s18, 4  }
 0x1b3   :  { %14 = sbr.rel (!%p12_p4) target bundleno = 1 (0x1), region = 70 }

// kernel: noise_filter_forward.7
= control target key start
LH: loop header
LB: loop body
LE: loop exit
PB: predicated region body
PF: predicated region fallthrough
CT: control target
= control target key end

     0   :  { %s3002_s0 = inlined_call_operand.vmem [shape: bf16[256,256], index: 0, kind: input, shape index: {}]   ;;  %s3003_s1 = inlined_call_operand.vmem [shape: bf16[256,128], index: 1, kind: input, shape index: {}, may-alias: {1,2}]   ;;  %s3004_s2 = inlined_call_operand.vmem [shape: bf16[256,128], index: 2, kind: input, shape index: {}, may-alias: {1,2}]   ;;  %s3005_s3 = inlined_call_operand.vmem [shape: f32[256,1], index: 3, kind: input, shape index: {}]   ;;  %s3006_s4 = inlined_call_operand.vmem [shape: f32[256,1], index: 4, kind: input, shape index: {}, may-alias: {4,5}]   ;;  %s3007_s5 = inlined_call_operand.vmem [shape: f32[256,1], index: 5, kind: input, shape index: {}, may-alias: {4,5}]   ;;  %s3008_s6 = inlined_call_operand.vmem [shape: bf16[256,32], index: 6, kind: input, shape index: {}]   ;;  %s3009_s7 = inlined_call_operand.vmem [shape: bf16[256,32], index: 7, kind: input, shape index: {}]   ;;  %s3010_s8 = inlined_call_operand.vmem [shape: bf16[32,128], index: 8, kind: input, shape index: {}]   ;;  %s3011_s9 = inlined_call_operand.vmem [shape: f32[1,128], index: 9, kind: input, shape index: {}]   ;;  %s3012_s10 = inlined_call_operand.vmem [shape: bf16[32,128], index: 10, kind: input, shape index: {}]   ;;  %s3013_s11 = inlined_call_operand.vmem [shape: f32[1,128], index: 11, kind: input, shape index: {}]   ;;  %s3014_s12 = inlined_call_operand.vmem [shape: f32[256,128], index: 12, kind: output, shape index: {}]  }
   0x1   :  { %3019 = sst [smem:[#allocation9_spill]] %s3002_s0 }
   0x2   :  { %3020 = sst [smem:[#allocation10_spill]] %s3003_s1 }
   0x3   :  { %3021 = sst [smem:[#allocation11_spill]] %s3005_s3 }
   0x4   :  { %3022 = sst [smem:[#allocation12_spill]] %s3006_s4 }
   0x5   :  { %3023 = sst [smem:[#allocation13_spill]] %s3011_s9 }
   0x6   :  { %3024 = sst [smem:[#allocation14_spill]] %s3013_s11 }
   0x7   :  { %s2623_s21 = smov 0   ;;  %s2625_s22 = smov 0  }
   0x8   :  { %s2627_s23 = smov 0   ;;  %s2629_s24 = smov 0  }
   0x9   :  { %s2631_s25 = smov 0   ;;  %s2633_s26 = smov 0  }
   0xa   :  { %s2635_s27 = smov 0  }
   0xb LB: > { %3025 = sst [smem:[#allocation5_spill]] %s2545_s25  ;;  %s31_s28 = sadd.s32 1, %s2545_s25  ;;  %s2553_s27 = sphi %s2635_s27, %s22_s27   ;;  %s2549_s26 = sphi %s2633_s26, %s3038_s26   ;;  %s2545_s25 = sphi %s2631_s25, %s3037_s25   ;;  %s2541_s24 = sphi %s2629_s24, %s3036_s24   ;;  %s2537_s23 = sphi %s2627_s23, %s3035_s23   ;;  %s2533_s22 = sphi %s2625_s22, %s3040_s22   ;;  %s2529_s21 = sphi %s2623_s21, %s3039_s21  }
   0xc   : > { %3026 = sst [smem:[#allocation6_spill]] %s2549_s26  ;;  %p32_p0 = scmp.ge.s32.totalorder %s31_s28, 2 }
   0xd   : > { %s34_s29 = sadd.s32 1, %s2549_s26  ;;  %p50_p1 = scmp.ne.s32.totalorder %s2533_s22, %s2529_s21 }
   0xe   : > { %p51_p2 = scmp.eq.s32.totalorder %s2553_s27, 0  ;;  %s3042_s28 = smov (%p32_p0, %s31_s28), 0 }
   0xf   : > { %3027 = sst [smem:[#allocation7_spill]] %s3042_s28  ;;  %s3044_s29 = smov (!%p32_p0, %s34_s29), %s2549_s26 }
  0x10   : > { %p52_p3 = por %p51_p2, %p50_p1  ;;  %p36_p4 = scmp.ge.s32.totalorder %s3044_s29, 2 }
  0x11   : > { %s39_s30 = ssub.s32 %s2545_s25, %s3042_s28  ;;  %s43_s15 = sadd.s32 1, %s2533_s22 }
  0x12   : > { %s3046_s29 = smov (%p36_p4, %s3044_s29), 0  ;;  %p2132_p6 = scmp.ge.s32.totalorder %s2553_s27, 4 }
  0x13   : > { %3028 = sst [smem:[#allocation8_spill]] %s3046_s29  ;;  %s38_s13 = ssub.s32 %s2549_s26, %s3046_s29 }
  0x14   : > { %s40_s14 = sor.u32 %s39_s30, %s38_s13  ;;  %380 = sbr.rel (%p2132_p6) target bundleno = 51 (0x33), region = 32 }
  0x15   : > { %p41_p5 = scmp.eq.s32.totalorder %s40_s14, 0 }
  0x17   : > { %s2674_s16 = scalar_select %p41_p5, %s2533_s22, %s43_s15  }
  0x19   : > { %383 = sbr.rel (!%p52_p3) target bundleno = 51 (0x33), region = 36  ;;  %s385_s17 = sand.u32 (%p52_p3), 1, %s2533_s22  }
  0x1a   : > { %s2351_s18 = sshll.u32 (%p52_p3), %s2549_s26, 5  ;;  %s2133_s19 = sshll.u32 (%p52_p3), %s385_s17, 6 }
  0x1b   : > { %s390_s20 = sadd.s32 (%p52_p3), %s2545_s25, %s2351_s18  ;;  %s3029_s0 = sld [smem:[#allocation9_spill]] (%p52_p3) }
  0x1c   : > { %s2136_s28 = sshll.u32 (%p52_p3), %s390_s20, 2  ;;  %s387_s13 = scalar_lea.vmem (%p52_p3), [#allocation4], %s2133_s19 }
  0x21   : > { %s2683_s30 = scalar_lea.vmem %s3029_s0, %s2136_s28 }
  0x22   : > { %v409_v0 = vld [vmem:[%s2683_s30] sm:$0xf]  ;;  %v411_v1 = vld [vmem:[%s2683_s30 + $0x8] sm:$0xf]  ;;  %v413_v2 = vld [vmem:[%s2683_s30 + $0x10] sm:$0xf] }
  0x23   : > { %410 = vst [vmem:[%s387_s13] sm:$0xf] %v409_v0  ;;  %v415_v3 = vld [vmem:[%s2683_s30 + $0x18] sm:$0xf]  ;;  %v417_v4 = vld [vmem:[%s2683_s30 + $0x20] sm:$0xf] }
  0x24   : > { %412 = vst [vmem:[%s387_s13 + $0x4] sm:$0xf] %v411_v1  ;;  %v419_v5 = vld [vmem:[%s2683_s30 + $0x28] sm:$0xf]  ;;  %v421_v6 = vld [vmem:[%s2683_s30 + $0x30] sm:$0xf] }
  0x25   : > { %414 = vst [vmem:[%s387_s13 + $0x8] sm:$0xf] %v413_v2  ;;  %v423_v7 = vld [vmem:[%s2683_s30 + $0x38] sm:$0xf]  ;;  %v425_v8 = vld [vmem:[%s2683_s30 + $0x40] sm:$0xf] }
  0x26   : > { %416 = vst [vmem:[%s387_s13 + $0xc] sm:$0xf] %v415_v3  ;;  %v427_v9 = vld [vmem:[%s2683_s30 + $0x48] sm:$0xf]  ;;  %v429_v10 = vld [vmem:[%s2683_s30 + $0x50] sm:$0xf] }
  0x27   : > { %418 = vst [vmem:[%s387_s13 + $0x10] sm:$0xf] %v417_v4  ;;  %v431_v11 = vld [vmem:[%s2683_s30 + $0x58] sm:$0xf]  ;;  %v433_v12 = vld [vmem:[%s2683_s30 + $0x60] sm:$0xf] }
  0x28   : > { %420 = vst [vmem:[%s387_s13 + $0x14] sm:$0xf] %v419_v5  ;;  %v435_v13 = vld [vmem:[%s2683_s30 + $0x68] sm:$0xf]  ;;  %v437_v14 = vld [vmem:[%s2683_s30 + $0x70] sm:$0xf] }
  0x29   : > { %422 = vst [vmem:[%s387_s13 + $0x18] sm:$0xf] %v421_v6  ;;  %v439_v15 = vld [vmem:[%s2683_s30 + $0x78] sm:$0xf] }
  0x2a   : > { %424 = vst [vmem:[%s387_s13 + $0x1c] sm:$0xf] %v423_v7 }
  0x2b   : > { %426 = vst [vmem:[%s387_s13 + $0x20] sm:$0xf] %v425_v8 }
  0x2c   : > { %428 = vst [vmem:[%s387_s13 + $0x24] sm:$0xf] %v427_v9 }
  0x2d   : > { %430 = vst [vmem:[%s387_s13 + $0x28] sm:$0xf] %v429_v10 }
  0x2e   : > { %432 = vst [vmem:[%s387_s13 + $0x2c] sm:$0xf] %v431_v11 }
  0x2f   : > { %434 = vst [vmem:[%s387_s13 + $0x30] sm:$0xf] %v433_v12 }
  0x30   : > { %436 = vst [vmem:[%s387_s13 + $0x34] sm:$0xf] %v435_v13 }
  0x31   : > { %438 = vst [vmem:[%s387_s13 + $0x38] sm:$0xf] %v437_v14 }
  0x32   : > { %440 = vst [vmem:[%s387_s13 + $0x3c] sm:$0xf] %v439_v15 }
  0x33 PF: > { %p2137_p7 = scmp.ge.s32.totalorder %s2553_s27, 1  ;;  %p558_p8 = scmp.lt.s32.totalorder %s2553_s27, 5 }
  0x35   : > { %p559_p9 = pnand %p2137_p7, %p558_p8 }
  0x36   : > { %s565_s9 = sand.u32 (!%p559_p9), 1, %s2529_s21   ;;  %s2139_s11 = sshll.u32 (!%p559_p9), %s2541_s24, 4 }
  0x37   : > { %562 = sbr.rel (%p559_p9) target bundleno = 880 (0x370), region = 105  ;;  %s2138_s28 = sshll.u32 (!%p559_p9), %s565_s9, 6 }
  0x38   : > { %p643_p10 = scmp.lt.s32.totalorder (!%p559_p9), %s2139_s11, 31  ;;  %s2141_s14 = sshll.u32 (!%p559_p9), %s2537_s23, 4 }
  0x39   : > { %p649_p11 = scmp.lt.s32.totalorder (!%p559_p9), %s2141_s14, 31  ;;  %s3030_s1 = sld [smem:[#allocation10_spill]] (!%p559_p9) }
  0x3a   : > { %s3031_s3 = sld [smem:[#allocation11_spill]] (!%p559_p9)  ;;  %p2155_p12 = scmp.ne.s32.totalorder (!%p559_p9), %s2537_s23, 0 }
  0x3b   : > { %s3032_s4 = sld [smem:[#allocation12_spill]] (!%p559_p9) }
  0x3c   : > { %s3048_s11 = smov (!%p643_p10, %s2139_s11), 31  ;;  %s3050_s14 = smov (!%p649_p11, %s2141_s14), 31 }
  0x3d   : > { %s2140_s15 = sshll.u32 %s3048_s11, 2  ;;  %s2144_s17 = sshll.u32 %s3048_s11, 3 }
  0x3e   : > { %s2724_s11 = scalar_lea.vmem %s3014_s12, %s2144_s17  ;;  %s2142_s25 = sshll.u32 %s3050_s14, 2 }
  0x3f   : > { %s2709_s20 = scalar_lea.vmem %s3030_s1, %s2140_s15  ;;  %s2148_s18 = sshll.u32 %s3050_s14, 3 }
  0x40   : > { %s2714_s0 = scalar_lea.vmem %s3031_s3, %s2144_s17  ;;  %s2729_s1 = scalar_lea.vmem %s3004_s2, %s2142_s25 }
  0x41   : > { %s2719_s9 = scalar_lea.vmem %s3032_s4, %s2144_s17  ;;  %s2734_s3 = scalar_lea.vmem %s3007_s5, %s2148_s18 }
  0x42   : > { %s2739_s4 = scalar_lea.vmem %s3008_s6, %s2142_s25  ;;  %s2744_s17 = scalar_lea.vmem %s3009_s7, %s2142_s25 }
  0x43   : > { %s2746_s14 = scalar_lea.vmem [#allocation4], %s2138_s28  ;;  %694 = sbr.rel (%p2155_p12) target bundleno = 105 (0x69), region = 113 }
  0x48   : > { %v2555_v16 = vmov 0.0  }
  0x49   : > { %695 = vst [vmem:[#allocation2 + $0x30] sm:$0xff] %v2555_v16 }
  0x4a   : > { %696 = vst [vmem:[#allocation2] sm:$0xff] %v2555_v16 }
  0x4b   : > { %697 = vst [vmem:[#allocation2 + $0x58] sm:$0xff] %v2555_v16 }
  0x4c   : > { %698 = vst [vmem:[#allocation2 + $0x18] sm:$0xff] %v2555_v16 }
  0x4d   : > { %699 = vst [vmem:[#allocation2 + $0x50] sm:$0xff] %v2555_v16 }
  0x4e   : > { %700 = vst [vmem:[#allocation2 + $0x68] sm:$0xff] %v2555_v16 }
  0x4f   : > { %701 = vst [vmem:[#allocation2 + $0x8] sm:$0xff] %v2555_v16 }
  0x50   : > { %702 = vst [vmem:[#allocation2 + $0x48] sm:$0xff] %v2555_v16 }
  0x51   : > { %703 = vst [vmem:[#allocation2 + $0x40] sm:$0xff] %v2555_v16 }
  0x52   : > { %704 = vst [vmem:[#allocation2 + $0x20] sm:$0xff] %v2555_v16 }
  0x53   : > { %705 = vst [vmem:[#allocation2 + $0x10] sm:$0xff] %v2555_v16 }
  0x54   : > { %706 = vst [vmem:[#allocation2 + $0x38] sm:$0xff] %v2555_v16 }
  0x55   : > { %707 = vst [vmem:[#allocation2 + $0x60] sm:$0xff] %v2555_v16 }
  0x56   : > { %708 = vst [vmem:[#allocation2 + $0x70] sm:$0xff] %v2555_v16 }
  0x57   : > { %709 = vst [vmem:[#allocation2 + $0x78] sm:$0xff] %v2555_v16 }
  0x58   : > { %710 = vst [vmem:[#allocation2 + $0x28] sm:$0xff] %v2555_v16 }
  0x59   : > { %711 = vst [vmem:[#allocation3 + $0x28] sm:$0xff] %v2555_v16 }
  0x5a   : > { %712 = vst [vmem:[#allocation3 + $0x68] sm:$0xff] %v2555_v16 }
  0x5b   : > { %713 = vst [vmem:[#allocation3 + $0x10] sm:$0xff] %v2555_v16 }
  0x5c   : > { %714 = vst [vmem:[#allocation3 + $0x40] sm:$0xff] %v2555_v16 }
  0x5d   : > { %715 = vst [vmem:[#allocation3 + $0x48] sm:$0xff] %v2555_v16 }
  0x5e   : > { %716 = vst [vmem:[#allocation3 + $0x30] sm:$0xff] %v2555_v16 }
  0x5f   : > { %717 = vst [vmem:[#allocation3 + $0x70] sm:$0xff] %v2555_v16 }
  0x60   : > { %718 = vst [vmem:[#allocation3 + $0x38] sm:$0xff] %v2555_v16 }
  0x61   : > { %719 = vst [vmem:[#allocation3 + $0x20] sm:$0xff] %v2555_v16 }
  0x62   : > { %720 = vst [vmem:[#allocation3 + $0x78] sm:$0xff] %v2555_v16 }
  0x63   : > { %721 = vst [vmem:[#allocation3 + $0x18] sm:$0xff] %v2555_v16 }
  0x64   : > { %722 = vst [vmem:[#allocation3 + $0x58] sm:$0xff] %v2555_v16 }
  0x65   : > { %723 = vst [vmem:[#allocation3] sm:$0xff] %v2555_v16 }
  0x66   : > { %724 = vst [vmem:[#allocation3 + $0x8] sm:$0xff] %v2555_v16 }
  0x67   : > { %725 = vst [vmem:[#allocation3 + $0x60] sm:$0xff] %v2555_v16 }
  0x68   : > { %726 = vst [vmem:[#allocation3 + $0x50] sm:$0xff] %v2555_v16 }
  0x69 PF: > { %v2361_v17 = vld [vmem:[%s3010_s8 + $0x8] sm:$0xff]  ;;  %v2385_v18 = vld [vmem:[%s2729_s1 + $0x38] sm:$0xff]  ;;  %v2360_v19 = vld [vmem:[%s3010_s8] sm:$0xff]  ;;  %vm799_vm0 = vcmask 261120   ;;  %v2556_v25 = vmov 0   ;;  %p2348_p13 = scmp.ne.s32.totalorder %s2537_s23, 1 }
  0x6a   : > { %2397 = vmatpush.bf16.msra.mxu3 %v2361_v17  ;;  %1170 = vmatpush.bf16.xpose.msra.mxu2 %v2385_v18  ;;  %v2395_v20 = vld [vmem:[%s3012_s10 + $0x8] sm:$0xff]  ;;  %v2356_v21 = vld [vmem:[%s2739_s4 + $0x20] sm:$0xff]  ;;  %v2384_v22 = vld [vmem:[%s2729_s1 + $0x30] sm:$0xff] }
  0x6b   : > { %2396 = vmatpush.bf16.msra.mxu1 %v2361_v17  ;;  %830 = vmatpush.bf16.msra.mxu0 %v2361_v17  ;;  %v2394_v23 = vld [vmem:[%s3012_s10] sm:$0xff]  ;;  %v2383_v26 = vld [vmem:[%s2729_s1 + $0x28] sm:$0xff]  ;;  %v2381_v30 = vld [vmem:[%s2729_s1 + $0x18] sm:$0xff] }
  0x6c   : > { %v1520_v24 = vld [vmem:[%s2734_s3 + $0x60] sm:$0xff]  ;;  %2460 = vset.pattern.permute.xlu1 %v2556_v25  ;;  %2459 = vset.pattern.permute.xlu0 %v2556_v25  ;;  %v2357_v27 = vld [vmem:[%s2739_s4 + $0x28] sm:$0xff]  ;;  %v2358_v32 = vld [vmem:[%s2739_s4 + $0x30] sm:$0xff] }
  0x6d   : > { %1586 = vperm.xlu1 %2460, %v1520_v24   ;;  %2461 = vset.pattern.permute.xlu2 %v2556_v25  ;;  %v2382_v28 = vld [vmem:[%s2729_s1 + $0x20] sm:$0xff]  ;;  %v1521_v29 = vld [vmem:[%s2734_s3 + $0x68] sm:$0xff]  ;;  %v2380_v33 = vld [vmem:[%s2729_s1 + $0x10] sm:$0xff] }
  0x6e   : > { %2399 = vmatpush.bf16.msra.mxu3 %v2360_v19  ;;  %v1517_v31 = vld [vmem:[%s2734_s3 + $0x48] sm:$0xff]  ;;  %v1512_v34 = vld [vmem:[%s2734_s3 + $0x20] sm:$0xff]  ;;  %v1522_v35 = vld [vmem:[%s2734_s3 + $0x70] sm:$0xff] }
  0x6f   : > { %2398 = vmatpush.bf16.msra.mxu1 %v2360_v19  ;;  %831 = vmatpush.bf16.msra.mxu0 %v2360_v19  ;;  %v2379_v36 = vld [vmem:[%s2729_s1 + $0x8] sm:$0xff]  ;;  %v1518_v37 = vld [vmem:[%s2734_s3 + $0x50] sm:$0xff]  ;;  %v1523_v38 = vld [vmem:[%s2734_s3 + $0x78] sm:$0xff] }
  0x70   : > { %1596 = vperm.xlu0 %2459, %v1522_v35   ;;  %v1220_v39 = vld [vmem:[%s2714_s0 + $0x8] sm:$0xff]  ;;  %1576 = vperm.xlu2 %2461, %v1518_v37   ;;  %v2359_v40 = vld [vmem:[%s2739_s4 + $0x38] sm:$0xff]  ;;  %v2378_v41 = vld [vmem:[%s2729_s1] sm:$0xff] }
  0x71   : > { %2200 = vmatmul.msk.bf16.vlgmr.msra.gmra.mxu3 %vm799_vm0, %v2356_v21  ;;  %v1519_v42 = vld [vmem:[%s2734_s3 + $0x58] sm:$0xff]  ;;  %v1516_v43 = vld [vmem:[%s2734_s3 + $0x40] sm:$0xff]  ;;  %v1514_v46 = vld [vmem:[%s2734_s3 + $0x30] sm:$0xff] }
  0x72   : > { %1465 = vmatpush.bf16.msrb.mxu3 %v2395_v20  ;;  %1171 = vmatpush.bf16.xpose.msra.mxu2 %v2384_v22  ;;  %v1508_v44 = vld [vmem:[%s2734_s3] sm:$0xff]  ;;  %v1515_v47 = vld [vmem:[%s2734_s3 + $0x38] sm:$0xff]  ;;  %v1513_v49 = vld [vmem:[%s2734_s3 + $0x28] sm:$0xff] }
  0x73   : > { %v2370_v45 = vld [vmem:[%s2709_s20] sm:$0xff]  ;;  %v2371_v51 = vld [vmem:[%s2709_s20 + $0x8] sm:$0xff]  ;;  %v1510_v52 = vld [vmem:[%s2734_s3 + $0x10] sm:$0xff] }
  0x74   : > { %v2386_v48 = vld [vmem:[%s2744_s17] sm:$0xff]  ;;  %v1511_v53 = vld [vmem:[%s2734_s3 + $0x18] sm:$0xff]  ;;  %v2387_v54 = vld [vmem:[%s2744_s17 + $0x8] sm:$0xff] }
  0x75   : > { %1591 = vperm.xlu1 %2460, %v1521_v29   ;;  %v1219_v50 = vld [vmem:[%s2714_s0] sm:$0xff]  ;;  %v1509_v55 = vld [vmem:[%s2734_s3 + $0x8] sm:$0xff]  ;;  %v2372_v56 = vld [vmem:[%s2709_s20 + $0x10] sm:$0xff]  ;;  %s3033_s3 = sld [smem:[#allocation13_spill]] (!%p2348_p13) }
  0x76   : > { %1466 = vmatpush.bf16.msrb.mxu3 %v2394_v23  ;;  %v2388_v57 = vld [vmem:[%s2744_s17 + $0x10] sm:$0xff]  ;;  %v2373_v58 = vld [vmem:[%s2709_s20 + $0x18] sm:$0xff]  ;;  %v2374_v60 = vld [vmem:[%s2709_s20 + $0x20] sm:$0xff] }
  0x77   : > { %v2389_v59 = vld [vmem:[%s2744_s17 + $0x18] sm:$0xff]  ;;  %v1221_v61 = vld [vmem:[%s2714_s0 + $0x10] sm:$0xff]  ;;  %v2390_v63 = vld [vmem:[%s2744_s17 + $0x20] sm:$0xff] }
  0x78   : > { %1601 = vperm.xlu0 %2459, %v1523_v38   ;;  %1581 = vperm.xlu2 %2461, %v1519_v42   ;;  %v2354_v62 = vld [vmem:[%s2739_s4 + $0x10] sm:$0xff]  ;;  %v1222_v0 = vld [vmem:[%s2714_s0 + $0x18] sm:$0xff]  ;;  %v1224_v1 = vld [vmem:[%s2714_s0 + $0x28] sm:$0xff] }
  0x79   : > { %2198 = vmatmul.msk.bf16.vlgmr.msra.gmra.mxu1 %vm799_vm0, %v2354_v62  ;;  %v2352_v2 = vld [vmem:[%s2739_s4] sm:$0xff]  ;;  %v1225_v4 = vld [vmem:[%s2714_s0 + $0x30] sm:$0xff]  ;;  %v2375_v5 = vld [vmem:[%s2709_s20 + $0x28] sm:$0xff] }
  0x7a   : > { %1172 = vmatpush.bf16.xpose.msra.mxu2 %v2383_v26  ;;  %2196 = vmatmul.msk.bf16.vlgmr.msra.gmra.mxu0 %vm799_vm0, %v2352_v2  ;;  %v1227_v6 = vld [vmem:[%s2714_s0 + $0x40] sm:$0xff]  ;;  %v2355_v7 = vld [vmem:[%s2739_s4 + $0x18] sm:$0xff]  ;;  %v2391_v9 = vld [vmem:[%s2744_s17 + $0x28] sm:$0xff] }
  0x7b   : > { %v1228_v10 = vld [vmem:[%s2714_s0 + $0x48] sm:$0xff]  ;;  %v1230_v11 = vld [vmem:[%s2714_s0 + $0x58] sm:$0xff]  ;;  %v1231_v14 = vld [vmem:[%s2714_s0 + $0x60] sm:$0xff] }
  0x7c   : > { %v2353_v12 = vld [vmem:[%s2739_s4 + $0x8] sm:$0xff]  ;;  %v2376_v15 = vld [vmem:[%s2709_s20 + $0x30] sm:$0xff]  ;;  %v1223_v21 = vld [vmem:[%s2714_s0 + $0x20] sm:$0xff] }
  0x7d   : > { %1571 = vperm.xlu1 %2460, %v1517_v31   ;;  %v1233_v17 = vld [vmem:[%s2714_s0 + $0x70] sm:$0xff]  ;;  %v1234_v22 = vld [vmem:[%s2714_s0 + $0x78] sm:$0xff] }
  0x7e   : > { %v2392_v20 = vld [vmem:[%s2744_s17 + $0x30] sm:$0xff]  ;;  %v2377_v26 = vld [vmem:[%s2709_s20 + $0x38] sm:$0xff]  ;;  %s3034_s20 = sld [smem:[#allocation14_spill]] (!%p2348_p13) }
  0x80   : > { %1566 = vperm.xlu0 %2459, %v1516_v43   ;;  %1556 = vperm.xlu2 %2461, %v1514_v46  }
  0x81   : > { %2201 = vmatmul.msk.bf16.gmra.mxu3 %vm799_vm0, %v2357_v27  ;;  %v1226_v27 = vld [vmem:[%s2714_s0 + $0x38] sm:$0xff] }
  0x82   : > { %1173 = vmatpush.bf16.xpose.msra.mxu2 %v2382_v28 }
  0x85   : > { %1546 = vperm.xlu1 %2460, %v1512_v34  }
  0x88   : > { %1561 = vperm.xlu0 %2459, %v1515_v47   ;;  %1551 = vperm.xlu2 %2461, %v1513_v49  }
  0x89   : > { %2199 = vmatmul.msk.bf16.gmra.mxu1 %vm799_vm0, %v2355_v7 }
  0x8a   : > { %1174 = vmatpush.bf16.xpose.msra.mxu2 %v2381_v30  ;;  %2197 = vmatmul.msk.bf16.gmra.mxu0 %vm799_vm0, %v2353_v12 }
  0x8d   : > { %1242 = vperm.xlu1 %2460, %v1220_v39  }
  0x90   : > { %1237 = vperm.xlu0 %2459, %v1219_v50   ;;  %1536 = vperm.xlu2 %2461, %v1510_v52  }
  0x91   : > { %2202 = vmatmul.msk.bf16.gmra.mxu3 %vm799_vm0, %v2358_v32  ;;  %v2393_v32 = vld [vmem:[%s2744_s17 + $0x38] sm:$0xff] }
  0x92   : > { %1175 = vmatpush.bf16.xpose.msra.mxu2 %v2380_v33  ;;  %v1229_v33 = vld [vmem:[%s2714_s0 + $0x50] sm:$0xff] }
  0x95   : > { %1526 = vperm.xlu1 %2460, %v1508_v44  }
  0x98   : > { %1541 = vperm.xlu0 %2459, %v1511_v53   ;;  %1531 = vperm.xlu2 %2461, %v1509_v55  }
  0x9a   : > { %1176 = vmatpush.bf16.xpose.msra.mxu2 %v2379_v36  ;;  %v1232_v36 = vld [vmem:[%s2714_s0 + $0x68] sm:$0xff] }
  0x9d   : > { %1252 = vperm.xlu1 %2460, %v1222_v0  }
  0xa0   : > { %1247 = vperm.xlu0 %2459, %v1221_v61   ;;  %1257 = vperm.xlu2 %2461, %v1223_v21  }
  0xa1   : > { %2203 = vmatmul.msk.bf16.gmra.mxu3 %vm799_vm0, %v2359_v40 }
  0xa2   : > { %1177 = vmatpush.bf16.xpose.msra.mxu2 %v2378_v41 }
  0xa5   : > { %1267 = vperm.xlu1 %2460, %v1225_v4  }
  0xa8   : > { %1262 = vperm.xlu0 %2459, %v1224_v1   ;;  %1272 = vperm.xlu2 %2461, %v1226_v27  }
  0xa9   : > { %1178 = vmatmul.bf16.vlgmr.msra.gmra.mxu2 %v2370_v45 }
  0xad   : > { %1282 = vperm.xlu1 %2460, %v1228_v10  }
  0xb0   : > { %1277 = vperm.xlu0 %2459, %v1227_v6   ;;  %1287 = vperm.xlu2 %2461, %v1229_v33  }
  0xb1   : > { %2340 = vmatmul.msk.bf16.vlgmr.msrb.gmra.mxu3 %vm799_vm0, %v2386_v48 }
  0xb5   : > { %1297 = vperm.xlu1 %2460, %v1231_v14  }
  0xb8   : > { %1292 = vperm.xlu0 %2459, %v1230_v11   ;;  %1302 = vperm.xlu2 %2461, %v1232_v36   ;;  %v2362_v36 = vld [vmem:[%s2746_s14] sm:$0xff] }
  0xb9   : > { %1183 = vmatmul.bf16.gmra.mxu2 %v2371_v51 }
  0xbd   : > { %1312 = vperm.xlu1 %2460, %v1234_v22  }
  0xc0   : > { %1307 = vperm.xlu0 %2459, %v1233_v17  }
  0xc1   : > { %2341 = vmatmul.msk.bf16.gmra.mxu3 %vm799_vm0, %v2387_v54 }
  0xc9   : > { %1188 = vmatmul.bf16.gmra.mxu2 %v2372_v56 }
  0xca   : > { %v2835_v18 = vpop.permute.xlu2 %1576 }
  0xd1   : > { %2342 = vmatmul.msk.bf16.gmra.mxu3 %vm799_vm0, %v2388_v57 }
  0xd2   : > { %v2843_v24 = vpop.permute.xlu2 %1581 }
  0xd9   : > { %1193 = vmatmul.bf16.gmra.mxu2 %v2373_v58 }
  0xda   : > { %v1557_v31 = vpop.permute.xlu2 %1556 }
  0xdf   : > { %v2832_v16 = vpop.permute.xlu1 %1586 }
  0xe1   : > { %2343 = vmatmul.msk.bf16.gmra.mxu3 %vm799_vm0, %v2389_v59 }
  0xe2   : > { %v2847_v28 = vpop.permute.xlu0 %1596  ;;  %v1552_v38 = vpop.permute.xlu2 %1551 }
  0xe7   : > { %v2841_v23 = vpop.permute.xlu1 %1591 }
  0xe9   : > { %1198 = vmatmul.bf16.gmra.mxu2 %v2374_v60 }
  0xea   : > { %v2854_v34 = vpop.permute.xlu0 %1601  ;;  %v1537_v43 = vpop.permute.xlu2 %1536 }
  0xef   : > { %v2849_v29 = vpop.permute.xlu1 %1571 }
  0xf1   : > { %2344 = vmatmul.msk.bf16.gmra.mxu3 %vm799_vm0, %v2390_v63 }
  0xf2   : > { %v2857_v40 = vpop.permute.xlu0 %1566  ;;  %v1532_v50 = vpop.permute.xlu2 %1531 }
  0xf4   : > { %v2816_v3 = vpop.f32.mrf.mxu3 }
  0xf6   : > { %v843_v4 = vpop.f32.mrf.mxu1 }
  0xf7   : > { %v1547_v37 = vpop.permute.xlu1 %1546 }
  0xf9   : > { %1203 = vmatmul.bf16.gmra.mxu2 %v2375_v5 }
  0xfa   : > { %v1562_v47 = vpop.permute.xlu0 %1561 }
  0xfc   : > { %v855_v8 = vpop.f32.mrf.mxu3 }
  0xfd   : > { %v909_v48 = vpack.c.bf16 %v855_v8, %v2816_v3 }
  0xfe   : > { %v845_v10 = vpop.f32.mrf.mxu1 }
  0xff   : > { %v2859_v42 = vpop.permute.xlu1 %1242  ;;  %v907_v21 = vpack.c.bf16 %v845_v10, %v843_v4 }
 0x101   : > { %2345 = vmatmul.msk.bf16.gmra.mxu3 %vm799_vm0, %v2391_v9  ;;  %v833_v9 = vpop.f32.mrf.mxu0 }
 0x102   : > { %v2868_v55 = vpop.permute.xlu0 %1237 }
 0x104   : > { %v858_v13 = vpop.f32.mrf.mxu3 }
 0x107   : > { %v1527_v49 = vpop.permute.xlu1 %1526 }
 0x109   : > { %1208 = vmatmul.bf16.gmra.mxu2 %v2376_v15  ;;  %v835_v12 = vpop.f32.mrf.mxu0 }
 0x10a   : > { %v1542_v57 = vpop.permute.xlu0 %1541  ;;  %v905_v27 = vpack.c.bf16 %v835_v12, %v833_v9 }
 0x10c   : > { %v860_v19 = vpop.f32.mrf.mxu3 }
 0x10d   : > { %v910_v46 = vpack.c.bf16 %v860_v19, %v858_v13  ;;  %v848_v13 = vpop.f32.mrf.mxu1 }
 0x111   : > { %2346 = vmatmul.msk.bf16.gmra.mxu3 %vm799_vm0, %v2392_v20  ;;  %v838_v15 = vpop.f32.mrf.mxu0 }
 0x114   : > { %v863_v25 = vpop.f32.mrf.mxu3 }
 0x115   : > { %v850_v17 = vpop.f32.mrf.mxu1 }
 0x116   : > { %v908_v19 = vpack.c.bf16 %v850_v17, %v848_v13 }
 0x119   : > { %1213 = vmatmul.bf16.gmra.mxu2 %v2377_v26  ;;  %v840_v22 = vpop.f32.mrf.mxu0 }
 0x11c   : > { %v865_v30 = vpop.f32.mrf.mxu3 }
 0x11d   : > { %v911_v44 = vpack.c.bf16 %v865_v30, %v863_v25  ;;  %v906_v25 = vpack.c.bf16 %v840_v22, %v838_v15 }
 0x121   : > { %2347 = vmatmul.msk.bf16.gmra.mxu3 %vm799_vm0, %v2393_v32 }
 0x124   : > { %v868_v35 = vpop.f32.mrf.mxu3 }
 0x12c   : > { %v870_v39 = vpop.f32.mrf.mxu3  ;;  %v1179_v30 = vpop.f32.mrf.mxu2 }
 0x12d   : > { %v912_v41 = vpack.c.bf16 %v870_v39, %v868_v35 }
 0x12f   : > { %961 = vmatpush.bf16.msrb.mxu1 %v912_v41 }
 0x133   : > { %962 = vmatpush.bf16.msrb.mxu1 %v911_v44 }
 0x134   : > { %v1468_v45 = vpop.f32.mrf.mxu3  ;;  %v1181_v33 = vpop.f32.mrf.mxu2 }
 0x135   : > { %v2862_v52 = vmul.f32 %v1527_v49, %v1468_v45  ;;  %v2363_v49 = vld [vmem:[%s2746_s14 + $0x8] sm:$0xff] }
 0x137   : > { %963 = vmatpush.bf16.msrb.mxu1 %v910_v46 }
 0x13b   : > { %964 = vmatpush.bf16.msrb.mxu1 %v909_v48 }
 0x13c   : > { %v1470_v51 = vpop.f32.mrf.mxu3 }
 0x13d   : > { %v2864_v53 = vmul.f32 %v1532_v50, %v1470_v51 }
 0x13f   : > { %v1644_v54 = vpack.c.bf16 %v2864_v53, %v2862_v52  ;;  %965 = vmatpush.bf16.msrb.mxu1 %v908_v19 }
 0x143   : > { %966 = vmatpush.bf16.msrb.mxu1 %v907_v21 }
 0x144   : > { %v1473_v56 = vpop.f32.mrf.mxu3 }
 0x145   : > { %v2870_v59 = vmul.f32 %v1537_v43, %v1473_v56 }
 0x147   : > { %967 = vmatpush.bf16.msrb.mxu1 %v906_v25 }
 0x14b   : > { %968 = vmatpush.bf16.msrb.mxu1 %v905_v27 }
 0x14c   : > { %v1475_v58 = vpop.f32.mrf.mxu3 }
 0x14d   : > { %v2872_v60 = vmul.f32 %v1542_v57, %v1475_v58  ;;  %v1316_v57 = vsub.f32 %v1181_v33, %v2859_v42  ;;  %v1253_v42 = vpop.permute.xlu1 %1252 }
 0x14e   : > { %969 = vmatmul.bf16.vlgmr.msrb.gmra.mxu1 %v2362_v36 }
 0x14f   : > { %v1645_v61 = vpack.c.bf16 %v2872_v60, %v2870_v59  ;;  %v1333_v58 = vmul.f32 1.442695, %v1316_v57 }
 0x154   : > { %v1478_v62 = vpop.f32.mrf.mxu3 }
 0x155   : > { %v2876_v0 = vmul.f32 %v1547_v37, %v1478_v62  ;;  %v1184_v37 = vpop.f32.mrf.mxu2  ;;  %v2364_v62 = vld [vmem:[%s2746_s14 + $0x10] sm:$0xff] }
 0x15c   : > { %v1480_v63 = vpop.f32.mrf.mxu3 }
 0x15d   : > { %v2878_v1 = vmul.f32 %v1552_v38, %v1480_v63  ;;  %v1186_v46 = vpop.f32.mrf.mxu2 }
 0x15e   : > { %974 = vmatmul.bf16.gmra.mxu1 %v2363_v49 }
 0x15f   : > { %v1646_v2 = vpack.c.bf16 %v2878_v1, %v2876_v0  ;;  %v1318_v0 = vsub.f32 %v1186_v46, %v1253_v42  ;;  %v873_v42 = vld [vmem:[#allocation2 + $0x30] sm:$0xff] }
 0x161   : > { %v1337_v4 = vmul.f32 1.442695, %v1318_v0 }
 0x164   : > { %v1483_v3 = vpop.f32.mrf.mxu3 }
 0x165   : > { %v1610_v6 = vmul.f32 %v1557_v31, %v1483_v3  ;;  %v1189_v56 = vpop.f32.mrf.mxu2 }
 0x16c   : > { %v1485_v5 = vpop.f32.mrf.mxu3 }
 0x16d   : > { %v1611_v7 = vmul.f32 %v1562_v47, %v1485_v5  ;;  %v2365_v5 = vld [vmem:[%s2746_s14 + $0x18] sm:$0xff] }
 0x16e   : > { %979 = vmatmul.bf16.gmra.mxu1 %v2364_v62 }
 0x16f   : > { %v1647_v8 = vpack.c.bf16 %v1611_v7, %v1610_v6 }
 0x174   : > { %v1488_v11 = vpop.f32.mrf.mxu3 }
 0x17c   : > { %v1490_v14 = vpop.f32.mrf.mxu3 }
 0x17d   : > { %v1613_v51 = vmul.f32 %v2849_v29, %v1490_v14  ;;  %v1268_v14 = vpop.permute.xlu1 %1267 }
 0x17e   : > { %984 = vmatmul.bf16.gmra.mxu1 %v2365_v5 }
 0x184   : > { %v1493_v20 = vpop.f32.mrf.mxu3 }
 0x185   : > { %v1614_v50 = vmul.f32 %v2835_v18, %v1493_v20  ;;  %v1191_v18 = vpop.f32.mrf.mxu2 }
 0x18c   : > { %v1495_v26 = vpop.f32.mrf.mxu3 }
 0x18d   : > { %v1615_v47 = vmul.f32 %v2843_v24, %v1495_v26  ;;  %v1194_v3 = vpop.f32.mrf.mxu2  ;;  %v2367_v26 = vld [vmem:[%s2746_s14 + $0x28] sm:$0xff] }
 0x18e   : > { %v1321_v15 = vsub.f32 %v1194_v3, %v1268_v14  ;;  %v876_v14 = vld [vmem:[#allocation2 + $0x18] sm:$0xff] }
 0x190   : > { %v1343_v22 = vmul.f32 1.442695, %v1321_v15 }
 0x194   : > { %v1498_v31 = vpop.f32.mrf.mxu3 }
 0x195   : > { %v1616_v45 = vmul.f32 %v2832_v16, %v1498_v31  ;;  %v1315_v16 = vsub.f32 %v1179_v30, %v2868_v55  ;;  %v1248_v55 = vpop.permute.xlu0 %1247  ;;  %v1196_v60 = vpop.f32.mrf.mxu2 }
 0x196   : > { %v1317_v63 = vsub.f32 %v1184_v37, %v1248_v55 }
 0x197   : > { %v1331_v24 = vmul.f32 1.442695, %v1315_v16 }
 0x199   : > { %2462 = vpow2.f32 %v1331_v24 }
 0x19a   : > { %2464 = vpow2.f32 %v1333_v58 }
 0x19c   : > { %v1500_v32 = vpop.f32.mrf.mxu3 }
 0x19d   : > { %v1617_v43 = vmul.f32 %v2841_v23, %v1500_v32  ;;  %v1263_v6 = vpop.permute.xlu0 %1262 }
 0x19e   : > { %v1320_v7 = vsub.f32 %v1191_v18, %v1263_v6 }
 0x19f   : > { %v1650_v48 = vpack.c.bf16 %v1617_v43, %v1616_v45  ;;  %v2463_v29 = vpop.eup %2462  ;;  %v2368_v43 = vld [vmem:[%s2746_s14 + $0x30] sm:$0xff] }
 0x1a0   : > { %v1341_v52 = vmul.f32 1.442695, %v1320_v7 }
 0x1a4   : > { %v1503_v35 = vpop.f32.mrf.mxu3 }
 0x1a5   : > { %v1618_v39 = vmul.f32 %v2847_v28, %v1503_v35  ;;  %v1649_v28 = vpack.c.bf16 %v1615_v47, %v1614_v50  ;;  %v1278_v32 = vpop.permute.xlu0 %1277  ;;  %v1283_v35 = vpop.permute.xlu1 %1282 }
 0x1ac   : > { %v1505_v38 = vpop.f32.mrf.mxu3 }
 0x1ad   : > { %v1619_v41 = vmul.f32 %v2854_v34, %v1505_v38  ;;  %v1612_v34 = vmul.f32 %v2857_v40, %v1488_v11  ;;  %v2465_v40 = vpop.eup %2464  ;;  %v1199_v11 = vpop.f32.mrf.mxu2 }
 0x1ae   : > { %v1636_v1 = vpack.c.bf16 %v2465_v40, %v2463_v29  ;;  %v1323_v33 = vsub.f32 %v1199_v11, %v1278_v32  ;;  %v1298_v58 = vpop.permute.xlu1 %1297 }
 0x1af   : > { %v1651_v44 = vpack.c.bf16 %v1619_v41, %v1618_v39  ;;  %v1648_v23 = vpack.c.bf16 %v1613_v51, %v1612_v34 }
 0x1b0   : > { %v1347_v38 = vmul.f32 1.442695, %v1323_v33  ;;  %v1621_v33 = vld [vmem:[#allocation3 + $0x68] sm:$0xff] }
 0x1b1   : > { %1652 = vmatpush.bf16.msrb.mxu0 %v1651_v44 }
 0x1b5   : > { %1653 = vmatpush.bf16.msrb.mxu0 %v1650_v48  ;;  %v1201_v20 = vpop.f32.mrf.mxu2  ;;  %v1293_v48 = vpop.permute.xlu0 %1292 }
 0x1b6   : > { %v1324_v36 = vsub.f32 %v1201_v20, %v1283_v35 }
 0x1b8   : > { %v1349_v39 = vmul.f32 1.442695, %v1324_v36 }
 0x1b9   : > { %1654 = vmatpush.bf16.msrb.mxu0 %v1649_v28 }
 0x1bd   : > { %1655 = vmatpush.bf16.msrb.mxu0 %v1648_v23  ;;  %v1204_v27 = vpop.f32.mrf.mxu2  ;;  %v2369_v23 = vld [vmem:[%s2746_s14 + $0x38] sm:$0xff]  ;;  %v1308_v5 = vpop.permute.xlu0 %1307 }
 0x1c1   : > { %1656 = vmatpush.bf16.msrb.mxu0 %v1647_v8  ;;  %v1258_v8 = vpop.permute.xlu2 %1257 }
 0x1c2   : > { %v1319_v9 = vsub.f32 %v1189_v56, %v1258_v8 }
 0x1c4   : > { %v1339_v53 = vmul.f32 1.442695, %v1319_v9 }
 0x1c5   : > { %1657 = vmatpush.bf16.msrb.mxu0 %v1646_v2  ;;  %v1335_v2 = vmul.f32 1.442695, %v1317_v63  ;;  %v1206_v41 = vpop.f32.mrf.mxu2 }
 0x1c6   : > { %v1326_v50 = vsub.f32 %v1206_v41, %v1293_v48  ;;  %v1622_v41 = vld [vmem:[#allocation3 + $0x10] sm:$0xff]  ;;  %v1623_v48 = vld [vmem:[#allocation3 + $0x40] sm:$0xff] }
 0x1c7   : > { %2466 = vpow2.f32 %v1335_v2 }
 0x1c8   : > { %2468 = vpow2.f32 %v1337_v4  ;;  %v1353_v34 = vmul.f32 1.442695, %v1326_v50 }
 0x1c9   : > { %1658 = vmatpush.bf16.msrb.mxu0 %v1645_v61  ;;  %2470 = vpow2.f32 %v1341_v52  ;;  %v1273_v17 = vpop.permute.xlu2 %1272 }
 0x1ca   : > { %2472 = vpow2.f32 %v1339_v53  ;;  %v1322_v19 = vsub.f32 %v1196_v60, %v1273_v17 }
 0x1cb   : > { %2474 = vpow2.f32 %v1343_v22  ;;  %v970_v0 = vpop.f32.mrf.mxu1 }
 0x1cc   : > { %v1345_v25 = vmul.f32 1.442695, %v1322_v19 }
 0x1cd   : > { %1659 = vmatpush.bf16.msrb.mxu0 %v1644_v54  ;;  %v2467_v59 = vpop.eup %2466  ;;  %v2366_v54 = vld [vmem:[%s2746_s14 + $0x20] sm:$0xff]  ;;  %v1209_v47 = vpop.f32.mrf.mxu2 }
 0x1ce   : > { %v2469_v61 = vpop.eup %2468  ;;  %989 = vmatmul.bf16.gmra.mxu1 %v2366_v54  ;;  %2476 = vpow2.f32 %v1345_v25  ;;  %v1327_v62 = vsub.f32 %v1209_v47, %v1298_v58  ;;  %v875_v54 = vld [vmem:[#allocation2 + $0x58] sm:$0xff]  ;;  %v1620_v25 = vld [vmem:[#allocation3 + $0x28] sm:$0xff] }
 0x1cf   : > { %v1637_v10 = vpack.c.bf16 %v2469_v61, %v2467_v59  ;;  %v2471_v12 = vpop.eup %2470  ;;  %2478 = vpow2.f32 %v1347_v38  ;;  %v1313_v59 = vpop.permute.xlu1 %1312  ;;  %v874_v61 = vld [vmem:[#allocation2] sm:$0xff]  ;;  %v879_v38 = vld [vmem:[#allocation2 + $0x8] sm:$0xff] }
 0x1d0   : > { %1660 = vmatmul.bf16.vlgmr.msrb.gmra.mxu0 %v1636_v1  ;;  %v2473_v13 = vpop.eup %2472  ;;  %2480 = vpow2.f32 %v1349_v39  ;;  %v1355_v40 = vmul.f32 1.442695, %v1327_v62  ;;  %v1010_v1 = vadd.f32 %v970_v0, %v873_v42  ;;  %v1625_v62 = vld [vmem:[#allocation3 + $0x30] sm:$0xff] }
 0x1d1   : > { %v1638_v21 = vpack.c.bf16 %v2471_v12, %v2473_v13  ;;  %v2475_v30 = vpop.eup %2474  ;;  %v1288_v46 = vpop.permute.xlu2 %1287  ;;  %v1626_v42 = vld [vmem:[#allocation3 + $0x70] sm:$0xff] }
 0x1d2   : > { %v1325_v49 = vsub.f32 %v1204_v27, %v1288_v46  ;;  %1026 = vst [vmem:[#allocation2 + $0x30] sm:$0xff] %v1010_v1  ;;  %v878_v27 = vld [vmem:[#allocation2 + $0x68] sm:$0xff]  ;;  %v884_v1 = vld [vmem:[#allocation2 + $0x38] sm:$0xff] }
 0x1d3   : > { %v972_v6 = vpop.f32.mrf.mxu1 }
 0x1d4   : > { %v2477_v31 = vpop.eup %2476  ;;  %v1351_v28 = vmul.f32 1.442695, %v1325_v49  ;;  %v1011_v8 = vadd.f32 %v972_v6, %v874_v61  ;;  %v885_v6 = vld [vmem:[#allocation2 + $0x60] sm:$0xff] }
 0x1d5   : > { %v1639_v37 = vpack.c.bf16 %v2477_v31, %v2475_v30  ;;  %v2479_v44 = vpop.eup %2478  ;;  %v1211_v16 = vpop.f32.mrf.mxu2 }
 0x1d6   : > { %v2481_v45 = vpop.eup %2480  ;;  %2482 = vpow2.f32 %v1351_v28  ;;  %1027 = vst [vmem:[#allocation2] sm:$0xff] %v1011_v8  ;;  %v881_v28 = vld [vmem:[#allocation2 + $0x40] sm:$0xff] }
 0x1d7   : > { %v1640_v51 = vpack.c.bf16 %v2481_v45, %v2479_v44  ;;  %2484 = vpow2.f32 %v1353_v34  ;;  %v880_v44 = vld [vmem:[#allocation2 + $0x48] sm:$0xff]  ;;  %v1628_v8 = vld [vmem:[#allocation3 + $0x20] sm:$0xff] }
 0x1d8   : > { %2486 = vpow2.f32 %v1355_v40 }
 0x1d9   : > { %v1303_v57 = vpop.permute.xlu2 %1302 }
 0x1da   : > { %v1328_v18 = vsub.f32 %v1211_v16, %v1303_v57 }
 0x1db   : > { %v975_v53 = vpop.f32.mrf.mxu1 }
 0x1dc   : > { %v2483_v56 = vpop.eup %2482  ;;  %v1357_v63 = vmul.f32 1.442695, %v1328_v18  ;;  %v1012_v11 = vadd.f32 %v975_v53, %v875_v54 }
 0x1dd   : > { %v2485_v24 = vpop.eup %2484  ;;  %v1214_v55 = vpop.f32.mrf.mxu2 }
 0x1de   : > { %994 = vmatmul.bf16.gmra.mxu1 %v2367_v26  ;;  %v1641_v29 = vpack.c.bf16 %v2485_v24, %v2483_v56  ;;  %2488 = vpow2.f32 %v1357_v63  ;;  %v2487_v3 = vpop.eup %2486  ;;  %v1329_v9 = vsub.f32 %v1214_v55, %v1308_v5  ;;  %1028 = vst [vmem:[#allocation2 + $0x58] sm:$0xff] %v1012_v11  ;;  %v882_v56 = vld [vmem:[#allocation2 + $0x20] sm:$0xff]  ;;  %v883_v55 = vld [vmem:[#allocation2 + $0x10] sm:$0xff]  ;;  %v1627_v5 = vld [vmem:[#allocation3 + $0x38] sm:$0xff] }
 0x1df   : > { %v1629_v11 = vld [vmem:[#allocation3 + $0x78] sm:$0xff] }
 0x1e0   : > { %1665 = vmatmul.bf16.gmra.mxu0 %v1637_v10  ;;  %v1359_v52 = vmul.f32 1.442695, %v1329_v9 }
 0x1e3   : > { %v977_v15 = vpop.f32.mrf.mxu1 }
 0x1e4   : > { %v2489_v4 = vpop.eup %2488  ;;  %v1013_v19 = vadd.f32 %v977_v15, %v876_v14  ;;  %v887_v15 = vld [vmem:[#allocation2 + $0x78] sm:$0xff] }
 0x1e5   : > { %v1216_v2 = vpop.f32.mrf.mxu2  ;;  %v1642_v7 = vpack.c.bf16 %v2489_v4, %v2487_v3 }
 0x1e6   : > { %v1330_v60 = vsub.f32 %v1216_v2, %v1313_v59  ;;  %1029 = vst [vmem:[#allocation2 + $0x18] sm:$0xff] %v1013_v19  ;;  %v1630_v19 = vld [vmem:[#allocation3 + $0x18] sm:$0xff] }
 0x1e8   : > { %v1361_v10 = vmul.f32 1.442695, %v1330_v60 }
 0x1ea   : > { %2490 = vpow2.f32 %v1361_v10  ;;  %v886_v10 = vld [vmem:[#allocation2 + $0x70] sm:$0xff] }
 0x1eb   : > { %2492 = vpow2.f32 %v1359_v52  ;;  %v980_v20 = vpop.f32.mrf.mxu1 }
 0x1ee   : > { %999 = vmatmul.bf16.gmra.mxu1 %v2368_v43 }
 0x1f0   : > { %1670 = vmatmul.bf16.gmra.mxu0 %v1638_v21  ;;  %v2491_v12 = vpop.eup %2490  ;;  %v877_v21 = vld [vmem:[#allocation2 + $0x50] sm:$0xff] }
 0x1f1   : > { %v2493_v13 = vpop.eup %2492  ;;  %v1014_v22 = vadd.f32 %v980_v20, %v877_v21  ;;  %v888_v21 = vld [vmem:[#allocation2 + $0x28] sm:$0xff] }
 0x1f2   : > { %v1643_v17 = vpack.c.bf16 %v2491_v12, %v2493_v13 }
 0x1f3   : > { %1030 = vst [vmem:[#allocation2 + $0x50] sm:$0xff] %v1014_v22  ;;  %v982_v30 = vpop.f32.mrf.mxu1 }
 0x1f4   : > { %v1015_v32 = vadd.f32 %v982_v30, %v878_v27  ;;  %v1631_v27 = vld [vmem:[#allocation3 + $0x58] sm:$0xff] }
 0x1f6   : > { %1031 = vst [vmem:[#allocation2 + $0x68] sm:$0xff] %v1015_v32  ;;  %v1632_v32 = vld [vmem:[#allocation3] sm:$0xff] }
 0x1fb   : > { %v985_v36 = vpop.f32.mrf.mxu1 }
 0x1fc   : > { %v1016_v39 = vadd.f32 %v985_v36, %v879_v38  ;;  %v1633_v36 = vld [vmem:[#allocation3 + $0x8] sm:$0xff] }
 0x1fe   : > { %1004 = vmatmul.bf16.gmra.mxu1 %v2369_v23  ;;  %1032 = vst [vmem:[#allocation2 + $0x8] sm:$0xff] %v1016_v39  ;;  %v1624_v23 = vld [vmem:[#allocation3 + $0x48] sm:$0xff]  ;;  %v1634_v39 = vld [vmem:[#allocation3 + $0x60] sm:$0xff] }
 0x200   : > { %1675 = vmatmul.bf16.gmra.mxu0 %v1639_v37 }
 0x203   : > { %v987_v45 = vpop.f32.mrf.mxu1 }
 0x204   : > { %v1017_v47 = vadd.f32 %v987_v45, %v880_v44  ;;  %v1635_v44 = vld [vmem:[#allocation3 + $0x50] sm:$0xff] }
 0x206   : > { %1033 = vst [vmem:[#allocation2 + $0x48] sm:$0xff] %v1017_v47 }
 0x210   : > { %1680 = vmatmul.bf16.gmra.mxu0 %v1640_v51 }
 0x220   : > { %1685 = vmatmul.bf16.gmra.mxu0 %v1641_v29 }
 0x230   : > { %1690 = vmatmul.bf16.gmra.mxu0 %v1642_v7 }
 0x240   : > { %1695 = vmatmul.bf16.gmra.mxu0 %v1643_v17 }
 0x24b   : > { %v990_v50 = vpop.f32.mrf.mxu1 }
 0x24c   : > { %v1018_v34 = vadd.f32 %v990_v50, %v881_v28 }
 0x24d   : > { %v1661_v26 = vpop.f32.mrf.mxu0 }
 0x24e   : > { %v1701_v31 = vadd.f32 %v1661_v26, %v1620_v25  ;;  %1034 = vst [vmem:[#allocation2 + $0x40] sm:$0xff] %v1018_v34 }
 0x250   : > { %1717 = vst [vmem:[#allocation3 + $0x28] sm:$0xff] %v1701_v31 }
 0x253   : > { %v992_v57 = vpop.f32.mrf.mxu1 }
 0x254   : > { %v1019_v58 = vadd.f32 %v992_v57, %v882_v56 }
 0x255   : > { %v1663_v35 = vpop.f32.mrf.mxu0 }
 0x256   : > { %v1702_v37 = vadd.f32 %v1663_v35, %v1621_v33  ;;  %1035 = vst [vmem:[#allocation2 + $0x20] sm:$0xff] %v1019_v58 }
 0x258   : > { %1718 = vst [vmem:[#allocation3 + $0x68] sm:$0xff] %v1702_v37 }
 0x25b   : > { %v995_v29 = vpop.f32.mrf.mxu1 }
 0x25c   : > { %v1020_v63 = vadd.f32 %v995_v29, %v883_v55 }
 0x25d   : > { %v1666_v43 = vpop.f32.mrf.mxu0 }
 0x25e   : > { %v1703_v46 = vadd.f32 %v1666_v43, %v1622_v41  ;;  %1036 = vst [vmem:[#allocation2 + $0x10] sm:$0xff] %v1020_v63 }
 0x260   : > { %1719 = vst [vmem:[#allocation3 + $0x10] sm:$0xff] %v1703_v46 }
 0x263   : > { %v997_v3 = vpop.f32.mrf.mxu1 }
 0x264   : > { %v1021_v4 = vadd.f32 %v997_v3, %v884_v1 }
 0x265   : > { %v1668_v49 = vpop.f32.mrf.mxu0 }
 0x266   : > { %v1704_v51 = vadd.f32 %v1668_v49, %v1623_v48  ;;  %1037 = vst [vmem:[#allocation2 + $0x38] sm:$0xff] %v1021_v4 }
 0x268   : > { %1720 = vst [vmem:[#allocation3 + $0x40] sm:$0xff] %v1704_v51 }
 0x26b   : > { %v1000_v60 = vpop.f32.mrf.mxu1 }
 0x26c   : > { %v1022_v7 = vadd.f32 %v1000_v60, %v885_v6 }
 0x26d   : > { %v1671_v16 = vpop.f32.mrf.mxu0 }
 0x26e   : > { %v1705_v24 = vadd.f32 %v1671_v16, %v1624_v23  ;;  %1038 = vst [vmem:[#allocation2 + $0x60] sm:$0xff] %v1022_v7 }
 0x270   : > { %1721 = vst [vmem:[#allocation3 + $0x48] sm:$0xff] %v1705_v24 }
 0x273   : > { %v1002_v52 = vpop.f32.mrf.mxu1 }
 0x274   : > { %v1023_v54 = vadd.f32 %v1002_v52, %v886_v10 }
 0x275   : > { %v1673_v18 = vpop.f32.mrf.mxu0 }
 0x276   : > { %v1706_v40 = vadd.f32 %v1673_v18, %v1625_v62  ;;  %1039 = vst [vmem:[#allocation2 + $0x70] sm:$0xff] %v1023_v54 }
 0x278   : > { %1722 = vst [vmem:[#allocation3 + $0x30] sm:$0xff] %v1706_v40 }
 0x27b   : > { %v1005_v13 = vpop.f32.mrf.mxu1 }
 0x27c   : > { %v1024_v17 = vadd.f32 %v1005_v13, %v887_v15 }
 0x27d   : > { %v1676_v0 = vpop.f32.mrf.mxu0 }
 0x27e   : > { %v1707_v2 = vadd.f32 %v1676_v0, %v1626_v42  ;;  %1040 = vst [vmem:[#allocation2 + $0x78] sm:$0xff] %v1024_v17 }
 0x280   : > { %1723 = vst [vmem:[#allocation3 + $0x70] sm:$0xff] %v1707_v2 }
 0x283   : > { %v1007_v22 = vpop.f32.mrf.mxu1 }
 0x284   : > { %v1025_v26 = vadd.f32 %v1007_v22, %v888_v21 }
 0x285   : > { %v1678_v59 = vpop.f32.mrf.mxu0 }
 0x286   : > { %v1708_v61 = vadd.f32 %v1678_v59, %v1627_v5  ;;  %1041 = vst [vmem:[#allocation2 + $0x28] sm:$0xff] %v1025_v26 }
 0x288   : > { %1724 = vst [vmem:[#allocation3 + $0x38] sm:$0xff] %v1708_v61 }
 0x28d   : > { %v1681_v9 = vpop.f32.mrf.mxu0 }
 0x28e   : > { %v1709_v53 = vadd.f32 %v1681_v9, %v1628_v8 }
 0x290   : > { %1725 = vst [vmem:[#allocation3 + $0x20] sm:$0xff] %v1709_v53 }
 0x295   : > { %v1683_v12 = vpop.f32.mrf.mxu0 }
 0x296   : > { %v1710_v14 = vadd.f32 %v1683_v12, %v1629_v11 }
 0x298   : > { %1726 = vst [vmem:[#allocation3 + $0x78] sm:$0xff] %v1710_v14 }
 0x29d   : > { %v1686_v20 = vpop.f32.mrf.mxu0 }
 0x29e   : > { %v1711_v25 = vadd.f32 %v1686_v20, %v1630_v19 }
 0x2a0   : > { %1727 = vst [vmem:[#allocation3 + $0x18] sm:$0xff] %v1711_v25 }
 0x2a5   : > { %v1688_v30 = vpop.f32.mrf.mxu0 }
 0x2a6   : > { %v1712_v31 = vadd.f32 %v1688_v30, %v1631_v27 }
 0x2a8   : > { %1728 = vst [vmem:[#allocation3 + $0x58] sm:$0xff] %v1712_v31 }
 0x2ad   : > { %v1691_v33 = vpop.f32.mrf.mxu0 }
 0x2ae   : > { %v1713_v35 = vadd.f32 %v1691_v33, %v1632_v32 }
 0x2b0   : > { %1729 = vst [vmem:[#allocation3] sm:$0xff] %v1713_v35 }
 0x2b5   : > { %v1693_v37 = vpop.f32.mrf.mxu0 }
 0x2b6   : > { %v1714_v38 = vadd.f32 %v1693_v37, %v1633_v36 }
 0x2b8   : > { %1730 = vst [vmem:[#allocation3 + $0x8] sm:$0xff] %v1714_v38 }
 0x2bd   : > { %v1696_v41 = vpop.f32.mrf.mxu0 }
 0x2be   : > { %v1715_v43 = vadd.f32 %v1696_v41, %v1634_v39 }
 0x2c0   : > { %1731 = vst [vmem:[#allocation3 + $0x60] sm:$0xff] %v1715_v43 }
 0x2c4   : > { %1736 = sbr.rel (%p2348_p13) target bundleno = 880 (0x370), region = 117 }
 0x2c5   : > { %v1698_v45 = vpop.f32.mrf.mxu0 }
 0x2c6   : > { %v1716_v46 = vadd.f32 %v1698_v45, %v1635_v44 }
 0x2c8   : > { %1732 = vst [vmem:[#allocation3 + $0x50] sm:$0xff] %v1716_v46 }
 0x2c9   : > { %v1777_v47 = vld [vmem:[%s2719_s9 + $0x20] sm:$0xff]  ;;  %v1775_v48 = vld [vmem:[%s2719_s9 + $0x10] sm:$0xff]  ;;  %v2557_v50 = vmov 0   ;;  %v1778_v51 = vld [vmem:[%s2719_s9 + $0x28] sm:$0xff] }
 0x2ca   : > { %v1773_v49 = vld [vmem:[%s2719_s9] sm:$0xff]  ;;  %2496 = vset.pattern.permute.xlu2 %v2557_v50  ;;  %2495 = vset.pattern.permute.xlu1 %v2557_v50  ;;  %v1776_v28 = vld [vmem:[%s2719_s9 + $0x18] sm:$0xff]  ;;  %v1774_v34 = vld [vmem:[%s2719_s9 + $0x8] sm:$0xff] }
 0x2cb   : > { %2494 = vset.pattern.permute.xlu0 %v2557_v50  ;;  %1827 = vperm.xlu2 %2496, %v1777_v47   ;;  %v1781_v23 = vld [vmem:[%s2719_s9 + $0x40] sm:$0xff]  ;;  %v1780_v16 = vld [vmem:[%s2719_s9 + $0x38] sm:$0xff]  ;;  %v1779_v56 = vld [vmem:[%s2719_s9 + $0x30] sm:$0xff] }
 0x2cc   : > { %1817 = vperm.xlu1 %2495, %v1775_v48   ;;  %1807 = vperm.xlu0 %2494, %v1773_v49   ;;  %v1784_v57 = vld [vmem:[%s2719_s9 + $0x58] sm:$0xff]  ;;  %v1783_v24 = vld [vmem:[%s2719_s9 + $0x50] sm:$0xff]  ;;  %v1782_v58 = vld [vmem:[%s2719_s9 + $0x48] sm:$0xff] }
 0x2cd   : > { %v1787_v62 = vld [vmem:[%s2719_s9 + $0x70] sm:$0xff]  ;;  %v1786_v18 = vld [vmem:[%s2719_s9 + $0x68] sm:$0xff]  ;;  %v1785_v29 = vld [vmem:[%s2719_s9 + $0x60] sm:$0xff] }
 0x2ce   : > { %v1788_v40 = vld [vmem:[%s2719_s9 + $0x78] sm:$0xff]  ;;  %v1793_v55 = vld [vmem:[#allocation3 + $0x48] sm:$0xff]  ;;  %v1741_v63 = vld [vmem:[#allocation2 + $0x50] sm:$0xff] }
 0x2cf   : > { %v2926_v42 = vld [vmem:[%s3033_s3] ss:$0 sm:$0xff]  ;;  %v1794_v59 = vld [vmem:[#allocation3 + $0x30] sm:$0xff]  ;;  %v1742_v60 = vld [vmem:[#allocation2 + $0x68] sm:$0xff] }
 0x2d0   : > { %v2931_v1 = vld [vmem:[%s3034_s20] ss:$0 sm:$0xff]  ;;  %v1761_v3 = vadd.f32 %v2926_v42, %v1741_v63  ;;  %v1762_v7 = vadd.f32 %v2926_v42, %v1742_v60  ;;  %v1800_v17 = vld [vmem:[#allocation3 + $0x58] sm:$0xff]  ;;  %v1789_v20 = vld [vmem:[#allocation3 + $0x28] sm:$0xff] }
 0x2d1   : > { %v1797_v52 = vld [vmem:[#allocation3 + $0x20] sm:$0xff]  ;;  %v1748_v19 = vld [vmem:[#allocation2 + $0x38] sm:$0xff]  ;;  %v1791_v22 = vld [vmem:[#allocation3 + $0x10] sm:$0xff] }
 0x2d2   : > { %v1745_v53 = vld [vmem:[#allocation2 + $0x40] sm:$0xff]  ;;  %v1739_v25 = vld [vmem:[#allocation2 + $0x58] sm:$0xff]  ;;  %v1737_v26 = vld [vmem:[#allocation2 + $0x30] sm:$0xff]  ;;  %v1768_v30 = vadd.f32 %v2926_v42, %v1748_v19 }
 0x2d3   : > { %1832 = vperm.xlu2 %2496, %v1778_v51   ;;  %v1765_v12 = vadd.f32 %v2926_v42, %v1745_v53  ;;  %v1759_v35 = vadd.f32 %v2926_v42, %v1739_v25  ;;  %v1757_v37 = vadd.f32 %v2926_v42, %v1737_v26  ;;  %v1803_v47 = vld [vmem:[#allocation3 + $0x60] sm:$0xff]  ;;  %v1751_v48 = vld [vmem:[#allocation2 + $0x78] sm:$0xff] }
 0x2d4   : > { %1822 = vperm.xlu1 %2495, %v1776_v28   ;;  %1812 = vperm.xlu0 %2494, %v1774_v34   ;;  %v1792_v49 = vld [vmem:[#allocation3 + $0x40] sm:$0xff]  ;;  %v1740_v51 = vld [vmem:[#allocation2 + $0x18] sm:$0xff]  ;;  %v1790_v28 = vld [vmem:[#allocation3 + $0x68] sm:$0xff] }
 0x2d5   : > { %v1738_v34 = vld [vmem:[#allocation2] sm:$0xff]  ;;  %v1799_v19 = vld [vmem:[#allocation3 + $0x18] sm:$0xff] }
 0x2db   : > { %1847 = vperm.xlu2 %2496, %v1781_v23  }
 0x2dc   : > { %1842 = vperm.xlu1 %2495, %v1780_v16   ;;  %1837 = vperm.xlu0 %2494, %v1779_v56  }
 0x2e3   : > { %1862 = vperm.xlu2 %2496, %v1784_v57   ;;  %v1771_v57 = vadd.f32 %v2926_v42, %v1751_v48 }
 0x2e4   : > { %1857 = vperm.xlu1 %2495, %v1783_v24   ;;  %1852 = vperm.xlu0 %2494, %v1782_v58  }
 0x2eb   : > { %1877 = vperm.xlu2 %2496, %v1787_v62  }
 0x2ec   : > { %1872 = vperm.xlu1 %2495, %v1786_v18   ;;  %1867 = vperm.xlu0 %2494, %v1785_v29   ;;  %v1760_v18 = vadd.f32 %v2926_v42, %v1740_v51 }
 0x2f4   : > { %1882 = vperm.xlu0 %2494, %v1788_v40   ;;  %v1758_v40 = vadd.f32 %v2926_v42, %v1738_v34 }
 0x325   : > { %v1828_v0 = vpop.permute.xlu2 %1827 }
 0x326   : > { %v1889_v2 = vmul.f32 %v1828_v0, %v1793_v55 }
 0x328   : > { %v1909_v4 = vadd.f32 %v2931_v1, %v1889_v2 }
 0x32a   : > { %v1925_v5 = vadd.f32 %v1909_v4, %v1761_v3 }
 0x32c   : > { %v1941_v61 = vmul.f32 0.5, %v1925_v5 }
 0x32d   : > { %v1833_v6 = vpop.permute.xlu2 %1832 }
 0x32e   : > { %1957 = vst [vmem:[%s2724_s11 + $0x20] sm:$0xff] %v1941_v61  ;;  %v1890_v8 = vmul.f32 %v1833_v6, %v1794_v59  ;;  %v1796_v59 = vld [vmem:[#allocation3 + $0x38] sm:$0xff]  ;;  %v1744_v61 = vld [vmem:[#allocation2 + $0x48] sm:$0xff]  ;;  %v1795_v6 = vld [vmem:[#allocation3 + $0x70] sm:$0xff] }
 0x32f   : > { %v1764_v53 = vadd.f32 %v2926_v42, %v1744_v61 }
 0x330   : > { %v1910_v9 = vadd.f32 %v2931_v1, %v1890_v8 }
 0x332   : > { %v1926_v10 = vadd.f32 %v1910_v9, %v1762_v7  ;;  %v1743_v7 = vld [vmem:[#allocation2 + $0x8] sm:$0xff] }
 0x334   : > { %v1942_v54 = vmul.f32 0.5, %v1926_v10 }
 0x335   : > { %v1848_v11 = vpop.permute.xlu2 %1847 }
 0x336   : > { %1958 = vst [vmem:[%s2724_s11 + $0x28] sm:$0xff] %v1942_v54  ;;  %v1893_v13 = vmul.f32 %v1848_v11, %v1797_v52  ;;  %v1763_v11 = vadd.f32 %v2926_v42, %v1743_v7 }
 0x338   : > { %v1913_v14 = vadd.f32 %v2931_v1, %v1893_v13 }
 0x33a   : > { %v1929_v15 = vadd.f32 %v1913_v14, %v1765_v12 }
 0x33c   : > { %v1945_v21 = vmul.f32 0.5, %v1929_v15 }
 0x33d   : > { %v1863_v27 = vpop.permute.xlu2 %1862 }
 0x33e   : > { %1961 = vst [vmem:[%s2724_s11 + $0x40] sm:$0xff] %v1945_v21  ;;  %v1896_v31 = vmul.f32 %v1863_v27, %v1800_v17  ;;  %v1818_v32 = vpop.permute.xlu1 %1817  ;;  %v1808_v33 = vpop.permute.xlu0 %1807  ;;  %v1798_v21 = vld [vmem:[#allocation3 + $0x78] sm:$0xff] }
 0x33f   : > { %v1887_v36 = vmul.f32 %v1818_v32, %v1791_v22  ;;  %v1885_v38 = vmul.f32 %v1808_v33, %v1789_v20  ;;  %v1747_v20 = vld [vmem:[#allocation2 + $0x10] sm:$0xff]  ;;  %v1746_v22 = vld [vmem:[#allocation2 + $0x20] sm:$0xff] }
 0x340   : > { %v1916_v39 = vadd.f32 %v2931_v1, %v1896_v31  ;;  %v1767_v31 = vadd.f32 %v2926_v42, %v1747_v20  ;;  %v1766_v33 = vadd.f32 %v2926_v42, %v1746_v22 }
 0x341   : > { %v1907_v41 = vadd.f32 %v2931_v1, %v1887_v36  ;;  %v1905_v43 = vadd.f32 %v2931_v1, %v1885_v38 }
 0x342   : > { %v1932_v44 = vadd.f32 %v1916_v39, %v1768_v30 }
 0x343   : > { %v1923_v45 = vadd.f32 %v1907_v41, %v1759_v35  ;;  %v1921_v46 = vadd.f32 %v1905_v43, %v1757_v37  ;;  %v1802_v41 = vld [vmem:[#allocation3 + $0x8] sm:$0xff]  ;;  %v1750_v43 = vld [vmem:[#allocation2 + $0x70] sm:$0xff] }
 0x344   : > { %v1948_v50 = vmul.f32 0.5, %v1932_v44  ;;  %v1801_v44 = vld [vmem:[#allocation3] sm:$0xff] }
 0x345   : > { %v1939_v23 = vmul.f32 0.5, %v1923_v45  ;;  %v1937_v16 = vmul.f32 0.5, %v1921_v46  ;;  %v1878_v56 = vpop.permute.xlu2 %1877  ;;  %v1749_v45 = vld [vmem:[#allocation2 + $0x60] sm:$0xff] }
 0x346   : > { %1964 = vst [vmem:[%s2724_s11 + $0x58] sm:$0xff] %v1948_v50  ;;  %v1899_v24 = vmul.f32 %v1878_v56, %v1803_v47  ;;  %v1823_v58 = vpop.permute.xlu1 %1822  ;;  %v1813_v62 = vpop.permute.xlu0 %1812  ;;  %v1770_v50 = vadd.f32 %v2926_v42, %v1750_v43 }
 0x347   : > { %1955 = vst [vmem:[%s2724_s11 + $0x10] sm:$0xff] %v1939_v23  ;;  %v1888_v29 = vmul.f32 %v1823_v58, %v1792_v49  ;;  %v1886_v55 = vmul.f32 %v1813_v62, %v1790_v28  ;;  %v1769_v28 = vadd.f32 %v2926_v42, %v1749_v45  ;;  %v1752_v58 = vld [vmem:[#allocation2 + $0x28] sm:$0xff] }
 0x348   : > { %1953 = vst [vmem:[%s2724_s11] sm:$0xff] %v1937_v16  ;;  %v1919_v63 = vadd.f32 %v2931_v1, %v1899_v24  ;;  %v1804_v24 = vld [vmem:[#allocation3 + $0x50] sm:$0xff] }
 0x349   : > { %v1908_v0 = vadd.f32 %v2931_v1, %v1888_v29  ;;  %v1906_v3 = vadd.f32 %v2931_v1, %v1886_v55 }
 0x34a   : > { %v1935_v2 = vadd.f32 %v1919_v63, %v1771_v57 }
 0x34b   : > { %v1924_v4 = vadd.f32 %v1908_v0, %v1760_v18  ;;  %v1922_v5 = vadd.f32 %v1906_v3, %v1758_v40  ;;  %v1772_v40 = vadd.f32 %v2926_v42, %v1752_v58 }
 0x34c   : > { %v1951_v60 = vmul.f32 0.5, %v1935_v2 }
 0x34d   : > { %v1940_v8 = vmul.f32 0.5, %v1924_v4  ;;  %v1938_v9 = vmul.f32 0.5, %v1922_v5 }
 0x34e   : > { %1967 = vst [vmem:[%s2724_s11 + $0x70] sm:$0xff] %v1951_v60  ;;  %v1843_v10 = vpop.permute.xlu1 %1842  ;;  %v1838_v52 = vpop.permute.xlu0 %1837 }
 0x34f   : > { %1956 = vst [vmem:[%s2724_s11 + $0x18] sm:$0xff] %v1940_v8  ;;  %v1892_v54 = vmul.f32 %v1843_v10, %v1796_v59  ;;  %v1891_v12 = vmul.f32 %v1838_v52, %v1795_v6 }
 0x350   : > { %1954 = vst [vmem:[%s2724_s11 + $0x8] sm:$0xff] %v1938_v9 }
 0x351   : > { %v1912_v13 = vadd.f32 %v2931_v1, %v1892_v54  ;;  %v1911_v14 = vadd.f32 %v2931_v1, %v1891_v12 }
 0x353   : > { %v1928_v15 = vadd.f32 %v1912_v13, %v1764_v53  ;;  %v1927_v17 = vadd.f32 %v1911_v14, %v1763_v11 }
 0x355   : > { %v1944_v25 = vmul.f32 0.5, %v1928_v15  ;;  %v1943_v26 = vmul.f32 0.5, %v1927_v17 }
 0x356   : > { %v1858_v27 = vpop.permute.xlu1 %1857  ;;  %v1853_v30 = vpop.permute.xlu0 %1852 }
 0x357   : > { %1960 = vst [vmem:[%s2724_s11 + $0x38] sm:$0xff] %v1944_v25  ;;  %v1895_v32 = vmul.f32 %v1858_v27, %v1799_v19  ;;  %v1894_v35 = vmul.f32 %v1853_v30, %v1798_v21 }
 0x358   : > { %1959 = vst [vmem:[%s2724_s11 + $0x30] sm:$0xff] %v1943_v26 }
 0x359   : > { %v1915_v36 = vadd.f32 %v2931_v1, %v1895_v32  ;;  %v1914_v37 = vadd.f32 %v2931_v1, %v1894_v35 }
 0x35b   : > { %v1931_v38 = vadd.f32 %v1915_v36, %v1767_v31  ;;  %v1930_v39 = vadd.f32 %v1914_v37, %v1766_v33 }
 0x35d   : > { %v1947_v46 = vmul.f32 0.5, %v1931_v38  ;;  %v1946_v47 = vmul.f32 0.5, %v1930_v39 }
 0x35e   : > { %v1873_v48 = vpop.permute.xlu1 %1872  ;;  %v1868_v49 = vpop.permute.xlu0 %1867 }
 0x35f   : > { %1963 = vst [vmem:[%s2724_s11 + $0x50] sm:$0xff] %v1947_v46  ;;  %v1898_v51 = vmul.f32 %v1873_v48, %v1802_v41  ;;  %v1897_v34 = vmul.f32 %v1868_v49, %v1801_v44 }
 0x360   : > { %1962 = vst [vmem:[%s2724_s11 + $0x48] sm:$0xff] %v1946_v47 }
 0x361   : > { %v1918_v23 = vadd.f32 %v2931_v1, %v1898_v51  ;;  %v1917_v16 = vadd.f32 %v2931_v1, %v1897_v34 }
 0x363   : > { %v1934_v56 = vadd.f32 %v1918_v23, %v1770_v50  ;;  %v1933_v57 = vadd.f32 %v1917_v16, %v1769_v28 }
 0x365   : > { %v1950_v62 = vmul.f32 0.5, %v1934_v56  ;;  %v1949_v18 = vmul.f32 0.5, %v1933_v57 }
 0x366   : > { %v1883_v29 = vpop.permute.xlu0 %1882 }
 0x367   : > { %1966 = vst [vmem:[%s2724_s11 + $0x68] sm:$0xff] %v1950_v62  ;;  %v1900_v55 = vmul.f32 %v1883_v29, %v1804_v24 }
 0x368   : > { %1965 = vst [vmem:[%s2724_s11 + $0x60] sm:$0xff] %v1949_v18 }
 0x369   : > { %v1920_v63 = vadd.f32 %v2931_v1, %v1900_v55 }
 0x36b   : > { %v1936_v0 = vadd.f32 %v1920_v63, %v1772_v40 }
 0x36d   : > { %v1952_v3 = vmul.f32 0.5, %v1936_v0 }
 0x36f   : > { %1968 = vst [vmem:[%s2724_s11 + $0x78] sm:$0xff] %v1952_v3 }
 0x370 PF: > { %s22_s27 = sadd.s32 1, %s2553_s27   ;;  %s3035_s23 = sld [smem:[#allocation5_spill]] }
 0x371   : > { %p19_p0 = scmp.ge.s32.totalorder %s22_s27, 6   ;;  %s3036_s24 = sld [smem:[#allocation6_spill]] }
 0x372   : > { %s3037_s25 = sld [smem:[#allocation7_spill]]  ;;  %s3039_s21 = smov %s2533_s22 }
 0x373   : > { %s3038_s26 = sld [smem:[#allocation8_spill]]  ;;  %s3040_s22 = smov %s2674_s16 }
 0x374   :  { %21 = sbr.rel (!%p19_p0) target bundleno = 11 (0xb), region = 173 }

// kernel: noise_filter_forward.6
= control target key start
LH: loop header
LB: loop body
LE: loop exit
PB: predicated region body
PF: predicated region fallthrough
CT: control target
= control target key end

     0   :  { %s3021_s0 = inlined_call_operand.vmem [shape: bf16[256,256], index: 0, kind: input, shape index: {}]   ;;  %s3022_s1 = inlined_call_operand.vmem [shape: bf16[256,128], index: 1, kind: input, shape index: {}, may-alias: {1,2}]   ;;  %s3023_s2 = inlined_call_operand.vmem [shape: bf16[256,128], index: 2, kind: input, shape index: {}, may-alias: {1,2}]   ;;  %s3024_s3 = inlined_call_operand.vmem [shape: f32[256,1], index: 3, kind: input, shape index: {}]   ;;  %s3025_s4 = inlined_call_operand.vmem [shape: f32[256,1], index: 4, kind: input, shape index: {}, may-alias: {4,5}]   ;;  %s3026_s5 = inlined_call_operand.vmem [shape: f32[256,1], index: 5, kind: input, shape index: {}, may-alias: {4,5}]   ;;  %s3027_s6 = inlined_call_operand.vmem [shape: bf16[128,32], index: 6, kind: input, shape index: {}]   ;;  %s3028_s7 = inlined_call_operand.vmem [shape: f32[1,32], index: 7, kind: input, shape index: {}]   ;;  %s3029_s8 = inlined_call_operand.vmem [shape: bf16[128,32], index: 8, kind: input, shape index: {}]   ;;  %s3030_s9 = inlined_call_operand.vmem [shape: f32[1,32], index: 9, kind: input, shape index: {}]   ;;  %s3031_s10 = inlined_call_operand.vmem [shape: bf16[256,32], index: 10, kind: output, shape index: {0}]   ;;  %s3032_s11 = inlined_call_operand.vmem [shape: bf16[256,32], index: 11, kind: output, shape index: {1}]  }
   0x1   :  { %3037 = sst [smem:[#allocation10_spill]] %s3021_s0 }
   0x2   :  { %3038 = sst [smem:[#allocation11_spill]] %s3022_s1 }
   0x3   :  { %3039 = sst [smem:[#allocation12_spill]] %s3024_s3 }
   0x4   :  { %3040 = sst [smem:[#allocation13_spill]] %s3030_s9 }
   0x5   :  { %s2530_s17 = smov 0   ;;  %s2532_s18 = smov 0  }
   0x6   :  { %s2534_s19 = smov 0   ;;  %s2536_s20 = smov 0  }
   0x7   :  { %s2538_s21 = smov 0   ;;  %s2540_s22 = smov 0  }
   0x8   :  { %s2542_s23 = smov 0  }
   0x9 LB: > { %3041 = sst [smem:[#allocation5_spill]] %s2457_s21  ;;  %s31_s24 = sadd.s32 1, %s2457_s21  ;;  %s2465_s23 = sphi %s2542_s23, %s22_s23   ;;  %s2461_s22 = sphi %s2540_s22, %s3054_s22   ;;  %s2457_s21 = sphi %s2538_s21, %s3053_s21   ;;  %s2453_s20 = sphi %s2536_s20, %s3052_s20   ;;  %s2449_s19 = sphi %s2534_s19, %s3051_s19   ;;  %s2445_s18 = sphi %s2532_s18, %s3056_s18   ;;  %s2441_s17 = sphi %s2530_s17, %s3055_s17  }
   0xa   : > { %3042 = sst [smem:[#allocation6_spill]] %s2461_s22  ;;  %p32_p0 = scmp.ge.s32.totalorder %s31_s24, 2 }
   0xb   : > { %s34_s25 = sadd.s32 1, %s2461_s22  ;;  %p50_p1 = scmp.ne.s32.totalorder %s2445_s18, %s2441_s17 }
   0xc   : > { %p51_p2 = scmp.eq.s32.totalorder %s2465_s23, 0  ;;  %s3058_s24 = smov (%p32_p0, %s31_s24), 0 }
   0xd   : > { %3043 = sst [smem:[#allocation7_spill]] %s3058_s24  ;;  %s3060_s25 = smov (!%p32_p0, %s34_s25), %s2461_s22 }
   0xe   : > { %p52_p3 = por %p51_p2, %p50_p1  ;;  %p36_p4 = scmp.ge.s32.totalorder %s3060_s25, 2 }
   0xf   : > { %s39_s26 = ssub.s32 %s2457_s21, %s3058_s24  ;;  %s43_s29 = sadd.s32 1, %s2445_s18 }
  0x10   : > { %s3062_s25 = smov (%p36_p4, %s3060_s25), 0  ;;  %p2070_p6 = scmp.ge.s32.totalorder %s2465_s23, 4 }
  0x11   : > { %3044 = sst [smem:[#allocation8_spill]] %s3062_s25  ;;  %s38_s27 = ssub.s32 %s2461_s22, %s3062_s25 }
  0x12   : > { %s40_s28 = sor.u32 %s39_s26, %s38_s27 }
  0x13   : > { %p41_p5 = scmp.eq.s32.totalorder %s40_s28, 0  ;;  %354 = sbr.rel (%p2070_p6) target bundleno = 50 (0x32), region = 32 }
  0x15   : > { %s2581_s30 = scalar_select %p41_p5, %s2445_s18, %s43_s29  }
  0x17   : > { %3045 = sst [smem:[#allocation9_spill]] %s2581_s30 }
  0x18   : > { %357 = sbr.rel (!%p52_p3) target bundleno = 50 (0x32), region = 36  ;;  %s359_s12 = sand.u32 (%p52_p3), 1, %s2445_s18  }
  0x19   : > { %s2255_s13 = sshll.u32 (%p52_p3), %s2461_s22, 5  ;;  %s2071_s14 = sshll.u32 (%p52_p3), %s359_s12, 6 }
  0x1a   : > { %s364_s15 = sadd.s32 (%p52_p3), %s2457_s21, %s2255_s13  ;;  %s3046_s0 = sld [smem:[#allocation10_spill]] (%p52_p3) }
  0x1b   : > { %s2074_s16 = sshll.u32 (%p52_p3), %s364_s15, 2  ;;  %s361_s27 = scalar_lea.vmem (%p52_p3), [#allocation4], %s2071_s14 }
  0x20   : > { %s2590_s26 = scalar_lea.vmem %s3046_s0, %s2074_s16 }
  0x21   : > { %v383_v0 = vld [vmem:[%s2590_s26] sm:$0xf]  ;;  %v385_v1 = vld [vmem:[%s2590_s26 + $0x8] sm:$0xf]  ;;  %v387_v2 = vld [vmem:[%s2590_s26 + $0x10] sm:$0xf] }
  0x22   : > { %384 = vst [vmem:[%s361_s27] sm:$0xf] %v383_v0  ;;  %v389_v3 = vld [vmem:[%s2590_s26 + $0x18] sm:$0xf]  ;;  %v391_v4 = vld [vmem:[%s2590_s26 + $0x20] sm:$0xf] }
  0x23   : > { %386 = vst [vmem:[%s361_s27 + $0x4] sm:$0xf] %v385_v1  ;;  %v393_v5 = vld [vmem:[%s2590_s26 + $0x28] sm:$0xf]  ;;  %v395_v6 = vld [vmem:[%s2590_s26 + $0x30] sm:$0xf] }
  0x24   : > { %388 = vst [vmem:[%s361_s27 + $0x8] sm:$0xf] %v387_v2  ;;  %v397_v7 = vld [vmem:[%s2590_s26 + $0x38] sm:$0xf]  ;;  %v399_v8 = vld [vmem:[%s2590_s26 + $0x40] sm:$0xf] }
  0x25   : > { %390 = vst [vmem:[%s361_s27 + $0xc] sm:$0xf] %v389_v3  ;;  %v401_v9 = vld [vmem:[%s2590_s26 + $0x48] sm:$0xf]  ;;  %v403_v10 = vld [vmem:[%s2590_s26 + $0x50] sm:$0xf] }
  0x26   : > { %392 = vst [vmem:[%s361_s27 + $0x10] sm:$0xf] %v391_v4  ;;  %v405_v11 = vld [vmem:[%s2590_s26 + $0x58] sm:$0xf]  ;;  %v407_v12 = vld [vmem:[%s2590_s26 + $0x60] sm:$0xf] }
  0x27   : > { %394 = vst [vmem:[%s361_s27 + $0x14] sm:$0xf] %v393_v5  ;;  %v409_v13 = vld [vmem:[%s2590_s26 + $0x68] sm:$0xf]  ;;  %v411_v14 = vld [vmem:[%s2590_s26 + $0x70] sm:$0xf] }
  0x28   : > { %396 = vst [vmem:[%s361_s27 + $0x18] sm:$0xf] %v395_v6  ;;  %v413_v15 = vld [vmem:[%s2590_s26 + $0x78] sm:$0xf] }
  0x29   : > { %398 = vst [vmem:[%s361_s27 + $0x1c] sm:$0xf] %v397_v7 }
  0x2a   : > { %400 = vst [vmem:[%s361_s27 + $0x20] sm:$0xf] %v399_v8 }
  0x2b   : > { %402 = vst [vmem:[%s361_s27 + $0x24] sm:$0xf] %v401_v9 }
  0x2c   : > { %404 = vst [vmem:[%s361_s27 + $0x28] sm:$0xf] %v403_v10 }
  0x2d   : > { %406 = vst [vmem:[%s361_s27 + $0x2c] sm:$0xf] %v405_v11 }
  0x2e   : > { %408 = vst [vmem:[%s361_s27 + $0x30] sm:$0xf] %v407_v12 }
  0x2f   : > { %410 = vst [vmem:[%s361_s27 + $0x34] sm:$0xf] %v409_v13 }
  0x30   : > { %412 = vst [vmem:[%s361_s27 + $0x38] sm:$0xf] %v411_v14 }
  0x31   : > { %414 = vst [vmem:[%s361_s27 + $0x3c] sm:$0xf] %v413_v15 }
  0x32 PF: > { %p2075_p7 = scmp.ge.s32.totalorder %s2465_s23, 1  ;;  %p514_p8 = scmp.lt.s32.totalorder %s2465_s23, 5 }
  0x34   : > { %p515_p9 = pnand %p2075_p7, %p514_p8 }
  0x35   : > { %s521_s9 = sand.u32 (!%p515_p9), 1, %s2441_s17   ;;  %s2077_s24 = sshll.u32 (!%p515_p9), %s2453_s20, 4 }
  0x36   : > { %518 = sbr.rel (%p515_p9) target bundleno = 886 (0x376), region = 97  ;;  %s2076_s28 = sshll.u32 (!%p515_p9), %s521_s9, 6 }
  0x37   : > { %p592_p10 = scmp.lt.s32.totalorder (!%p515_p9), %s2077_s24, 31  ;;  %s2079_s29 = sshll.u32 (!%p515_p9), %s2449_s19, 4 }
  0x38   : > { %p598_p11 = scmp.lt.s32.totalorder (!%p515_p9), %s2079_s29, 31  ;;  %s3047_s1 = sld [smem:[#allocation11_spill]] (!%p515_p9) }
  0x39   : > { %s3048_s3 = sld [smem:[#allocation12_spill]] (!%p515_p9)  ;;  %s2648_s22 = scalar_lea.vmem (!%p515_p9), [#allocation4], %s2076_s28 }
  0x3a   : > { %p2091_p12 = scmp.ne.s32.totalorder (!%p515_p9), %s2449_s19, 0 }
  0x3b   : > { %s3064_s24 = smov (!%p592_p10, %s2077_s24), 31  ;;  %s3066_s29 = smov (!%p598_p11, %s2079_s29), 31 }
  0x3c   : > { %s2078_s12 = sshll.u32 %s3064_s24, 2  ;;  %s2082_s13 = sshll.u32 %s3064_s24, 3 }
  0x3d   : > { %s2626_s9 = scalar_lea.vmem %s3025_s4, %s2082_s13  ;;  %s2631_s24 = scalar_lea.vmem %s3031_s10, %s2078_s12 }
  0x3e   : > { %s2616_s16 = scalar_lea.vmem %s3047_s1, %s2078_s12  ;;  %s2080_s21 = sshll.u32 %s3066_s29, 2 }
  0x3f   : > { %s2621_s0 = scalar_lea.vmem %s3048_s3, %s2082_s13  ;;  %s2086_s14 = sshll.u32 %s3066_s29, 3 }
  0x40   : > { %s2636_s30 = scalar_lea.vmem %s3023_s2, %s2080_s21  ;;  %s2641_s3 = scalar_lea.vmem %s3026_s5, %s2086_s14 }
  0x41   : > { %s2646_s20 = scalar_lea.vmem %s3032_s11, %s2078_s12  ;;  %636 = sbr.rel (%p2091_p12) target bundleno = 103 (0x67), region = 105 }
  0x46   : > { %vm637_vm0 = vcmask 261120   ;;  %v2467_v16 = vmov 0.0  }
  0x47   : > { %638 = vst.msk [vmem:[#allocation2] sm:$0xff] %vm637_vm0, %v2467_v16 }
  0x48   : > { %639 = vst.msk [vmem:[#allocation2 + $0x8] sm:$0xff] %vm637_vm0, %v2467_v16 }
  0x49   : > { %640 = vst.msk [vmem:[#allocation2 + $0x10] sm:$0xff] %vm637_vm0, %v2467_v16 }
  0x4a   : > { %641 = vst.msk [vmem:[#allocation2 + $0x18] sm:$0xff] %vm637_vm0, %v2467_v16 }
  0x4b   : > { %642 = vst.msk [vmem:[#allocation2 + $0x20] sm:$0xff] %vm637_vm0, %v2467_v16 }
  0x4c   : > { %643 = vst.msk [vmem:[#allocation2 + $0x28] sm:$0xff] %vm637_vm0, %v2467_v16 }
  0x4d   : > { %644 = vst.msk [vmem:[#allocation2 + $0x30] sm:$0xff] %vm637_vm0, %v2467_v16 }
  0x4e   : > { %645 = vst.msk [vmem:[#allocation2 + $0x38] sm:$0xff] %vm637_vm0, %v2467_v16 }
  0x4f   : > { %646 = vst.msk [vmem:[#allocation2 + $0x40] sm:$0xff] %vm637_vm0, %v2467_v16 }
  0x50   : > { %647 = vst.msk [vmem:[#allocation2 + $0x48] sm:$0xff] %vm637_vm0, %v2467_v16 }
  0x51   : > { %648 = vst.msk [vmem:[#allocation2 + $0x50] sm:$0xff] %vm637_vm0, %v2467_v16 }
  0x52   : > { %649 = vst.msk [vmem:[#allocation2 + $0x58] sm:$0xff] %vm637_vm0, %v2467_v16 }
  0x53   : > { %650 = vst.msk [vmem:[#allocation2 + $0x60] sm:$0xff] %vm637_vm0, %v2467_v16 }
  0x54   : > { %651 = vst.msk [vmem:[#allocation2 + $0x68] sm:$0xff] %vm637_vm0, %v2467_v16 }
  0x55   : > { %652 = vst.msk [vmem:[#allocation2 + $0x70] sm:$0xff] %vm637_vm0, %v2467_v16 }
  0x56   : > { %653 = vst.msk [vmem:[#allocation2 + $0x78] sm:$0xff] %vm637_vm0, %v2467_v16 }
  0x57   : > { %654 = vst.msk [vmem:[#allocation3] sm:$0xff] %vm637_vm0, %v2467_v16 }
  0x58   : > { %655 = vst.msk [vmem:[#allocation3 + $0x8] sm:$0xff] %vm637_vm0, %v2467_v16 }
  0x59   : > { %656 = vst.msk [vmem:[#allocation3 + $0x10] sm:$0xff] %vm637_vm0, %v2467_v16 }
  0x5a   : > { %657 = vst.msk [vmem:[#allocation3 + $0x18] sm:$0xff] %vm637_vm0, %v2467_v16 }
  0x5b   : > { %658 = vst.msk [vmem:[#allocation3 + $0x20] sm:$0xff] %vm637_vm0, %v2467_v16 }
  0x5c   : > { %659 = vst.msk [vmem:[#allocation3 + $0x28] sm:$0xff] %vm637_vm0, %v2467_v16 }
  0x5d   : > { %660 = vst.msk [vmem:[#allocation3 + $0x30] sm:$0xff] %vm637_vm0, %v2467_v16 }
  0x5e   : > { %661 = vst.msk [vmem:[#allocation3 + $0x38] sm:$0xff] %vm637_vm0, %v2467_v16 }
  0x5f   : > { %662 = vst.msk [vmem:[#allocation3 + $0x40] sm:$0xff] %vm637_vm0, %v2467_v16 }
  0x60   : > { %663 = vst.msk [vmem:[#allocation3 + $0x48] sm:$0xff] %vm637_vm0, %v2467_v16 }
  0x61   : > { %664 = vst.msk [vmem:[#allocation3 + $0x50] sm:$0xff] %vm637_vm0, %v2467_v16 }
  0x62   : > { %665 = vst.msk [vmem:[#allocation3 + $0x58] sm:$0xff] %vm637_vm0, %v2467_v16 }
  0x63   : > { %666 = vst.msk [vmem:[#allocation3 + $0x60] sm:$0xff] %vm637_vm0, %v2467_v16 }
  0x64   : > { %667 = vst.msk [vmem:[#allocation3 + $0x68] sm:$0xff] %vm637_vm0, %v2467_v16 }
  0x65   : > { %668 = vst.msk [vmem:[#allocation3 + $0x70] sm:$0xff] %vm637_vm0, %v2467_v16 }
  0x66   : > { %669 = vst.msk [vmem:[#allocation3 + $0x78] sm:$0xff] %vm637_vm0, %v2467_v16 }
  0x67 PF: > { %v2271_v17 = vld [vmem:[%s3027_s6 + $0x38] sm:$0xff]  ;;  %v2270_v19 = vld [vmem:[%s3027_s6 + $0x30] sm:$0xff]  ;;  %v2269_v20 = vld [vmem:[%s3027_s6 + $0x28] sm:$0xff]  ;;  %v2468_v27 = vmov 0   ;;  %vm1000_vm1 = vcmask 261120   ;;  %p2252_p13 = scmp.ne.s32.totalorder %s2449_s19, 1 }
  0x68   : > { %v2687_v18 = vld [vmem:[%s2636_s30 + $0x38] sm:$0xff]  ;;  %2297 = vmatpush.bf16.msra.mxu3 %v2271_v17  ;;  %798 = vmatpush.bf16.msra.mxu0 %v2271_v17  ;;  %v2697_v21 = vld [vmem:[%s2636_s30 + $0x30] sm:$0xff]  ;;  %v2268_v22 = vld [vmem:[%s3027_s6 + $0x20] sm:$0xff] }
  0x69   : > { %1081 = vmatpush.bf16.xpose.msra.mxu2 %v2687_v18  ;;  %2296 = vmatpush.bf16.msra.mxu1 %v2271_v17  ;;  %v2267_v23 = vld [vmem:[%s3027_s6 + $0x18] sm:$0xff]  ;;  %v2707_v24 = vld [vmem:[%s2636_s30 + $0x28] sm:$0xff]  ;;  %v1399_v25 = vld [vmem:[%s2641_s3 + $0x60] sm:$0xff] }
  0x6a   : > { %v2266_v26 = vld [vmem:[%s3027_s6 + $0x10] sm:$0xff]  ;;  %2372 = vset.pattern.permute.xlu1 %v2468_v27  ;;  %2371 = vset.pattern.permute.xlu0 %v2468_v27  ;;  %v2265_v28 = vld [vmem:[%s3027_s6 + $0x8] sm:$0xff]  ;;  %v2718_v29 = vld [vmem:[%s2636_s30 + $0x20] sm:$0xff] }
  0x6b   : > { %1465 = vperm.xlu1 %2372, %v1399_v25   ;;  %2373 = vset.pattern.permute.xlu2 %v2468_v27  ;;  %v2264_v30 = vld [vmem:[%s3027_s6] sm:$0xff]  ;;  %v2295_v31 = vld [vmem:[%s3029_s8 + $0x38] sm:$0xff]  ;;  %v2294_v33 = vld [vmem:[%s3029_s8 + $0x30] sm:$0xff] }
  0x6c   : > { %2299 = vmatpush.bf16.msra.mxu3 %v2270_v19  ;;  %799 = vmatpush.bf16.msra.mxu0 %v2270_v19  ;;  %v2728_v32 = vld [vmem:[%s2636_s30 + $0x18] sm:$0xff]  ;;  %v1400_v34 = vld [vmem:[%s2641_s3 + $0x68] sm:$0xff]  ;;  %v2256_v35 = vld [vmem:[%s2636_s30] sm:$0xff] }
  0x6d   : > { %2298 = vmatpush.bf16.msra.mxu1 %v2270_v19  ;;  %v2293_v36 = vld [vmem:[%s3029_s8 + $0x28] sm:$0xff]  ;;  %v2258_v37 = vld [vmem:[%s2636_s30 + $0x10] sm:$0xff]  ;;  %v2292_v38 = vld [vmem:[%s3029_s8 + $0x20] sm:$0xff] }
  0x6e   : > { %v1396_v39 = vld [vmem:[%s2641_s3 + $0x48] sm:$0xff]  ;;  %v2291_v40 = vld [vmem:[%s3029_s8 + $0x18] sm:$0xff]  ;;  %v2290_v42 = vld [vmem:[%s3029_s8 + $0x10] sm:$0xff] }
  0x6f   : > { %v2257_v41 = vld [vmem:[%s2636_s30 + $0x8] sm:$0xff]  ;;  %v1391_v43 = vld [vmem:[%s2641_s3 + $0x20] sm:$0xff]  ;;  %v1401_v44 = vld [vmem:[%s2641_s3 + $0x70] sm:$0xff] }
  0x70   : > { %2301 = vmatpush.bf16.msra.mxu3 %v2269_v20  ;;  %800 = vmatpush.bf16.msra.mxu0 %v2269_v20  ;;  %v1397_v45 = vld [vmem:[%s2641_s3 + $0x50] sm:$0xff]  ;;  %v2289_v46 = vld [vmem:[%s3029_s8 + $0x8] sm:$0xff]  ;;  %v2288_v47 = vld [vmem:[%s3029_s8] sm:$0xff] }
  0x71   : > { %1082 = vmatpush.bf16.xpose.msra.mxu2 %v2697_v21  ;;  %2300 = vmatpush.bf16.msra.mxu1 %v2269_v20  ;;  %v1402_v48 = vld [vmem:[%s2641_s3 + $0x78] sm:$0xff]  ;;  %v1131_v49 = vld [vmem:[%s2621_s0 + $0x8] sm:$0xff]  ;;  %v2280_v50 = vld [vmem:[%s2616_s16] sm:$0xff] }
  0x72   : > { %1475 = vperm.xlu0 %2371, %v1401_v44   ;;  %1455 = vperm.xlu2 %2373, %v1397_v45   ;;  %v1398_v51 = vld [vmem:[%s2641_s3 + $0x58] sm:$0xff]  ;;  %v1395_v52 = vld [vmem:[%s2641_s3 + $0x40] sm:$0xff]  ;;  %v1393_v54 = vld [vmem:[%s2641_s3 + $0x30] sm:$0xff] }
  0x73   : > { %1470 = vperm.xlu1 %2372, %v1400_v34   ;;  %v1387_v53 = vld [vmem:[%s2641_s3] sm:$0xff]  ;;  %v1394_v55 = vld [vmem:[%s2641_s3 + $0x38] sm:$0xff]  ;;  %v2281_v56 = vld [vmem:[%s2616_s16 + $0x8] sm:$0xff] }
  0x74   : > { %2303 = vmatpush.bf16.msra.mxu3 %v2268_v22  ;;  %801 = vmatpush.bf16.msra.mxu0 %v2268_v22  ;;  %v1392_v57 = vld [vmem:[%s2641_s3 + $0x28] sm:$0xff]  ;;  %v1130_v58 = vld [vmem:[%s2621_s0] sm:$0xff]  ;;  %v1389_v59 = vld [vmem:[%s2641_s3 + $0x10] sm:$0xff] }
  0x75   : > { %2302 = vmatpush.bf16.msra.mxu1 %v2268_v22  ;;  %v1390_v60 = vld [vmem:[%s2641_s3 + $0x18] sm:$0xff]  ;;  %v2282_v61 = vld [vmem:[%s2616_s16 + $0x10] sm:$0xff]  ;;  %v1388_v62 = vld [vmem:[%s2641_s3 + $0x8] sm:$0xff] }
  0x76   : > { %v2283_v63 = vld [vmem:[%s2616_s16 + $0x18] sm:$0xff]  ;;  %v2284_v0 = vld [vmem:[%s2616_s16 + $0x20] sm:$0xff]  ;;  %v1132_v2 = vld [vmem:[%s2621_s0 + $0x10] sm:$0xff] }
  0x77   : > { %v1133_v1 = vld [vmem:[%s2621_s0 + $0x18] sm:$0xff]  ;;  %v2285_v3 = vld [vmem:[%s2616_s16 + $0x28] sm:$0xff]  ;;  %v1136_v4 = vld [vmem:[%s2621_s0 + $0x30] sm:$0xff] }
  0x78   : > { %2305 = vmatpush.bf16.msra.mxu3 %v2267_v23  ;;  %802 = vmatpush.bf16.msra.mxu0 %v2267_v23  ;;  %v1135_v5 = vld [vmem:[%s2621_s0 + $0x28] sm:$0xff]  ;;  %v1138_v7 = vld [vmem:[%s2621_s0 + $0x40] sm:$0xff]  ;;  %v2286_v8 = vld [vmem:[%s2616_s16 + $0x30] sm:$0xff] }
  0x79   : > { %1083 = vmatpush.bf16.xpose.msra.mxu2 %v2707_v24  ;;  %2304 = vmatpush.bf16.msra.mxu1 %v2267_v23  ;;  %v1139_v6 = vld [vmem:[%s2621_s0 + $0x48] sm:$0xff]  ;;  %v1142_v9 = vld [vmem:[%s2621_s0 + $0x60] sm:$0xff]  ;;  %v1141_v10 = vld [vmem:[%s2621_s0 + $0x58] sm:$0xff] }
  0x7a   : > { %1480 = vperm.xlu0 %2371, %v1402_v48   ;;  %1460 = vperm.xlu2 %2373, %v1398_v51   ;;  %v1145_v14 = vld [vmem:[%s2621_s0 + $0x78] sm:$0xff]  ;;  %v1144_v15 = vld [vmem:[%s2621_s0 + $0x70] sm:$0xff]  ;;  %v1134_v19 = vld [vmem:[%s2621_s0 + $0x20] sm:$0xff] }
  0x7b   : > { %1450 = vperm.xlu1 %2372, %v1396_v39   ;;  %v2287_v17 = vld [vmem:[%s2616_s16 + $0x38] sm:$0xff] }
  0x7c   : > { %2307 = vmatpush.bf16.msra.mxu3 %v2266_v26  ;;  %803 = vmatpush.bf16.msra.mxu0 %v2266_v26 }
  0x7d   : > { %2306 = vmatpush.bf16.msra.mxu1 %v2266_v26 }
  0x80   : > { %2309 = vmatpush.bf16.msra.mxu3 %v2265_v28  ;;  %804 = vmatpush.bf16.msra.mxu0 %v2265_v28 }
  0x81   : > { %1084 = vmatpush.bf16.xpose.msra.mxu2 %v2718_v29  ;;  %2308 = vmatpush.bf16.msra.mxu1 %v2265_v28 }
  0x82   : > { %1445 = vperm.xlu0 %2371, %v1395_v52   ;;  %1435 = vperm.xlu2 %2373, %v1393_v54  }
  0x83   : > { %1425 = vperm.xlu1 %2372, %v1391_v43  }
  0x84   : > { %2311 = vmatpush.bf16.msra.mxu3 %v2264_v30  ;;  %805 = vmatpush.bf16.msra.mxu0 %v2264_v30 }
  0x85   : > { %2310 = vmatpush.bf16.msra.mxu1 %v2264_v30 }
  0x87   : > { %831 = vmatmul.bf16.vlgmr.msra.gmra.mxu3 %v2707_v24  ;;  %806 = vmatmul.bf16.vlgmr.msra.gmra.mxu0 %v2256_v35 }
  0x88   : > { %1338 = vmatpush.bf16.msrb.mxu3 %v2295_v31  ;;  %821 = vmatmul.bf16.vlgmr.msra.gmra.mxu1 %v2728_v32 }
  0x89   : > { %1085 = vmatpush.bf16.xpose.msra.mxu2 %v2728_v32 }
  0x8a   : > { %1440 = vperm.xlu0 %2371, %v1394_v55   ;;  %1430 = vperm.xlu2 %2373, %v1392_v57  }
  0x8b   : > { %1153 = vperm.xlu1 %2372, %v1131_v49  }
  0x8c   : > { %1339 = vmatpush.bf16.msrb.mxu3 %v2294_v33  ;;  %v1143_v33 = vld [vmem:[%s2621_s0 + $0x68] sm:$0xff] }
  0x90   : > { %1340 = vmatpush.bf16.msrb.mxu3 %v2293_v36 }
  0x91   : > { %1086 = vmatpush.bf16.xpose.msra.mxu2 %v2258_v37 }
  0x92   : > { %1148 = vperm.xlu0 %2371, %v1130_v58   ;;  %1415 = vperm.xlu2 %2373, %v1389_v59  }
  0x93   : > { %1405 = vperm.xlu1 %2372, %v1387_v53  }
  0x94   : > { %1341 = vmatpush.bf16.msrb.mxu3 %v2292_v38 }
  0x97   : > { %836 = vmatmul.bf16.gmra.mxu3 %v2697_v21  ;;  %811 = vmatmul.bf16.gmra.mxu0 %v2257_v41 }
  0x98   : > { %1342 = vmatpush.bf16.msrb.mxu3 %v2291_v40  ;;  %826 = vmatmul.bf16.gmra.mxu1 %v2718_v29 }
  0x99   : > { %1087 = vmatpush.bf16.xpose.msra.mxu2 %v2257_v41 }
  0x9a   : > { %1420 = vperm.xlu0 %2371, %v1390_v60   ;;  %1410 = vperm.xlu2 %2373, %v1388_v62  }
  0x9b   : > { %1163 = vperm.xlu1 %2372, %v1133_v1  }
  0x9c   : > { %1343 = vmatpush.bf16.msrb.mxu3 %v2290_v42 }
  0xa0   : > { %1344 = vmatpush.bf16.msrb.mxu3 %v2289_v46 }
  0xa1   : > { %1088 = vmatpush.bf16.xpose.msra.mxu2 %v2256_v35 }
  0xa2   : > { %1158 = vperm.xlu0 %2371, %v1132_v2   ;;  %1168 = vperm.xlu2 %2373, %v1134_v19  }
  0xa3   : > { %1178 = vperm.xlu1 %2372, %v1136_v4  }
  0xa4   : > { %1345 = vmatpush.bf16.msrb.mxu3 %v2288_v47 }
  0xa7   : > { %841 = vmatmul.bf16.gmra.mxu3 %v2687_v18  ;;  %816 = vmatmul.bf16.gmra.mxu0 %v2258_v37 }
  0xa8   : > { %1089 = vmatmul.bf16.vlgmr.msra.gmra.mxu2 %v2280_v50 }
  0xaa   : > { %1173 = vperm.xlu0 %2371, %v1135_v5  }
  0xab   : > { %1193 = vperm.xlu1 %2372, %v1139_v6  }
  0xb2   : > { %1188 = vperm.xlu0 %2371, %v1138_v7  }
  0xb3   : > { %1208 = vperm.xlu1 %2372, %v1142_v9  }
  0xb7   : > { %1346 = vmatmul.bf16.vlgmr.msrb.gmra.mxu3 %v2256_v35 }
  0xb8   : > { %1094 = vmatmul.bf16.gmra.mxu2 %v2281_v56 }
  0xba   : > { %1203 = vperm.xlu0 %2371, %v1141_v10  }
  0xbb   : > { %1223 = vperm.xlu1 %2372, %v1145_v14  }
  0xc2   : > { %1218 = vperm.xlu0 %2371, %v1144_v15  }
  0xc7   : > { %1351 = vmatmul.bf16.gmra.mxu3 %v2257_v41 }
  0xc8   : > { %1099 = vmatmul.bf16.gmra.mxu2 %v2282_v61 }
  0xcc   : > { %v2797_v13 = vpop.permute.xlu2 %1455 }
  0xd4   : > { %v2806_v22 = vpop.permute.xlu2 %1460 }
  0xd7   : > { %1356 = vmatmul.bf16.gmra.mxu3 %v2258_v37 }
  0xd8   : > { %1104 = vmatmul.bf16.gmra.mxu2 %v2283_v63 }
  0xdc   : > { %v1436_v28 = vpop.permute.xlu2 %1435 }
  0xdd   : > { %v2795_v12 = vpop.permute.xlu1 %1465 }
  0xe4   : > { %v2809_v25 = vpop.permute.xlu0 %1475 }
  0xe5   : > { %v2804_v20 = vpop.permute.xlu1 %1470 }
  0xe7   : > { %1361 = vmatmul.bf16.gmra.mxu3 %v2728_v32  ;;  %v1431_v32 = vpop.permute.xlu2 %1430 }
  0xe8   : > { %1109 = vmatmul.bf16.gmra.mxu2 %v2284_v0 }
  0xed   : > { %v2811_v26 = vpop.permute.xlu1 %1450 }
  0xef   : > { %v1416_v38 = vpop.permute.xlu2 %1415 }
  0xf5   : > { %v1426_v31 = vpop.permute.xlu1 %1425 }
  0xf7   : > { %1366 = vmatmul.bf16.gmra.mxu3 %v2718_v29  ;;  %v1140_v29 = vld [vmem:[%s2621_s0 + $0x50] sm:$0xff]  ;;  %v1411_v43 = vpop.permute.xlu2 %1410 }
  0xf8   : > { %1114 = vmatmul.bf16.gmra.mxu2 %v2285_v3 }
  0xfd   : > { %v2820_v37 = vpop.permute.xlu1 %1153 }
 0x104   : > { %v807_v51 = vpop.f32.mrf.mxu0 }
 0x105   : > { %v1406_v42 = vpop.permute.xlu1 %1405  ;;  %v822_v57 = vpop.f32.mrf.mxu1 }
 0x107   : > { %1371 = vmatmul.bf16.gmra.mxu3 %v2707_v24  ;;  %v1137_v24 = vld [vmem:[%s2621_s0 + $0x38] sm:$0xff] }
 0x108   : > { %1119 = vmatmul.bf16.gmra.mxu2 %v2286_v8  ;;  %1183 = vperm.xlu2 %2373, %v1137_v24  }
 0x10a   : > { %v832_v11 = vpop.f32.mrf.mxu3 }
 0x10c   : > { %v809_v56 = vpop.f32.mrf.mxu0 }
 0x10d   : > { %v824_v60 = vpop.f32.mrf.mxu1  ;;  %v879_v19 = vpack.c.bf16 %v809_v56, %v807_v51 }
 0x10e   : > { %v882_v10 = vpack.c.bf16 %v824_v60, %v822_v57 }
 0x110   : > { %1198 = vperm.xlu2 %2373, %v1140_v29  }
 0x112   : > { %v834_v16 = vpop.f32.mrf.mxu3 }
 0x113   : > { %v884_v41 = vpack.c.bf16 %v834_v16, %v832_v11 }
 0x114   : > { %v812_v59 = vpop.f32.mrf.mxu0 }
 0x115   : > { %v827_v2 = vpop.f32.mrf.mxu1 }
 0x117   : > { %1376 = vmatmul.bf16.gmra.mxu3 %v2697_v21  ;;  %v2815_v21 = vpop.permute.xlu0 %1480 }
 0x118   : > { %1124 = vmatmul.bf16.gmra.mxu2 %v2287_v17  ;;  %1213 = vperm.xlu2 %2373, %v1143_v33   ;;  %v2272_v33 = vld [vmem:[%s2648_s22] sm:$0xff] }
 0x11a   : > { %v837_v23 = vpop.f32.mrf.mxu3 }
 0x11c   : > { %v814_v1 = vpop.f32.mrf.mxu0 }
 0x11d   : > { %v829_v5 = vpop.f32.mrf.mxu1  ;;  %v880_v17 = vpack.c.bf16 %v814_v1, %v812_v59 }
 0x11e   : > { %v883_v7 = vpack.c.bf16 %v829_v5, %v827_v2 }
 0x11f   : > { %v2818_v35 = vpop.permute.xlu0 %1445 }
 0x122   : > { %v839_v27 = vpop.f32.mrf.mxu3 }
 0x123   : > { %v885_v39 = vpack.c.bf16 %v839_v27, %v837_v23 }
 0x124   : > { %v817_v4 = vpop.f32.mrf.mxu0 }
 0x127   : > { %1381 = vmatmul.bf16.gmra.mxu3 %v2687_v18  ;;  %v1441_v18 = vpop.permute.xlu0 %1440 }
 0x12a   : > { %v842_v30 = vpop.f32.mrf.mxu3 }
 0x12b   : > { %v1090_v29 = vpop.f32.mrf.mxu2 }
 0x12c   : > { %v819_v14 = vpop.f32.mrf.mxu0 }
 0x12d   : > { %v881_v16 = vpack.c.bf16 %v819_v14, %v817_v4  ;;  %v1169_v4 = vpop.permute.xlu2 %1168 }
 0x12f   : > { %v2828_v48 = vpop.permute.xlu0 %1148 }
 0x132   : > { %v844_v34 = vpop.f32.mrf.mxu3 }
 0x133   : > { %v886_v36 = vpack.c.bf16 %v844_v34, %v842_v30 }
 0x135   : > { %935 = vmatpush.bf16.msrb.mxu1 %v886_v36 }
 0x137   : > { %v1421_v50 = vpop.permute.xlu0 %1420 }
 0x139   : > { %936 = vmatpush.bf16.msrb.mxu1 %v885_v39 }
 0x13a   : > { %v1347_v40 = vpop.f32.mrf.mxu3 }
 0x13b   : > { %v2822_v45 = vmul.f32 %v1406_v42, %v1347_v40 }
 0x13d   : > { %937 = vmatpush.bf16.msrb.mxu1 %v884_v41 }
 0x141   : > { %938 = vmatpush.bf16.msrb.mxu1 %v883_v7  ;;  %v2276_v7 = vld [vmem:[%s2648_s22 + $0x20] sm:$0xff] }
 0x142   : > { %v1349_v44 = vpop.f32.mrf.mxu3 }
 0x143   : > { %v2824_v46 = vmul.f32 %v1411_v43, %v1349_v44 }
 0x145   : > { %v1523_v47 = vpack.c.bf16 %v2824_v46, %v2822_v45  ;;  %939 = vmatpush.bf16.msrb.mxu1 %v882_v10 }
 0x149   : > { %940 = vmatpush.bf16.msrb.mxu1 %v881_v16 }
 0x14a   : > { %v1352_v49 = vpop.f32.mrf.mxu3 }
 0x14b   : > { %v2830_v53 = vmul.f32 %v1416_v38, %v1352_v49 }
 0x14d   : > { %941 = vmatpush.bf16.msrb.mxu1 %v880_v17 }
 0x151   : > { %942 = vmatpush.bf16.msrb.mxu1 %v879_v19 }
 0x152   : > { %v1354_v52 = vpop.f32.mrf.mxu3 }
 0x153   : > { %v2832_v54 = vmul.f32 %v1421_v50, %v1354_v52  ;;  %v2273_v52 = vld [vmem:[%s2648_s22 + $0x8] sm:$0xff] }
 0x154   : > { %943 = vmatmul.bf16.vlgmr.msrb.gmra.mxu1 %v2272_v33 }
 0x155   : > { %v1524_v55 = vpack.c.bf16 %v2832_v54, %v2830_v53  ;;  %v2275_v53 = vld [vmem:[%s2648_s22 + $0x18] sm:$0xff] }
 0x15a   : > { %v1357_v58 = vpop.f32.mrf.mxu3 }
 0x15b   : > { %v2836_v62 = vmul.f32 %v1426_v31, %v1357_v58  ;;  %v1092_v31 = vpop.f32.mrf.mxu2  ;;  %v1164_v58 = vpop.permute.xlu1 %1163 }
 0x15c   : > { %v1227_v56 = vsub.f32 %v1092_v31, %v2820_v37  ;;  %v1159_v37 = vpop.permute.xlu0 %1158 }
 0x15e   : > { %v1244_v57 = vmul.f32 1.442695, %v1227_v56 }
 0x162   : > { %v1359_v61 = vpop.f32.mrf.mxu3  ;;  %v1184_v14 = vpop.permute.xlu2 %1183 }
 0x163   : > { %v1488_v63 = vmul.f32 %v1431_v32, %v1359_v61  ;;  %v1095_v34 = vpop.f32.mrf.mxu2  ;;  %v1179_v10 = vpop.permute.xlu1 %1178 }
 0x164   : > { %948 = vmatmul.bf16.gmra.mxu1 %v2273_v52  ;;  %v1228_v60 = vsub.f32 %v1095_v34, %v1159_v37  ;;  %v1174_v2 = vpop.permute.xlu0 %1173 }
 0x165   : > { %v1525_v0 = vpack.c.bf16 %v1488_v63, %v2836_v62 }
 0x16a   : > { %v1362_v3 = vpop.f32.mrf.mxu3 }
 0x16b   : > { %v1489_v8 = vmul.f32 %v1436_v28, %v1362_v3  ;;  %v1097_v42 = vpop.f32.mrf.mxu2 }
 0x16c   : > { %v1229_v59 = vsub.f32 %v1097_v42, %v1164_v58  ;;  %v1199_v42 = vpop.permute.xlu2 %1198 }
 0x16e   : > { %v1248_v63 = vmul.f32 1.442695, %v1229_v59 }
 0x172   : > { %v1364_v6 = vpop.f32.mrf.mxu3 }
 0x173   : > { %v1490_v9 = vmul.f32 %v1441_v18, %v1364_v6 }
 0x174   : > { %v1214_v56 = vpop.permute.xlu2 %1213 }
 0x175   : > { %v1526_v11 = vpack.c.bf16 %v1490_v9, %v1489_v8 }
 0x17a   : > { %v1367_v15 = vpop.f32.mrf.mxu3 }
 0x182   : > { %v1369_v23 = vpop.f32.mrf.mxu3 }
 0x183   : > { %v1492_v50 = vmul.f32 %v2811_v26, %v1369_v23  ;;  %v2274_v26 = vld [vmem:[%s2648_s22 + $0x10] sm:$0xff] }
 0x184   : > { %953 = vmatmul.bf16.gmra.mxu1 %v2274_v26 }
 0x18a   : > { %v1372_v24 = vpop.f32.mrf.mxu3 }
 0x18b   : > { %v1493_v49 = vmul.f32 %v2797_v13, %v1372_v24  ;;  %v2277_v24 = vld [vmem:[%s2648_s22 + $0x28] sm:$0xff] }
 0x192   : > { %v1374_v27 = vpop.f32.mrf.mxu3 }
 0x193   : > { %v1494_v43 = vmul.f32 %v2806_v22, %v1374_v27 }
 0x194   : > { %958 = vmatmul.bf16.gmra.mxu1 %v2275_v53 }
 0x195   : > { %v1528_v51 = vpack.c.bf16 %v1494_v43, %v1493_v49 }
 0x19a   : > { %v1377_v30 = vpop.f32.mrf.mxu3 }
 0x19b   : > { %v1495_v18 = vmul.f32 %v2795_v12, %v1377_v30  ;;  %v1226_v12 = vsub.f32 %v1090_v29, %v2828_v48 }
 0x19d   : > { %v1242_v22 = vmul.f32 1.442695, %v1226_v12  ;;  %v2279_v12 = vld [vmem:[%s2648_s22 + $0x38] sm:$0xff] }
 0x19f   : > { %2374 = vpow2.f32 %v1242_v22 }
 0x1a0   : > { %2376 = vpow2.f32 %v1244_v57 }
 0x1a1   : > { %2378 = vpow2.f32 %v1248_v63 }
 0x1a2   : > { %v1379_v28 = vpop.f32.mrf.mxu3 }
 0x1a3   : > { %v1496_v40 = vmul.f32 %v2804_v20, %v1379_v28  ;;  %v1194_v28 = vpop.permute.xlu1 %1193 }
 0x1a4   : > { %963 = vmatmul.bf16.gmra.mxu1 %v2276_v7 }
 0x1a5   : > { %v1529_v44 = vpack.c.bf16 %v1496_v40, %v1495_v18  ;;  %v2278_v40 = vld [vmem:[%s2648_s22 + $0x30] sm:$0xff] }
 0x1aa   : > { %v1382_v32 = vpop.f32.mrf.mxu3 }
 0x1ab   : > { %v1497_v38 = vmul.f32 %v2809_v25, %v1382_v32  ;;  %v1491_v25 = vmul.f32 %v2818_v35, %v1367_v15  ;;  %v2375_v35 = vpop.eup %2374  ;;  %v1189_v32 = vpop.permute.xlu0 %1188 }
 0x1ac   : > { %v2377_v48 = vpop.eup %2376  ;;  %v1209_v57 = vpop.permute.xlu1 %1208 }
 0x1ad   : > { %v1527_v20 = vpack.c.bf16 %v1492_v50, %v1491_v25  ;;  %v1515_v61 = vpack.c.bf16 %v2377_v48, %v2375_v35  ;;  %v2379_v54 = vpop.eup %2378 }
 0x1b2   : > { %v1384_v36 = vpop.f32.mrf.mxu3 }
 0x1b3   : > { %v1498_v39 = vmul.f32 %v2815_v21, %v1384_v36  ;;  %v1100_v21 = vpop.f32.mrf.mxu2 }
 0x1b4   : > { %v1230_v5 = vsub.f32 %v1100_v21, %v1169_v4  ;;  %968 = vmatmul.bf16.gmra.mxu1 %v2277_v24  ;;  %v851_v24 = vld [vmem:[#allocation2 + $0x20] sm:$0xff] }
 0x1b5   : > { %v1530_v41 = vpack.c.bf16 %v1498_v39, %v1497_v38 }
 0x1b6   : > { %v1250_v46 = vmul.f32 1.442695, %v1230_v5 }
 0x1b7   : > { %1531 = vmatpush.bf16.msrb.mxu0 %v1530_v41 }
 0x1bb   : > { %1532 = vmatpush.bf16.msrb.mxu0 %v1529_v44  ;;  %v1102_v13 = vpop.f32.mrf.mxu2  ;;  %v1204_v44 = vpop.permute.xlu0 %1203 }
 0x1bc   : > { %v1231_v3 = vsub.f32 %v1102_v13, %v1174_v2  ;;  %v848_v2 = vld [vmem:[#allocation2 + $0x8] sm:$0xff] }
 0x1be   : > { %v1252_v45 = vmul.f32 1.442695, %v1231_v3 }
 0x1bf   : > { %1533 = vmatpush.bf16.msrb.mxu0 %v1528_v51 }
 0x1c3   : > { %1534 = vmatpush.bf16.msrb.mxu0 %v1527_v20  ;;  %v1105_v62 = vpop.f32.mrf.mxu2 }
 0x1c4   : > { %973 = vmatmul.bf16.gmra.mxu1 %v2278_v40  ;;  %v853_v40 = vld [vmem:[#allocation2 + $0x30] sm:$0xff] }
 0x1c7   : > { %1535 = vmatpush.bf16.msrb.mxu0 %v1526_v11  ;;  %v1232_v11 = vsub.f32 %v1105_v62, %v1179_v10  ;;  %v1224_v62 = vpop.permute.xlu1 %1223  ;;  %v850_v10 = vld [vmem:[#allocation2 + $0x18] sm:$0xff] }
 0x1c9   : > { %v1254_v19 = vmul.f32 1.442695, %v1232_v11 }
 0x1cb   : > { %1536 = vmatpush.bf16.msrb.mxu0 %v1525_v0  ;;  %v1246_v0 = vmul.f32 1.442695, %v1228_v60  ;;  %v1219_v60 = vpop.permute.xlu0 %1218 }
 0x1cd   : > { %2380 = vpow2.f32 %v1246_v0 }
 0x1ce   : > { %2382 = vpow2.f32 %v1252_v45 }
 0x1cf   : > { %1537 = vmatpush.bf16.msrb.mxu0 %v1524_v55  ;;  %v1107_v55 = vpop.f32.mrf.mxu2  ;;  %2384 = vpow2.f32 %v1250_v46 }
 0x1d0   : > { %v1233_v15 = vsub.f32 %v1107_v55, %v1184_v14  ;;  %2386 = vpow2.f32 %v1254_v19 }
 0x1d1   : > { %v944_v37 = vpop.f32.mrf.mxu1 }
 0x1d2   : > { %v1256_v23 = vmul.f32 1.442695, %v1233_v15 }
 0x1d3   : > { %1538 = vmatpush.bf16.msrb.mxu0 %v1523_v47  ;;  %v2381_v1 = vpop.eup %2380 }
 0x1d4   : > { %v1516_v6 = vpack.c.bf16 %v2379_v54, %v2381_v1  ;;  %v2383_v8 = vpop.eup %2382  ;;  %2388 = vpow2.f32 %v1256_v23  ;;  %978 = vmatmul.bf16.gmra.mxu1 %v2279_v12  ;;  %v847_v1 = vld [vmem:[#allocation2] sm:$0xff] }
 0x1d5   : > { %v2385_v9 = vpop.eup %2384  ;;  %v984_v4 = vadd.f32 %v944_v37, %v847_v1  ;;  %v855_v12 = vld [vmem:[#allocation2 + $0x40] sm:$0xff] }
 0x1d6   : > { %1539 = vmatmul.bf16.vlgmr.msrb.gmra.mxu0 %v1515_v61  ;;  %v1517_v17 = vpack.c.bf16 %v2383_v8, %v2385_v9  ;;  %v2387_v29 = vpop.eup %2386  ;;  %v849_v9 = vld [vmem:[#allocation2 + $0x10] sm:$0xff] }
 0x1d7   : > { %v1110_v47 = vpop.f32.mrf.mxu2  ;;  %1001 = vst.msk [vmem:[#allocation2] sm:$0xff] %vm1000_vm1, %v984_v4 }
 0x1d8   : > { %v1234_v33 = vsub.f32 %v1110_v47, %v1189_v32 }
 0x1d9   : > { %v946_v3 = vpop.f32.mrf.mxu1 }
 0x1da   : > { %v2389_v30 = vpop.eup %2388  ;;  %v1258_v38 = vmul.f32 1.442695, %v1234_v33  ;;  %v985_v5 = vadd.f32 %v946_v3, %v848_v2  ;;  %v1507_v2 = vld [vmem:[#allocation3 + $0x40] sm:$0xff] }
 0x1db   : > { %v1518_v34 = vpack.c.bf16 %v2389_v30, %v2387_v29 }
 0x1dc   : > { %1002 = vst.msk [vmem:[#allocation2 + $0x8] sm:$0xff] %vm1000_vm1, %v985_v5  ;;  %v859_v5 = vld [vmem:[#allocation2 + $0x60] sm:$0xff] }
 0x1df   : > { %v1112_v16 = vpop.f32.mrf.mxu2 }
 0x1e0   : > { %v1235_v31 = vsub.f32 %v1112_v16, %v1194_v28 }
 0x1e1   : > { %v949_v46 = vpop.f32.mrf.mxu1 }
 0x1e2   : > { %v1260_v36 = vmul.f32 1.442695, %v1235_v31  ;;  %v986_v14 = vadd.f32 %v949_v46, %v849_v9  ;;  %v1500_v31 = vld [vmem:[#allocation3 + $0x8] sm:$0xff] }
 0x1e4   : > { %2390 = vpow2.f32 %v1260_v36  ;;  %1003 = vst.msk [vmem:[#allocation2 + $0x10] sm:$0xff] %vm1000_vm1, %v986_v14  ;;  %v1501_v36 = vld [vmem:[#allocation3 + $0x10] sm:$0xff] }
 0x1e5   : > { %2392 = vpow2.f32 %v1258_v38 }
 0x1e6   : > { %1544 = vmatmul.bf16.gmra.mxu0 %v1516_v6 }
 0x1e7   : > { %v1115_v27 = vpop.f32.mrf.mxu2 }
 0x1e8   : > { %v1236_v49 = vsub.f32 %v1115_v27, %v1199_v42  ;;  %v852_v27 = vld [vmem:[#allocation2 + $0x28] sm:$0xff] }
 0x1e9   : > { %v951_v11 = vpop.f32.mrf.mxu1 }
 0x1ea   : > { %v2391_v41 = vpop.eup %2390  ;;  %v1262_v52 = vmul.f32 1.442695, %v1236_v49  ;;  %v987_v15 = vadd.f32 %v951_v11, %v850_v10  ;;  %v1509_v11 = vld [vmem:[#allocation3 + $0x50] sm:$0xff] }
 0x1eb   : > { %v2393_v18 = vpop.eup %2392 }
 0x1ec   : > { %v1519_v51 = vpack.c.bf16 %v2391_v41, %v2393_v18  ;;  %2394 = vpow2.f32 %v1262_v52  ;;  %1004 = vst.msk [vmem:[#allocation2 + $0x18] sm:$0xff] %vm1000_vm1, %v987_v15  ;;  %v854_v41 = vld [vmem:[#allocation2 + $0x38] sm:$0xff]  ;;  %v1503_v52 = vld [vmem:[#allocation3 + $0x20] sm:$0xff] }
 0x1ef   : > { %v1117_v39 = vpop.f32.mrf.mxu2 }
 0x1f0   : > { %v1237_v50 = vsub.f32 %v1117_v39, %v1204_v44  ;;  %v1502_v44 = vld [vmem:[#allocation3 + $0x18] sm:$0xff] }
 0x1f2   : > { %v1264_v25 = vmul.f32 1.442695, %v1237_v50  ;;  %v2395_v21 = vpop.eup %2394 }
 0x1f4   : > { %2396 = vpow2.f32 %v1264_v25 }
 0x1f6   : > { %1549 = vmatmul.bf16.gmra.mxu0 %v1517_v17  ;;  %v1499_v17 = vld [vmem:[#allocation3] sm:$0xff] }
 0x1f7   : > { %v1120_v43 = vpop.f32.mrf.mxu2 }
 0x1f8   : > { %v1238_v13 = vsub.f32 %v1120_v43, %v1209_v57 }
 0x1fa   : > { %v2397_v22 = vpop.eup %2396  ;;  %v1266_v48 = vmul.f32 1.442695, %v1238_v13  ;;  %v1504_v13 = vld [vmem:[#allocation3 + $0x28] sm:$0xff] }
 0x1fb   : > { %v1520_v35 = vpack.c.bf16 %v2397_v22, %v2395_v21  ;;  %v856_v21 = vld [vmem:[#allocation2 + $0x48] sm:$0xff] }
 0x1fc   : > { %2398 = vpow2.f32 %v1266_v48 }
 0x1ff   : > { %v1122_v20 = vpop.f32.mrf.mxu2 }
 0x200   : > { %v1239_v26 = vsub.f32 %v1122_v20, %v1214_v56 }
 0x201   : > { %v954_v16 = vpop.f32.mrf.mxu1 }
 0x202   : > { %v1268_v59 = vmul.f32 1.442695, %v1239_v26  ;;  %v2399_v61 = vpop.eup %2398  ;;  %v988_v30 = vadd.f32 %v954_v16, %v851_v24  ;;  %v861_v16 = vld [vmem:[#allocation2 + $0x70] sm:$0xff] }
 0x204   : > { %2400 = vpow2.f32 %v1268_v59  ;;  %1005 = vst.msk [vmem:[#allocation2 + $0x20] sm:$0xff] %vm1000_vm1, %v988_v30 }
 0x206   : > { %1554 = vmatmul.bf16.gmra.mxu0 %v1518_v34 }
 0x207   : > { %v1125_v58 = vpop.f32.mrf.mxu2 }
 0x208   : > { %v1240_v53 = vsub.f32 %v1125_v58, %v1219_v60  ;;  %v1505_v58 = vld [vmem:[#allocation3 + $0x30] sm:$0xff] }
 0x209   : > { %v956_v29 = vpop.f32.mrf.mxu1  ;;  %v857_v60 = vld [vmem:[#allocation2 + $0x50] sm:$0xff] }
 0x20a   : > { %v2401_v0 = vpop.eup %2400  ;;  %v1270_v6 = vmul.f32 1.442695, %v1240_v53  ;;  %v989_v28 = vadd.f32 %v956_v29, %v852_v27  ;;  %v1506_v53 = vld [vmem:[#allocation3 + $0x38] sm:$0xff] }
 0x20b   : > { %v1521_v55 = vpack.c.bf16 %v2401_v0, %v2399_v61  ;;  %v858_v61 = vld [vmem:[#allocation2 + $0x58] sm:$0xff] }
 0x20c   : > { %2402 = vpow2.f32 %v1270_v6  ;;  %1006 = vst.msk [vmem:[#allocation2 + $0x28] sm:$0xff] %vm1000_vm1, %v989_v28  ;;  %v860_v6 = vld [vmem:[#allocation2 + $0x68] sm:$0xff]  ;;  %v1510_v27 = vld [vmem:[#allocation3 + $0x58] sm:$0xff]  ;;  %v1511_v28 = vld [vmem:[#allocation3 + $0x60] sm:$0xff] }
 0x20f   : > { %v1127_v63 = vpop.f32.mrf.mxu2 }
 0x210   : > { %v1241_v54 = vsub.f32 %v1127_v63, %v1224_v62 }
 0x211   : > { %v959_v34 = vpop.f32.mrf.mxu1 }
 0x212   : > { %v1272_v45 = vmul.f32 1.442695, %v1241_v54  ;;  %v2403_v47 = vpop.eup %2402  ;;  %v990_v42 = vadd.f32 %v959_v34, %v853_v40 }
 0x214   : > { %2404 = vpow2.f32 %v1272_v45  ;;  %1007 = vst.msk [vmem:[#allocation2 + $0x30] sm:$0xff] %vm1000_vm1, %v990_v42 }
 0x216   : > { %1559 = vmatmul.bf16.gmra.mxu0 %v1519_v51 }
 0x219   : > { %v961_v18 = vpop.f32.mrf.mxu1 }
 0x21a   : > { %v2405_v7 = vpop.eup %2404  ;;  %v991_v43 = vadd.f32 %v961_v18, %v854_v41  ;;  %v1514_v41 = vld [vmem:[#allocation3 + $0x78] sm:$0xff] }
 0x21b   : > { %v1522_v8 = vpack.c.bf16 %v2405_v7, %v2403_v47  ;;  %v1508_v7 = vld [vmem:[#allocation3 + $0x48] sm:$0xff] }
 0x21c   : > { %1008 = vst.msk [vmem:[#allocation2 + $0x38] sm:$0xff] %vm1000_vm1, %v991_v43 }
 0x221   : > { %v964_v51 = vpop.f32.mrf.mxu1 }
 0x222   : > { %v992_v22 = vadd.f32 %v964_v51, %v855_v12 }
 0x224   : > { %1009 = vst.msk [vmem:[#allocation2 + $0x40] sm:$0xff] %vm1000_vm1, %v992_v22 }
 0x226   : > { %1564 = vmatmul.bf16.gmra.mxu0 %v1520_v35 }
 0x229   : > { %v966_v56 = vpop.f32.mrf.mxu1 }
 0x22a   : > { %v993_v57 = vadd.f32 %v966_v56, %v856_v21 }
 0x22c   : > { %1010 = vst.msk [vmem:[#allocation2 + $0x48] sm:$0xff] %vm1000_vm1, %v993_v57 }
 0x231   : > { %v969_v48 = vpop.f32.mrf.mxu1 }
 0x232   : > { %v994_v63 = vadd.f32 %v969_v48, %v857_v60 }
 0x234   : > { %1011 = vst.msk [vmem:[#allocation2 + $0x50] sm:$0xff] %vm1000_vm1, %v994_v63 }
 0x236   : > { %1569 = vmatmul.bf16.gmra.mxu0 %v1521_v55 }
 0x239   : > { %v971_v62 = vpop.f32.mrf.mxu1 }
 0x23a   : > { %v995_v0 = vadd.f32 %v971_v62, %v858_v61 }
 0x23c   : > { %1012 = vst.msk [vmem:[#allocation2 + $0x58] sm:$0xff] %vm1000_vm1, %v995_v0 }
 0x241   : > { %v974_v1 = vpop.f32.mrf.mxu1 }
 0x242   : > { %v996_v46 = vadd.f32 %v974_v1, %v859_v5 }
 0x244   : > { %1013 = vst.msk [vmem:[#allocation2 + $0x60] sm:$0xff] %vm1000_vm1, %v996_v46 }
 0x246   : > { %1574 = vmatmul.bf16.gmra.mxu0 %v1522_v8 }
 0x249   : > { %v976_v45 = vpop.f32.mrf.mxu1 }
 0x24a   : > { %v997_v47 = vadd.f32 %v976_v45, %v860_v6 }
 0x24c   : > { %1014 = vst.msk [vmem:[#allocation2 + $0x68] sm:$0xff] %vm1000_vm1, %v997_v47 }
 0x251   : > { %v979_v10 = vpop.f32.mrf.mxu1 }
 0x253   : > { %v1540_v19 = vpop.f32.mrf.mxu0 }
 0x254   : > { %v1580_v23 = vadd.f32 %v1540_v19, %v1499_v17  ;;  %v862_v17 = vld [vmem:[#allocation2 + $0x78] sm:$0xff] }
 0x256   : > { %1596 = vst.msk [vmem:[#allocation3] sm:$0xff] %vm1000_vm1, %v1580_v23  ;;  %v998_v23 = vadd.f32 %v979_v10, %v861_v16 }
 0x258   : > { %1015 = vst.msk [vmem:[#allocation2 + $0x70] sm:$0xff] %vm1000_vm1, %v998_v23 }
 0x259   : > { %v981_v19 = vpop.f32.mrf.mxu1 }
 0x25a   : > { %v999_v24 = vadd.f32 %v981_v19, %v862_v17 }
 0x25b   : > { %v1542_v32 = vpop.f32.mrf.mxu0 }
 0x25c   : > { %v1581_v33 = vadd.f32 %v1542_v32, %v1500_v31  ;;  %1016 = vst.msk [vmem:[#allocation2 + $0x78] sm:$0xff] %vm1000_vm1, %v999_v24 }
 0x25e   : > { %1597 = vst.msk [vmem:[#allocation3 + $0x8] sm:$0xff] %vm1000_vm1, %v1581_v33  ;;  %v1512_v33 = vld [vmem:[#allocation3 + $0x68] sm:$0xff] }
 0x263   : > { %v1545_v38 = vpop.f32.mrf.mxu0 }
 0x264   : > { %v1582_v39 = vadd.f32 %v1545_v38, %v1501_v36  ;;  %v1513_v38 = vld [vmem:[#allocation3 + $0x70] sm:$0xff] }
 0x266   : > { %1598 = vst.msk [vmem:[#allocation3 + $0x10] sm:$0xff] %vm1000_vm1, %v1582_v39 }
 0x26b   : > { %v1547_v49 = vpop.f32.mrf.mxu0 }
 0x26c   : > { %v1583_v50 = vadd.f32 %v1547_v49, %v1502_v44 }
 0x26e   : > { %1599 = vst.msk [vmem:[#allocation3 + $0x18] sm:$0xff] %vm1000_vm1, %v1583_v50 }
 0x273   : > { %v1550_v25 = vpop.f32.mrf.mxu0 }
 0x274   : > { %v1584_v20 = vadd.f32 %v1550_v25, %v1503_v52 }
 0x276   : > { %1600 = vst.msk [vmem:[#allocation3 + $0x20] sm:$0xff] %vm1000_vm1, %v1584_v20 }
 0x27b   : > { %v1552_v26 = vpop.f32.mrf.mxu0 }
 0x27c   : > { %v1585_v35 = vadd.f32 %v1552_v26, %v1504_v13 }
 0x27e   : > { %1601 = vst.msk [vmem:[#allocation3 + $0x28] sm:$0xff] %vm1000_vm1, %v1585_v35 }
 0x283   : > { %v1555_v59 = vpop.f32.mrf.mxu0 }
 0x284   : > { %v1586_v37 = vadd.f32 %v1555_v59, %v1505_v58 }
 0x286   : > { %1602 = vst.msk [vmem:[#allocation3 + $0x30] sm:$0xff] %vm1000_vm1, %v1586_v37 }
 0x28b   : > { %v1557_v54 = vpop.f32.mrf.mxu0 }
 0x28c   : > { %v1587_v55 = vadd.f32 %v1557_v54, %v1506_v53 }
 0x28e   : > { %1603 = vst.msk [vmem:[#allocation3 + $0x38] sm:$0xff] %vm1000_vm1, %v1587_v55 }
 0x293   : > { %v1560_v3 = vpop.f32.mrf.mxu0 }
 0x294   : > { %v1588_v4 = vadd.f32 %v1560_v3, %v1507_v2 }
 0x296   : > { %1604 = vst.msk [vmem:[#allocation3 + $0x40] sm:$0xff] %vm1000_vm1, %v1588_v4 }
 0x29b   : > { %v1562_v8 = vpop.f32.mrf.mxu0 }
 0x29c   : > { %v1589_v9 = vadd.f32 %v1562_v8, %v1508_v7 }
 0x29e   : > { %1605 = vst.msk [vmem:[#allocation3 + $0x48] sm:$0xff] %vm1000_vm1, %v1589_v9 }
 0x2a3   : > { %v1565_v14 = vpop.f32.mrf.mxu0 }
 0x2a4   : > { %v1590_v15 = vadd.f32 %v1565_v14, %v1509_v11 }
 0x2a6   : > { %1606 = vst.msk [vmem:[#allocation3 + $0x50] sm:$0xff] %vm1000_vm1, %v1590_v15 }
 0x2ab   : > { %v1567_v29 = vpop.f32.mrf.mxu0 }
 0x2ac   : > { %v1591_v30 = vadd.f32 %v1567_v29, %v1510_v27 }
 0x2ae   : > { %1607 = vst.msk [vmem:[#allocation3 + $0x58] sm:$0xff] %vm1000_vm1, %v1591_v30 }
 0x2b3   : > { %v1570_v31 = vpop.f32.mrf.mxu0 }
 0x2b4   : > { %v1592_v32 = vadd.f32 %v1570_v31, %v1511_v28 }
 0x2b6   : > { %1608 = vst.msk [vmem:[#allocation3 + $0x60] sm:$0xff] %vm1000_vm1, %v1592_v32 }
 0x2bb   : > { %v1572_v34 = vpop.f32.mrf.mxu0 }
 0x2bc   : > { %v1593_v36 = vadd.f32 %v1572_v34, %v1512_v33 }
 0x2be   : > { %1609 = vst.msk [vmem:[#allocation3 + $0x68] sm:$0xff] %vm1000_vm1, %v1593_v36 }
 0x2c3   : > { %v1575_v39 = vpop.f32.mrf.mxu0 }
 0x2c4   : > { %v1594_v40 = vadd.f32 %v1575_v39, %v1513_v38 }
 0x2c6   : > { %1610 = vst.msk [vmem:[#allocation3 + $0x70] sm:$0xff] %vm1000_vm1, %v1594_v40 }
 0x2ca   : > { %1615 = sbr.rel (%p2252_p13) target bundleno = 886 (0x376), region = 109 }
 0x2cb   : > { %v1577_v18 = vpop.f32.mrf.mxu0 }
 0x2cc   : > { %v1595_v42 = vadd.f32 %v1577_v18, %v1514_v41 }
 0x2ce   : > { %1611 = vst.msk [vmem:[#allocation3 + $0x78] sm:$0xff] %vm1000_vm1, %v1595_v42 }
 0x2cf   : > { %v1705_v43 = vld [vmem:[%s2626_s9 + $0x20] sm:$0xff]  ;;  %v1703_v44 = vld [vmem:[%s2626_s9 + $0x10] sm:$0xff]  ;;  %v2469_v50 = vmov 0   ;;  %v1706_v51 = vld [vmem:[%s2626_s9 + $0x28] sm:$0xff]  ;;  %vm1684_vm2 = vcmask 257024  }
 0x2d0   : > { %v1701_v49 = vld [vmem:[%s2626_s9] sm:$0xff]  ;;  %2408 = vset.pattern.permute.xlu2 %v2469_v50  ;;  %2407 = vset.pattern.permute.xlu1 %v2469_v50  ;;  %v1704_v52 = vld [vmem:[%s2626_s9 + $0x18] sm:$0xff]  ;;  %v1702_v25 = vld [vmem:[%s2626_s9 + $0x8] sm:$0xff] }
 0x2d1   : > { %2406 = vset.pattern.permute.xlu0 %v2469_v50  ;;  %1755 = vperm.xlu2 %2408, %v1705_v43   ;;  %v1709_v20 = vld [vmem:[%s2626_s9 + $0x40] sm:$0xff]  ;;  %v1708_v12 = vld [vmem:[%s2626_s9 + $0x38] sm:$0xff]  ;;  %v1707_v21 = vld [vmem:[%s2626_s9 + $0x30] sm:$0xff] }
 0x2d2   : > { %1745 = vperm.xlu1 %2407, %v1703_v44   ;;  %1735 = vperm.xlu0 %2406, %v1701_v49   ;;  %v1712_v56 = vld [vmem:[%s2626_s9 + $0x58] sm:$0xff]  ;;  %v1711_v22 = vld [vmem:[%s2626_s9 + $0x50] sm:$0xff]  ;;  %v1710_v57 = vld [vmem:[%s2626_s9 + $0x48] sm:$0xff] }
 0x2d3   : > { %v1715_v13 = vld [vmem:[%s2626_s9 + $0x70] sm:$0xff]  ;;  %v1714_v26 = vld [vmem:[%s2626_s9 + $0x68] sm:$0xff]  ;;  %v1713_v35 = vld [vmem:[%s2626_s9 + $0x60] sm:$0xff] }
 0x2d4   : > { %v1716_v48 = vld [vmem:[%s2626_s9 + $0x78] sm:$0xff]  ;;  %v1616_v58 = vld [vmem:[#allocation2] sm:$0xff]  ;;  %v1617_v59 = vld [vmem:[#allocation2 + $0x8] sm:$0xff]  ;;  %s3049_s9 = sld [smem:[#allocation13_spill]] }
 0x2d5   : > { %v1618_v37 = vld [vmem:[#allocation2 + $0x10] sm:$0xff]  ;;  %v1619_v60 = vld [vmem:[#allocation2 + $0x18] sm:$0xff]  ;;  %v2410_v61 = vld [vmem:[%s3028_s7] ss:$0 sm:$0xff] }
 0x2d6   : > { %v1620_v62 = vld [vmem:[#allocation2 + $0x20] sm:$0xff]  ;;  %v1621_v63 = vld [vmem:[#allocation2 + $0x28] sm:$0xff]  ;;  %v1636_v0 = vadd.f32 %v2410_v61, %v1616_v58  ;;  %v1637_v53 = vadd.f32 %v2410_v61, %v1617_v59  ;;  %v1638_v54 = vadd.f32 %v2410_v61, %v1618_v37  ;;  %v1622_v55 = vld [vmem:[#allocation2 + $0x30] sm:$0xff]  ;;  %v1639_v1 = vadd.f32 %v2410_v61, %v1619_v60 }
 0x2d7   : > { %v1623_v2 = vld [vmem:[#allocation2 + $0x38] sm:$0xff]  ;;  %v1640_v3 = vadd.f32 %v2410_v61, %v1620_v62  ;;  %v1624_v4 = vld [vmem:[#allocation2 + $0x40] sm:$0xff]  ;;  %v1641_v5 = vadd.f32 %v2410_v61, %v1621_v63  ;;  %v1625_v6 = vld [vmem:[#allocation2 + $0x48] sm:$0xff]  ;;  %v1642_v46 = vadd.f32 %v2410_v61, %v1622_v55 }
 0x2d8   : > { %v1626_v45 = vld [vmem:[#allocation2 + $0x50] sm:$0xff]  ;;  %v1652_v47 = vmax.f32 %v1636_v0, 0.0  ;;  %v1653_v7 = vmax.f32 %v1637_v53, 0.0  ;;  %v1654_v8 = vmax.f32 %v1638_v54, 0.0  ;;  %v1643_v9 = vadd.f32 %v2410_v61, %v1623_v2  ;;  %v1627_v11 = vld [vmem:[#allocation2 + $0x58] sm:$0xff]  ;;  %v1628_v16 = vld [vmem:[#allocation2 + $0x60] sm:$0xff] }
 0x2d9   : > { %1760 = vperm.xlu2 %2408, %v1706_v51   ;;  %v1655_v10 = vmax.f32 %v1639_v1, 0.0  ;;  %v1644_v14 = vadd.f32 %v2410_v61, %v1624_v4  ;;  %v1656_v15 = vmax.f32 %v1640_v3, 0.0  ;;  %v1645_v17 = vadd.f32 %v2410_v61, %v1625_v6  ;;  %v1629_v24 = vld [vmem:[#allocation2 + $0x68] sm:$0xff]  ;;  %v1630_v31 = vld [vmem:[#allocation2 + $0x70] sm:$0xff]  ;;  %v1631_v36 = vld [vmem:[#allocation2 + $0x78] sm:$0xff] }
 0x2da   : > { %1750 = vperm.xlu1 %2407, %v1704_v52   ;;  %1740 = vperm.xlu0 %2406, %v1702_v25   ;;  %v1646_v19 = vadd.f32 %v2410_v61, %v1626_v45  ;;  %v1657_v23 = vmax.f32 %v1641_v5, 0.0  ;;  %v1658_v27 = vmax.f32 %v1642_v46, 0.0  ;;  %v1668_v29 = vpack.c.bf16 %v1652_v47, %v1652_v47  ;;  %v1721_v59 = vld [vmem:[#allocation3 + $0x20] sm:$0xff]  ;;  %v1722_v0 = vld [vmem:[#allocation3 + $0x28] sm:$0xff]  ;;  %v1728_v47 = vld [vmem:[#allocation3 + $0x58] sm:$0xff] }
 0x2db   : > { %v1669_v30 = vpack.c.bf16 %v1653_v7, %v1653_v7  ;;  %v1670_v28 = vpack.c.bf16 %v1654_v8, %v1654_v8  ;;  %v1647_v32 = vadd.f32 %v2410_v61, %v1627_v11  ;;  %v1659_v33 = vmax.f32 %v1643_v9, 0.0  ;;  %v2950_v60 = vld [vmem:[%s3049_s9] ss:$0 sm:$0xff]  ;;  %v1719_v8 = vld [vmem:[#allocation3 + $0x10] sm:$0xff] }
 0x2dc   : > { %v1671_v34 = vpack.c.bf16 %v1655_v10, %v1655_v10  ;;  %v1648_v38 = vadd.f32 %v2410_v61, %v1628_v16  ;;  %v1660_v39 = vmax.f32 %v1644_v14, 0.0  ;;  %v1672_v40 = vpack.c.bf16 %v1656_v15, %v1656_v15  ;;  %1685 = vst.msk [vmem:[%s2631_s24] sm:$0xf] %vm1684_vm2, %v1668_v29  ;;  %v1725_v3 = vld [vmem:[#allocation3 + $0x40] sm:$0xff] }
 0x2dd   : > { %v1649_v41 = vadd.f32 %v2410_v61, %v1629_v24  ;;  %v1661_v18 = vmax.f32 %v1645_v17, 0.0  ;;  %v1673_v42 = vpack.c.bf16 %v1657_v23, %v1657_v23  ;;  %1686 = vst.msk [vmem:[%s2631_s24 + $0x4] sm:$0xf] %vm1684_vm2, %v1669_v30  ;;  %v1650_v43 = vadd.f32 %v2410_v61, %v1630_v31  ;;  %v1717_v9 = vld [vmem:[#allocation3] sm:$0xff] }
 0x2de   : > { %v1662_v44 = vmax.f32 %v1646_v19, 0.0  ;;  %v1674_v49 = vpack.c.bf16 %v1658_v27, %v1658_v27  ;;  %1687 = vst.msk [vmem:[%s2631_s24 + $0x8] sm:$0xf] %vm1684_vm2, %v1670_v28  ;;  %v1651_v50 = vadd.f32 %v2410_v61, %v1631_v36  ;;  %v1663_v51 = vmax.f32 %v1647_v32, 0.0  ;;  %v1731_v28 = vld [vmem:[#allocation3 + $0x70] sm:$0xff]  ;;  %v1720_v32 = vld [vmem:[#allocation3 + $0x18] sm:$0xff] }
 0x2df   : > { %v1675_v52 = vpack.c.bf16 %v1659_v33, %v1659_v33  ;;  %1688 = vst.msk [vmem:[%s2631_s24 + $0xc] sm:$0xf] %vm1684_vm2, %v1671_v34  ;;  %v1664_v25 = vmax.f32 %v1648_v38, 0.0  ;;  %v1718_v33 = vld [vmem:[#allocation3 + $0x8] sm:$0xff] }
 0x2e0   : > { %1689 = vst.msk [vmem:[%s2631_s24 + $0x10] sm:$0xf] %vm1684_vm2, %v1672_v40 }
 0x2e1   : > { %1775 = vperm.xlu2 %2408, %v1709_v20   ;;  %v1676_v20 = vpack.c.bf16 %v1660_v39, %v1660_v39  ;;  %1690 = vst.msk [vmem:[%s2631_s24 + $0x14] sm:$0xf] %vm1684_vm2, %v1673_v42 }
 0x2e2   : > { %1770 = vperm.xlu1 %2407, %v1708_v12   ;;  %1765 = vperm.xlu0 %2406, %v1707_v21   ;;  %v1665_v12 = vmax.f32 %v1649_v41, 0.0  ;;  %v1677_v21 = vpack.c.bf16 %v1661_v18, %v1661_v18  ;;  %1691 = vst.msk [vmem:[%s2631_s24 + $0x18] sm:$0xf] %vm1684_vm2, %v1674_v49 }
 0x2e3   : > { %1692 = vst.msk [vmem:[%s2631_s24 + $0x1c] sm:$0xf] %vm1684_vm2, %v1675_v52 }
 0x2e4   : > { %1693 = vst.msk [vmem:[%s2631_s24 + $0x20] sm:$0xf] %vm1684_vm2, %v1676_v20  ;;  %v1724_v20 = vld [vmem:[#allocation3 + $0x38] sm:$0xff] }
 0x2e5   : > { %1694 = vst.msk [vmem:[%s2631_s24 + $0x24] sm:$0xf] %vm1684_vm2, %v1677_v21 }
 0x2e9   : > { %1790 = vperm.xlu2 %2408, %v1712_v56   ;;  %v1666_v56 = vmax.f32 %v1650_v43, 0.0 }
 0x2ea   : > { %1785 = vperm.xlu1 %2407, %v1711_v22   ;;  %1780 = vperm.xlu0 %2406, %v1710_v57   ;;  %v1678_v22 = vpack.c.bf16 %v1662_v44, %v1662_v44  ;;  %v1667_v57 = vmax.f32 %v1651_v50, 0.0 }
 0x2ec   : > { %1695 = vst.msk [vmem:[%s2631_s24 + $0x28] sm:$0xf] %vm1684_vm2, %v1678_v22  ;;  %v1683_v58 = vpack.c.bf16 %v1667_v57, %v1667_v57 }
 0x2ee   : > { %1700 = vst.msk [vmem:[%s2631_s24 + $0x3c] sm:$0xf] %vm1684_vm2, %v1683_v58 }
 0x2f1   : > { %1805 = vperm.xlu2 %2408, %v1715_v13   ;;  %v1679_v13 = vpack.c.bf16 %v1663_v51, %v1663_v51 }
 0x2f2   : > { %1800 = vperm.xlu1 %2407, %v1714_v26   ;;  %1795 = vperm.xlu0 %2406, %v1713_v35   ;;  %v1680_v26 = vpack.c.bf16 %v1664_v25, %v1664_v25  ;;  %v1681_v35 = vpack.c.bf16 %v1665_v12, %v1665_v12  ;;  %v1723_v12 = vld [vmem:[#allocation3 + $0x30] sm:$0xff] }
 0x2f3   : > { %1696 = vst.msk [vmem:[%s2631_s24 + $0x2c] sm:$0xf] %vm1684_vm2, %v1679_v13 }
 0x2f4   : > { %1697 = vst.msk [vmem:[%s2631_s24 + $0x30] sm:$0xf] %vm1684_vm2, %v1680_v26 }
 0x2f5   : > { %1698 = vst.msk [vmem:[%s2631_s24 + $0x34] sm:$0xf] %vm1684_vm2, %v1681_v35 }
 0x2fa   : > { %1810 = vperm.xlu0 %2406, %v1716_v48   ;;  %v1682_v48 = vpack.c.bf16 %v1666_v56, %v1666_v56 }
 0x2fc   : > { %1699 = vst.msk [vmem:[%s2631_s24 + $0x38] sm:$0xf] %vm1684_vm2, %v1682_v48 }
 0x32b   : > { %v1756_v37 = vpop.permute.xlu2 %1755 }
 0x32c   : > { %v1817_v61 = vmul.f32 %v1756_v37, %v1721_v59  ;;  %v1727_v37 = vld [vmem:[#allocation3 + $0x50] sm:$0xff] }
 0x32e   : > { %v1837_v62 = vadd.f32 %v2950_v60, %v1817_v61  ;;  %v1726_v61 = vld [vmem:[#allocation3 + $0x48] sm:$0xff] }
 0x330   : > { %v1853_v63 = vmax.f32 %v1837_v62, 0.0 }
 0x332   : > { %v1869_v53 = vpack.c.bf16 %v1853_v63, %v1853_v63 }
 0x333   : > { %v1761_v54 = vpop.permute.xlu2 %1760 }
 0x334   : > { %1885 = vst.msk [vmem:[%s2646_s20 + $0x10] sm:$0xf] %vm1684_vm2, %v1869_v53  ;;  %v1818_v55 = vmul.f32 %v1761_v54, %v1722_v0 }
 0x336   : > { %v1838_v1 = vadd.f32 %v2950_v60, %v1818_v55 }
 0x338   : > { %v1854_v2 = vmax.f32 %v1838_v1, 0.0 }
 0x33a   : > { %v1870_v4 = vpack.c.bf16 %v1854_v2, %v1854_v2 }
 0x33b   : > { %v1776_v5 = vpop.permute.xlu2 %1775 }
 0x33c   : > { %1886 = vst.msk [vmem:[%s2646_s20 + $0x14] sm:$0xf] %vm1684_vm2, %v1870_v4  ;;  %v1821_v6 = vmul.f32 %v1776_v5, %v1725_v3  ;;  %v1730_v5 = vld [vmem:[#allocation3 + $0x68] sm:$0xff] }
 0x33e   : > { %v1841_v45 = vadd.f32 %v2950_v60, %v1821_v6  ;;  %v1729_v6 = vld [vmem:[#allocation3 + $0x60] sm:$0xff] }
 0x340   : > { %v1857_v46 = vmax.f32 %v1841_v45, 0.0 }
 0x342   : > { %v1873_v7 = vpack.c.bf16 %v1857_v46, %v1857_v46 }
 0x343   : > { %v1791_v10 = vpop.permute.xlu2 %1790 }
 0x344   : > { %1889 = vst.msk [vmem:[%s2646_s20 + $0x20] sm:$0xf] %vm1684_vm2, %v1873_v7  ;;  %v1824_v11 = vmul.f32 %v1791_v10, %v1728_v47  ;;  %v1746_v14 = vpop.permute.xlu1 %1745  ;;  %v1736_v15 = vpop.permute.xlu0 %1735 }
 0x345   : > { %v1815_v16 = vmul.f32 %v1746_v14, %v1719_v8  ;;  %v1813_v17 = vmul.f32 %v1736_v15, %v1717_v9 }
 0x346   : > { %v1844_v19 = vadd.f32 %v2950_v60, %v1824_v11 }
 0x347   : > { %v1835_v23 = vadd.f32 %v2950_v60, %v1815_v16  ;;  %v1833_v24 = vadd.f32 %v2950_v60, %v1813_v17  ;;  %v1732_v16 = vld [vmem:[#allocation3 + $0x78] sm:$0xff] }
 0x348   : > { %v1860_v27 = vmax.f32 %v1844_v19, 0.0 }
 0x349   : > { %v1851_v29 = vmax.f32 %v1835_v23, 0.0  ;;  %v1849_v30 = vmax.f32 %v1833_v24, 0.0 }
 0x34a   : > { %v1876_v31 = vpack.c.bf16 %v1860_v27, %v1860_v27 }
 0x34b   : > { %v1867_v34 = vpack.c.bf16 %v1851_v29, %v1851_v29  ;;  %v1865_v36 = vpack.c.bf16 %v1849_v30, %v1849_v30  ;;  %v1806_v38 = vpop.permute.xlu2 %1805 }
 0x34c   : > { %1892 = vst.msk [vmem:[%s2646_s20 + $0x2c] sm:$0xf] %vm1684_vm2, %v1876_v31  ;;  %v1827_v39 = vmul.f32 %v1806_v38, %v1731_v28  ;;  %v1751_v40 = vpop.permute.xlu1 %1750  ;;  %v1741_v41 = vpop.permute.xlu0 %1740 }
 0x34d   : > { %1883 = vst.msk [vmem:[%s2646_s20 + $0x8] sm:$0xf] %vm1684_vm2, %v1867_v34  ;;  %v1816_v18 = vmul.f32 %v1751_v40, %v1720_v32  ;;  %v1814_v42 = vmul.f32 %v1741_v41, %v1718_v33 }
 0x34e   : > { %1881 = vst.msk [vmem:[%s2646_s20] sm:$0xf] %vm1684_vm2, %v1865_v36  ;;  %v1847_v43 = vadd.f32 %v2950_v60, %v1827_v39 }
 0x34f   : > { %v1836_v44 = vadd.f32 %v2950_v60, %v1816_v18  ;;  %v1834_v49 = vadd.f32 %v2950_v60, %v1814_v42 }
 0x350   : > { %v1863_v50 = vmax.f32 %v1847_v43, 0.0 }
 0x351   : > { %v1852_v51 = vmax.f32 %v1836_v44, 0.0  ;;  %v1850_v52 = vmax.f32 %v1834_v49, 0.0 }
 0x352   : > { %v1879_v25 = vpack.c.bf16 %v1863_v50, %v1863_v50 }
 0x353   : > { %v1868_v21 = vpack.c.bf16 %v1852_v51, %v1852_v51  ;;  %v1866_v56 = vpack.c.bf16 %v1850_v52, %v1850_v52 }
 0x354   : > { %1895 = vst.msk [vmem:[%s2646_s20 + $0x38] sm:$0xf] %vm1684_vm2, %v1879_v25  ;;  %v1771_v22 = vpop.permute.xlu1 %1770  ;;  %v1766_v57 = vpop.permute.xlu0 %1765 }
 0x355   : > { %1884 = vst.msk [vmem:[%s2646_s20 + $0xc] sm:$0xf] %vm1684_vm2, %v1868_v21  ;;  %v1820_v13 = vmul.f32 %v1771_v22, %v1724_v20  ;;  %v1819_v26 = vmul.f32 %v1766_v57, %v1723_v12 }
 0x356   : > { %1882 = vst.msk [vmem:[%s2646_s20 + $0x4] sm:$0xf] %vm1684_vm2, %v1866_v56 }
 0x357   : > { %v1840_v35 = vadd.f32 %v2950_v60, %v1820_v13  ;;  %v1839_v48 = vadd.f32 %v2950_v60, %v1819_v26 }
 0x359   : > { %v1856_v58 = vmax.f32 %v1840_v35, 0.0  ;;  %v1855_v59 = vmax.f32 %v1839_v48, 0.0 }
 0x35b   : > { %v1872_v62 = vpack.c.bf16 %v1856_v58, %v1856_v58  ;;  %v1871_v63 = vpack.c.bf16 %v1855_v59, %v1855_v59 }
 0x35c   : > { %v1786_v0 = vpop.permute.xlu1 %1785  ;;  %v1781_v53 = vpop.permute.xlu0 %1780 }
 0x35d   : > { %1888 = vst.msk [vmem:[%s2646_s20 + $0x1c] sm:$0xf] %vm1684_vm2, %v1872_v62  ;;  %v1823_v54 = vmul.f32 %v1786_v0, %v1727_v37  ;;  %v1822_v55 = vmul.f32 %v1781_v53, %v1726_v61 }
 0x35e   : > { %1887 = vst.msk [vmem:[%s2646_s20 + $0x18] sm:$0xf] %vm1684_vm2, %v1871_v63 }
 0x35f   : > { %v1843_v1 = vadd.f32 %v2950_v60, %v1823_v54  ;;  %v1842_v2 = vadd.f32 %v2950_v60, %v1822_v55 }
 0x361   : > { %v1859_v3 = vmax.f32 %v1843_v1, 0.0  ;;  %v1858_v4 = vmax.f32 %v1842_v2, 0.0 }
 0x363   : > { %v1875_v45 = vpack.c.bf16 %v1859_v3, %v1859_v3  ;;  %v1874_v46 = vpack.c.bf16 %v1858_v4, %v1858_v4 }
 0x364   : > { %v1801_v47 = vpop.permute.xlu1 %1800  ;;  %v1796_v7 = vpop.permute.xlu0 %1795 }
 0x365   : > { %1891 = vst.msk [vmem:[%s2646_s20 + $0x28] sm:$0xf] %vm1684_vm2, %v1875_v45  ;;  %v1826_v8 = vmul.f32 %v1801_v47, %v1730_v5  ;;  %v1825_v9 = vmul.f32 %v1796_v7, %v1729_v6 }
 0x366   : > { %1890 = vst.msk [vmem:[%s2646_s20 + $0x24] sm:$0xf] %vm1684_vm2, %v1874_v46 }
 0x367   : > { %v1846_v10 = vadd.f32 %v2950_v60, %v1826_v8  ;;  %v1845_v11 = vadd.f32 %v2950_v60, %v1825_v9 }
 0x369   : > { %v1862_v14 = vmax.f32 %v1846_v10, 0.0  ;;  %v1861_v15 = vmax.f32 %v1845_v11, 0.0 }
 0x36b   : > { %v1878_v17 = vpack.c.bf16 %v1862_v14, %v1862_v14  ;;  %v1877_v19 = vpack.c.bf16 %v1861_v15, %v1861_v15 }
 0x36c   : > { %v1811_v23 = vpop.permute.xlu0 %1810 }
 0x36d   : > { %1894 = vst.msk [vmem:[%s2646_s20 + $0x34] sm:$0xf] %vm1684_vm2, %v1878_v17  ;;  %v1828_v24 = vmul.f32 %v1811_v23, %v1732_v16 }
 0x36e   : > { %1893 = vst.msk [vmem:[%s2646_s20 + $0x30] sm:$0xf] %vm1684_vm2, %v1877_v19 }
 0x36f   : > { %v1848_v27 = vadd.f32 %v2950_v60, %v1828_v24 }
 0x371   : > { %v1864_v29 = vmax.f32 %v1848_v27, 0.0 }
 0x373   : > { %v1880_v30 = vpack.c.bf16 %v1864_v29, %v1864_v29 }
 0x375   : > { %1896 = vst.msk [vmem:[%s2646_s20 + $0x3c] sm:$0xf] %vm1684_vm2, %v1880_v30 }
 0x376 PF: > { %s22_s23 = sadd.s32 1, %s2465_s23   ;;  %s3050_s24 = sld [smem:[#allocation9_spill]] }
 0x377   : > { %p19_p0 = scmp.ge.s32.totalorder %s22_s23, 6   ;;  %s3051_s19 = sld [smem:[#allocation5_spill]] }
 0x378   : > { %s3052_s20 = sld [smem:[#allocation6_spill]]  ;;  %s3055_s17 = smov %s2445_s18 }
 0x379   : > { %s3053_s21 = sld [smem:[#allocation7_spill]]  ;;  %21 = sbr.rel (!%p19_p0) target bundleno = 9 (0x9), region = 171 }
 0x37a   : > { %s3054_s22 = sld [smem:[#allocation8_spill]] }
 0x37c   : > { %s3056_s18 = smov %s3050_s24 }

</bundles_post_ra>
